<compile_context>
chip_gen: v7x
topology: tpu7x:2x2x1
jax: 0.10.0
libtpu: 0.0.40
codegen_flags: <defaults>
</compile_context>

<pallas_src>
import jax
import jax.numpy as jnp
from jax import lax
from jax.experimental import pallas as pl
from jax.experimental.pallas import tpu as pltpu


# ----------------------------------------------------------------------------
# In-kernel math helpers (only mul/add/div/exp/where -> clean Mosaic lowering).
# ----------------------------------------------------------------------------
def _erf(x):
    """Abramowitz & Stegun 7.1.26 erf approximation (max abs err ~1.5e-7)."""
    a1 = 0.254829592
    a2 = -0.284496736
    a3 = 1.421413741
    a4 = -1.453152027
    a5 = 1.061405429
    p = 0.3275911
    ax = jnp.where(x >= 0.0, x, -x)
    t = 1.0 / (1.0 + p * ax)
    poly = ((((a5 * t + a4) * t + a3) * t + a2) * t + a1) * t
    y = 1.0 - poly * jnp.exp(-(ax * ax))
    return jnp.where(x >= 0.0, y, -y)


def _gelu(x):
    """Exact (erf-based) GELU, matching torch.nn.GELU() to ~1e-6."""
    return 0.5 * x * (1.0 + _erf(x * 0.7071067811865476))


# ----------------------------------------------------------------------------
# Kernels
# ----------------------------------------------------------------------------
def _make_conv3x3_kernel(H, W, Cin, Cout, fuse_bn_gelu, with_residual):
    """3x3 same-padding conv (+ optional fused BN / GELU / residual epilogue).

    Per grid step (one image):
      x_ref     : (1, H+2, W+2, Cin)  zero-padded NHWC input
      w_ref     : (9, Cin, Cout)      weights, k = ky*3 + kx
      scale_ref : (1, Cout)           folded BN scale   [if fuse_bn_gelu]
      shift_ref : (1, Cout)           folded BN shift   [if fuse_bn_gelu]
      res_ref   : (H*W, Cout)         residual rows     [if with_residual]
      o_ref     : (H*W, Cout)
      acc_ref   : (H*W, Cout) f32     VMEM scratch accumulator
    """
    HW = H * W

    def kernel(*refs):
        it = iter(refs)
        x_ref = next(it)
        w_ref = next(it)
        scale_ref = next(it) if fuse_bn_gelu else None
        shift_ref = next(it) if fuse_bn_gelu else None
        res_ref = next(it) if with_residual else None
        o_ref = next(it)
        acc_ref = next(it)

        x = x_ref[0]                                   # (H+2, W+2, Cin)
        for k in range(9):                             # unrolled 3x3 taps
            ky, kx = k // 3, k % 3
            patch = x[ky:ky + H, kx:kx + W, :].reshape(HW, Cin)
            contrib = jnp.dot(patch, w_ref[k],
                              preferred_element_type=jnp.float32)
            if k == 0:
                acc_ref[...] = contrib                 # overwrite (no zeroing pass)
            else:
                acc_ref[...] += contrib

        y = acc_ref[...]
        if fuse_bn_gelu:
            y = y * scale_ref[...] + shift_ref[...]    # folded BatchNorm
            y = _gelu(y)
        if with_residual:
            y = y + res_ref[...].astype(jnp.float32)   # x += x0
        o_ref[...] = y.astype(o_ref.dtype)

    return kernel


def _pool_bn_gelu_kernel(x_ref, scale_ref, shift_ref, o_ref):
    """2x2 max-pool + folded BatchNorm + GELU.

    x_ref : (1, Hh, 2, Wh, 2*C) free-reshape view of the conv1 output:
            dim 2 is the h-parity (major axis), the last dim packs the two
            w-parities side by side on the lane axis (first C lanes / last C).
    """
    rows, C = o_ref.shape
    top = x_ref[0, :, 0, :, :]                 # (Hh, Wh, 2C)  h even
    bot = x_ref[0, :, 1, :, :]                 # (Hh, Wh, 2C)  h odd
    m = jnp.maximum(top, bot)
    p = jnp.maximum(m[:, :, :C], m[:, :, C:])  # (Hh, Wh, C)   w-pairing
    y = p.reshape(rows, C).astype(jnp.float32) * scale_ref[...] + shift_ref[...]
    o_ref[...] = _gelu(y).astype(o_ref.dtype)


# ----------------------------------------------------------------------------
# pallas_call wrappers
# ----------------------------------------------------------------------------
def _conv3x3(x_nhwc, w9, scale=None, shift=None, residual=None,
             out_dtype=jnp.float32):
    """3x3 same conv; returns output flattened to (N*H*W, Cout)."""
    N, H, W, Cin = x_nhwc.shape
    Cout = w9.shape[-1]
    HW = H * W
    fuse = scale is not None
    withres = residual is not None

    x_pad = jnp.pad(x_nhwc, ((0, 0), (1, 1), (1, 1), (0, 0)))

    in_specs = [
        pl.BlockSpec((1, H + 2, W + 2, Cin), lambda n: (n, 0, 0, 0)),
        pl.BlockSpec((9, Cin, Cout), lambda n: (0, 0, 0)),
    ]
    args = [x_pad, w9]
    if fuse:
        in_specs += [pl.BlockSpec((1, Cout), lambda n: (0, 0)),
                     pl.BlockSpec((1, Cout), lambda n: (0, 0))]
        args += [scale, shift]
    if withres:
        in_specs.append(pl.BlockSpec((HW, Cout), lambda n: (n, 0)))
        args.append(residual)

    kernel = _make_conv3x3_kernel(H, W, Cin, Cout, fuse, withres)
    return pl.pallas_call(
        kernel,
        out_shape=jax.ShapeDtypeStruct((N * HW, Cout), out_dtype),
        grid_spec=pltpu.PrefetchScalarGridSpec(
            num_scalar_prefetch=0,
            grid=(N,),
            in_specs=in_specs,
            out_specs=pl.BlockSpec((HW, Cout), lambda n: (n, 0)),
            scratch_shapes=[pltpu.VMEM((HW, Cout), jnp.float32)],
        ),
        compiler_params=pltpu.CompilerParams(
            dimension_semantics=("parallel",)),
    )(*args)


def _maxpool2_bn_gelu(y_flat, N, H, W, C, scale, shift, out_dtype=jnp.float32):
    """y_flat: (N*H*W, C) conv output; returns (N*(H//2)*(W//2), C)."""
    Hh, Wh = H // 2, W // 2
    rows = Hh * Wh
    # Metadata-only view (row-major regrouping, no HBM copy): the two
    # w-parities end up adjacent on the lane axis, the h-parity on a small
    # major axis.  All pooling reductions then stay on cheap VPU paths.
    y_view = y_flat.reshape(N, Hh, 2, Wh, 2 * C)
    return pl.pallas_call(
        _pool_bn_gelu_kernel,
        out_shape=jax.ShapeDtypeStruct((N * rows, C), out_dtype),
        grid_spec=pltpu.PrefetchScalarGridSpec(
            num_scalar_prefetch=0,
            grid=(N,),
            in_specs=[pl.BlockSpec((1, Hh, 2, Wh, 2 * C),
                                   lambda n: (n, 0, 0, 0, 0)),
                      pl.BlockSpec((1, C), lambda n: (0, 0)),
                      pl.BlockSpec((1, C), lambda n: (0, 0))],
            out_specs=pl.BlockSpec((rows, C), lambda n: (n, 0)),
        ),
        compiler_params=pltpu.CompilerParams(
            dimension_semantics=("parallel",)),
    )(y_view, scale, shift)


def _fold_bn(gamma, beta, mean, var, eps):
    scale = gamma / jnp.sqrt(var + eps)
    shift = beta - mean * scale
    return (scale.reshape(1, -1).astype(jnp.float32),
            shift.reshape(1, -1).astype(jnp.float32))


def conv_group_forward(x_nchw, params):
    """Pallas ConvGroup forward: (N, Cin, H, W) -> (N, Cout, H//2, W//2)."""
    N, Cin, H, W = x_nchw.shape
    Cout = params['w1'].shape[0]
    eps = params['eps']

    # NCHW -> NHWC (channels on the lane dim).
    x = jnp.transpose(x_nchw, (0, 2, 3, 1))

    # PyTorch OIHW conv weights -> (9, Cin, Cout), k = ky*3 + kx.
    w1 = jnp.transpose(params['w1'], (2, 3, 1, 0)).reshape(9, Cin, Cout)
    w2 = jnp.transpose(params['w2'], (2, 3, 1, 0)).reshape(9, Cout, Cout)
    w3 = jnp.transpose(params['w3'], (2, 3, 1, 0)).reshape(9, Cout, Cout)
    s1, b1 = _fold_bn(params['g1'], params['b1'], params['m1'], params['v1'], eps)
    s2, b2 = _fold_bn(params['g2'], params['b2'], params['m2'], params['v2'], eps)
    s3, b3 = _fold_bn(params['g3'], params['b3'], params['m3'], params['v3'], eps)

    Hh, Wh = H // 2, W // 2

    # conv1 (raw output: pooling comes before norm1/activation in the module).
    y1 = _conv3x3(x, w1)                                    # (N*H*W, Cout)
    # maxpool 2x2 + bn1 + GELU (fused) -> this is x0, the residual branch.
    x0 = _maxpool2_bn_gelu(y1, N, H, W, Cout, s1, b1)       # (N*Hh*Wh, Cout)
    # conv2 + bn2 + GELU (fused epilogue).
    y2 = _conv3x3(x0.reshape(N, Hh, Wh, Cout), w2, s2, b2)  # (N*Hh*Wh, Cout)
    # conv3 + bn3 + GELU + residual add (fused epilogue).
    y3 = _conv3x3(y2.reshape(N, Hh, Wh, Cout), w3, s3, b3, residual=x0)

    # NHWC -> NCHW.
    return jnp.transpose(y3.reshape(N, Hh, Wh, Cout), (0, 3, 1, 2))


# ----------------------------------------------------------------------------
# Plain-JAX reference (same forward pass), used only for the self-check.
# ----------------------------------------------------------------------------
def conv_group_reference(x_nchw, params):
    eps = params['eps']
    x = jnp.transpose(x_nchw, (0, 2, 3, 1))

    def conv(z, w_pt):
        return lax.conv_general_dilated(
            z, jnp.transpose(w_pt, (2, 3, 1, 0)),
            window_strides=(1, 1), padding='SAME',
            dimension_numbers=('NHWC', 'HWIO', 'NHWC'),
            precision=lax.Precision.HIGHEST)

    def bn(z, g, b, m, v):
        return (z - m) / jnp.sqrt(v + eps) * g + b

    def act(z):
        return jax.nn.gelu(z, approximate=False)

    x = conv(x, params['w1'])
    x = lax.reduce_window(x, -jnp.inf, lax.max,
                          (1, 2, 2, 1), (1, 2, 2, 1), 'VALID')
    x = act(bn(x, params['g1'], params['b1'], params['m1'], params['v1']))
    x0 = x
    x = act(bn(conv(x, params['w2']),
               params['g2'], params['b2'], params['m2'], params['v2']))
    x = act(bn(conv(x, params['w3']),
               params['g3'], params['b3'], params['m3'], params['v3']))
    x = x + x0
    return jnp.transpose(x, (0, 3, 1, 2))


if __name__ == "__main__":
    key = jax.random.PRNGKey(0)
    ks = jax.random.split(key, 16)

    # Small shapes consistent with ConvGroup (scaled-down airbench widths).
    N, Cin, Cout, H, W = 2, 32, 128, 16, 16

    x = jax.random.normal(ks[0], (N, Cin, H, W), dtype=jnp.float32)

    def bn_init(kb, km, kv):
        return dict(
            g=jnp.ones((Cout,), jnp.float32),          # BN weight frozen at 1
            b=0.1 * jax.random.normal(kb, (Cout,), jnp.float32),
            m=0.1 * jax.random.normal(km, (Cout,), jnp.float32),
            v=jax.random.uniform(kv, (Cout,), jnp.float32,
                                 minval=0.5, maxval=1.5))

    bn1 = bn_init(ks[4], ks[5], ks[6])
    bn2 = bn_init(ks[7], ks[8], ks[9])
    bn3 = bn_init(ks[10], ks[11], ks[12])

    params = {
        'w1': jax.random.normal(ks[1], (Cout, Cin, 3, 3), jnp.float32)
              / jnp.sqrt(9.0 * Cin),
        'w2': jax.random.normal(ks[2], (Cout, Cout, 3, 3), jnp.float32)
              / jnp.sqrt(9.0 * Cout),
        'w3': jax.random.normal(ks[3], (Cout, Cout, 3, 3), jnp.float32)
              / jnp.sqrt(9.0 * Cout),
        'g1': bn1['g'], 'b1': bn1['b'], 'm1': bn1['m'], 'v1': bn1['v'],
        'g2': bn2['g'], 'b2': bn2['b'], 'm2': bn2['m'], 'v2': bn2['v'],
        'g3': bn3['g'], 'b3': bn3['b'], 'm3': bn3['m'], 'v3': bn3['v'],
        'eps': 1e-12,
    }

    y = jax.block_until_ready(jax.jit(conv_group_forward)(x, params))
    y_ref = jax.block_until_ready(conv_group_reference(x, params))

    assert y.shape == (N, Cout, H // 2, W // 2), y.shape
    assert y.dtype == x.dtype
    max_diff = float(jnp.max(jnp.abs(y - y_ref)))
    assert jnp.allclose(y, y_ref, rtol=2e-2, atol=2e-2), f"max|diff|={max_diff}"

    print("KERNEL_OK")
</pallas_src>

<mosaic_0001>
module attributes {stable_mosaic.version = 11 : i64} {
  func.func @kernel(%arg0: i32, %arg1: memref<1x18x18x32xf32, #tpu.memory_space<vmem>>, %arg2: memref<9x32x128xf32, #tpu.memory_space<vmem>>, %arg3: memref<256x128xf32, #tpu.memory_space<vmem>>, %arg4: memref<256x128xf32, #tpu.memory_space<vmem>>) attributes {dimension_semantics = [#tpu.dimension_semantics<parallel>], iteration_bounds = array<i64: 2>, scalar_prefetch = 0 : i64, scratch_operands = 1 : i64, tpu.core_type = #tpu.core_type<tc>, window_params = [{transform_indices = @transform_0, window_bounds = array<i64: 1, 18, 18, 32>}, {pipeline_mode = #tpu.pipeline_mode<synchronous>, transform_indices = @transform_1, window_bounds = array<i64: 9, 32, 128>}, {transform_indices = @transform_2, window_bounds = array<i64: 256, 128>}]} {
    %c0 = arith.constant 0 : index
    %c0_0 = arith.constant 0 : index
    %c0_1 = arith.constant 0 : index
    %c0_2 = arith.constant 0 : index
    %0 = vector.load %arg1[%c0, %c0_0, %c0_1, %c0_2] : memref<1x18x18x32xf32, #tpu.memory_space<vmem>>, vector<1x18x18x32xf32>
    %1 = vector.shape_cast %0 : vector<1x18x18x32xf32> to vector<18x18x32xf32>
    %2 = vector.extract_strided_slice %1 {offsets = [0, 0, 0], sizes = [16, 16, 32], strides = [1, 1, 1]} : vector<18x18x32xf32> to vector<16x16x32xf32>
    %3 = vector.shape_cast %2 : vector<16x16x32xf32> to vector<256x32xf32>
    %c0_3 = arith.constant 0 : index
    %c0_4 = arith.constant 0 : index
    %c0_5 = arith.constant 0 : index
    %4 = vector.load %arg2[%c0_3, %c0_4, %c0_5] : memref<9x32x128xf32, #tpu.memory_space<vmem>>, vector<1x32x128xf32>
    %5 = vector.shape_cast %4 : vector<1x32x128xf32> to vector<32x128xf32>
    %cst = arith.constant dense<0.000000e+00> : vector<256x128xf32>
    %6 = tpu.matmul %3, %5, %cst {dimension_numbers = #tpu.dot_dimension_numbers<[1], [0], [0], [1], [0, 0, 1, 1], [], []>} : vector<256x32xf32>, vector<32x128xf32>, vector<256x128xf32> -> vector<256x128xf32>
    %c0_6 = arith.constant 0 : index
    %c0_7 = arith.constant 0 : index
    %7 = vector.load %arg4[%c0_6, %c0_7] : memref<256x128xf32, #tpu.memory_space<vmem>>, vector<256x128xf32>
    tpu.vector_store %arg4[%c0_6, %c0_7], %6 {strides = array<i32>} : memref<256x128xf32, #tpu.memory_space<vmem>>, vector<256x128xf32>,
    %8 = vector.extract_strided_slice %1 {offsets = [0, 1, 0], sizes = [16, 16, 32], strides = [1, 1, 1]} : vector<18x18x32xf32> to vector<16x16x32xf32>
    %9 = vector.shape_cast %8 : vector<16x16x32xf32> to vector<256x32xf32>
    %c1 = arith.constant 1 : index
    %c0_8 = arith.constant 0 : index
    %c0_9 = arith.constant 0 : index
    %10 = vector.load %arg2[%c1, %c0_8, %c0_9] : memref<9x32x128xf32, #tpu.memory_space<vmem>>, vector<1x32x128xf32>
    %11 = vector.shape_cast %10 : vector<1x32x128xf32> to vector<32x128xf32>
    %cst_10 = arith.constant dense<0.000000e+00> : vector<256x128xf32>
    %12 = tpu.matmul %9, %11, %cst_10 {dimension_numbers = #tpu.dot_dimension_numbers<[1], [0], [0], [1], [0, 0, 1, 1], [], []>} : vector<256x32xf32>, vector<32x128xf32>, vector<256x128xf32> -> vector<256x128xf32>
    %c0_11 = arith.constant 0 : index
    %c0_12 = arith.constant 0 : index
    %13 = vector.load %arg4[%c0_11, %c0_12] : memref<256x128xf32, #tpu.memory_space<vmem>>, vector<256x128xf32>
    %14 = arith.addf %13, %12 : vector<256x128xf32>
    %c0_13 = arith.constant 0 : index
    %c0_14 = arith.constant 0 : index
    %15 = vector.load %arg4[%c0_13, %c0_14] : memref<256x128xf32, #tpu.memory_space<vmem>>, vector<256x128xf32>
    tpu.vector_store %arg4[%c0_13, %c0_14], %14 {strides = array<i32>} : memref<256x128xf32, #tpu.memory_space<vmem>>, vector<256x128xf32>,
    %16 = vector.extract_strided_slice %1 {offsets = [0, 2, 0], sizes = [16, 16, 32], strides = [1, 1, 1]} : vector<18x18x32xf32> to vector<16x16x32xf32>
    %17 = vector.shape_cast %16 : vector<16x16x32xf32> to vector<256x32xf32>
    %c2 = arith.constant 2 : index
    %c0_15 = arith.constant 0 : index
    %c0_16 = arith.constant 0 : index
    %18 = vector.load %arg2[%c2, %c0_15, %c0_16] : memref<9x32x128xf32, #tpu.memory_space<vmem>>, vector<1x32x128xf32>
    %19 = vector.shape_cast %18 : vector<1x32x128xf32> to vector<32x128xf32>
    %cst_17 = arith.constant dense<0.000000e+00> : vector<256x128xf32>
    %20 = tpu.matmul %17, %19, %cst_17 {dimension_numbers = #tpu.dot_dimension_numbers<[1], [0], [0], [1], [0, 0, 1, 1], [], []>} : vector<256x32xf32>, vector<32x128xf32>, vector<256x128xf32> -> vector<256x128xf32>
    %c0_18 = arith.constant 0 : index
    %c0_19 = arith.constant 0 : index
    %21 = vector.load %arg4[%c0_18, %c0_19] : memref<256x128xf32, #tpu.memory_space<vmem>>, vector<256x128xf32>
    %22 = arith.addf %21, %20 : vector<256x128xf32>
    %c0_20 = arith.constant 0 : index
    %c0_21 = arith.constant 0 : index
    %23 = vector.load %arg4[%c0_20, %c0_21] : memref<256x128xf32, #tpu.memory_space<vmem>>, vector<256x128xf32>
    tpu.vector_store %arg4[%c0_20, %c0_21], %22 {strides = array<i32>} : memref<256x128xf32, #tpu.memory_space<vmem>>, vector<256x128xf32>,
    %24 = vector.extract_strided_slice %1 {offsets = [1, 0, 0], sizes = [16, 16, 32], strides = [1, 1, 1]} : vector<18x18x32xf32> to vector<16x16x32xf32>
    %25 = vector.shape_cast %24 : vector<16x16x32xf32> to vector<256x32xf32>
    %c3 = arith.constant 3 : index
    %c0_22 = arith.constant 0 : index
    %c0_23 = arith.constant 0 : index
    %26 = vector.load %arg2[%c3, %c0_22, %c0_23] : memref<9x32x128xf32, #tpu.memory_space<vmem>>, vector<1x32x128xf32>
    %27 = vector.shape_cast %26 : vector<1x32x128xf32> to vector<32x128xf32>
    %cst_24 = arith.constant dense<0.000000e+00> : vector<256x128xf32>
    %28 = tpu.matmul %25, %27, %cst_24 {dimension_numbers = #tpu.dot_dimension_numbers<[1], [0], [0], [1], [0, 0, 1, 1], [], []>} : vector<256x32xf32>, vector<32x128xf32>, vector<256x128xf32> -> vector<256x128xf32>
    %c0_25 = arith.constant 0 : index
    %c0_26 = arith.constant 0 : index
    %29 = vector.load %arg4[%c0_25, %c0_26] : memref<256x128xf32, #tpu.memory_space<vmem>>, vector<256x128xf32>
    %30 = arith.addf %29, %28 : vector<256x128xf32>
    %c0_27 = arith.constant 0 : index
    %c0_28 = arith.constant 0 : index
    %31 = vector.load %arg4[%c0_27, %c0_28] : memref<256x128xf32, #tpu.memory_space<vmem>>, vector<256x128xf32>
    tpu.vector_store %arg4[%c0_27, %c0_28], %30 {strides = array<i32>} : memref<256x128xf32, #tpu.memory_space<vmem>>, vector<256x128xf32>,
    %32 = vector.extract_strided_slice %1 {offsets = [1, 1, 0], sizes = [16, 16, 32], strides = [1, 1, 1]} : vector<18x18x32xf32> to vector<16x16x32xf32>
    %33 = vector.shape_cast %32 : vector<16x16x32xf32> to vector<256x32xf32>
    %c4 = arith.constant 4 : index
    %c0_29 = arith.constant 0 : index
    %c0_30 = arith.constant 0 : index
    %34 = vector.load %arg2[%c4, %c0_29, %c0_30] : memref<9x32x128xf32, #tpu.memory_space<vmem>>, vector<1x32x128xf32>
    %35 = vector.shape_cast %34 : vector<1x32x128xf32> to vector<32x128xf32>
    %cst_31 = arith.constant dense<0.000000e+00> : vector<256x128xf32>
    %36 = tpu.matmul %33, %35, %cst_31 {dimension_numbers = #tpu.dot_dimension_numbers<[1], [0], [0], [1], [0, 0, 1, 1], [], []>} : vector<256x32xf32>, vector<32x128xf32>, vector<256x128xf32> -> vector<256x128xf32>
    %c0_32 = arith.constant 0 : index
    %c0_33 = arith.constant 0 : index
    %37 = vector.load %arg4[%c0_32, %c0_33] : memref<256x128xf32, #tpu.memory_space<vmem>>, vector<256x128xf32>
    %38 = arith.addf %37, %36 : vector<256x128xf32>
    %c0_34 = arith.constant 0 : index
    %c0_35 = arith.constant 0 : index
    %39 = vector.load %arg4[%c0_34, %c0_35] : memref<256x128xf32, #tpu.memory_space<vmem>>, vector<256x128xf32>
    tpu.vector_store %arg4[%c0_34, %c0_35], %38 {strides = array<i32>} : memref<256x128xf32, #tpu.memory_space<vmem>>, vector<256x128xf32>,
    %40 = vector.extract_strided_slice %1 {offsets = [1, 2, 0], sizes = [16, 16, 32], strides = [1, 1, 1]} : vector<18x18x32xf32> to vector<16x16x32xf32>
    %41 = vector.shape_cast %40 : vector<16x16x32xf32> to vector<256x32xf32>
    %c5 = arith.constant 5 : index
    %c0_36 = arith.constant 0 : index
    %c0_37 = arith.constant 0 : index
    %42 = vector.load %arg2[%c5, %c0_36, %c0_37] : memref<9x32x128xf32, #tpu.memory_space<vmem>>, vector<1x32x128xf32>
    %43 = vector.shape_cast %42 : vector<1x32x128xf32> to vector<32x128xf32>
    %cst_38 = arith.constant dense<0.000000e+00> : vector<256x128xf32>
    %44 = tpu.matmul %41, %43, %cst_38 {dimension_numbers = #tpu.dot_dimension_numbers<[1], [0], [0], [1], [0, 0, 1, 1], [], []>} : vector<256x32xf32>, vector<32x128xf32>, vector<256x128xf32> -> vector<256x128xf32>
    %c0_39 = arith.constant 0 : index
    %c0_40 = arith.constant 0 : index
    %45 = vector.load %arg4[%c0_39, %c0_40] : memref<256x128xf32, #tpu.memory_space<vmem>>, vector<256x128xf32>
    %46 = arith.addf %45, %44 : vector<256x128xf32>
    %c0_41 = arith.constant 0 : index
    %c0_42 = arith.constant 0 : index
    %47 = vector.load %arg4[%c0_41, %c0_42] : memref<256x128xf32, #tpu.memory_space<vmem>>, vector<256x128xf32>
    tpu.vector_store %arg4[%c0_41, %c0_42], %46 {strides = array<i32>} : memref<256x128xf32, #tpu.memory_space<vmem>>, vector<256x128xf32>,
    %48 = vector.extract_strided_slice %1 {offsets = [2, 0, 0], sizes = [16, 16, 32], strides = [1, 1, 1]} : vector<18x18x32xf32> to vector<16x16x32xf32>
    %49 = vector.shape_cast %48 : vector<16x16x32xf32> to vector<256x32xf32>
    %c6 = arith.constant 6 : index
    %c0_43 = arith.constant 0 : index
    %c0_44 = arith.constant 0 : index
    %50 = vector.load %arg2[%c6, %c0_43, %c0_44] : memref<9x32x128xf32, #tpu.memory_space<vmem>>, vector<1x32x128xf32>
    %51 = vector.shape_cast %50 : vector<1x32x128xf32> to vector<32x128xf32>
    %cst_45 = arith.constant dense<0.000000e+00> : vector<256x128xf32>
    %52 = tpu.matmul %49, %51, %cst_45 {dimension_numbers = #tpu.dot_dimension_numbers<[1], [0], [0], [1], [0, 0, 1, 1], [], []>} : vector<256x32xf32>, vector<32x128xf32>, vector<256x128xf32> -> vector<256x128xf32>
    %c0_46 = arith.constant 0 : index
    %c0_47 = arith.constant 0 : index
    %53 = vector.load %arg4[%c0_46, %c0_47] : memref<256x128xf32, #tpu.memory_space<vmem>>, vector<256x128xf32>
    %54 = arith.addf %53, %52 : vector<256x128xf32>
    %c0_48 = arith.constant 0 : index
    %c0_49 = arith.constant 0 : index
    %55 = vector.load %arg4[%c0_48, %c0_49] : memref<256x128xf32, #tpu.memory_space<vmem>>, vector<256x128xf32>
    tpu.vector_store %arg4[%c0_48, %c0_49], %54 {strides = array<i32>} : memref<256x128xf32, #tpu.memory_space<vmem>>, vector<256x128xf32>,
    %56 = vector.extract_strided_slice %1 {offsets = [2, 1, 0], sizes = [16, 16, 32], strides = [1, 1, 1]} : vector<18x18x32xf32> to vector<16x16x32xf32>
    %57 = vector.shape_cast %56 : vector<16x16x32xf32> to vector<256x32xf32>
    %c7 = arith.constant 7 : index
    %c0_50 = arith.constant 0 : index
    %c0_51 = arith.constant 0 : index
    %58 = vector.load %arg2[%c7, %c0_50, %c0_51] : memref<9x32x128xf32, #tpu.memory_space<vmem>>, vector<1x32x128xf32>
    %59 = vector.shape_cast %58 : vector<1x32x128xf32> to vector<32x128xf32>
    %cst_52 = arith.constant dense<0.000000e+00> : vector<256x128xf32>
    %60 = tpu.matmul %57, %59, %cst_52 {dimension_numbers = #tpu.dot_dimension_numbers<[1], [0], [0], [1], [0, 0, 1, 1], [], []>} : vector<256x32xf32>, vector<32x128xf32>, vector<256x128xf32> -> vector<256x128xf32>
    %c0_53 = arith.constant 0 : index
    %c0_54 = arith.constant 0 : index
    %61 = vector.load %arg4[%c0_53, %c0_54] : memref<256x128xf32, #tpu.memory_space<vmem>>, vector<256x128xf32>
    %62 = arith.addf %61, %60 : vector<256x128xf32>
    %c0_55 = arith.constant 0 : index
    %c0_56 = arith.constant 0 : index
    %63 = vector.load %arg4[%c0_55, %c0_56] : memref<256x128xf32, #tpu.memory_space<vmem>>, vector<256x128xf32>
    tpu.vector_store %arg4[%c0_55, %c0_56], %62 {strides = array<i32>} : memref<256x128xf32, #tpu.memory_space<vmem>>, vector<256x128xf32>,
    %64 = vector.extract_strided_slice %1 {offsets = [2, 2, 0], sizes = [16, 16, 32], strides = [1, 1, 1]} : vector<18x18x32xf32> to vector<16x16x32xf32>
    %65 = vector.shape_cast %64 : vector<16x16x32xf32> to vector<256x32xf32>
    %c8 = arith.constant 8 : index
    %c0_57 = arith.constant 0 : index
    %c0_58 = arith.constant 0 : index
    %66 = vector.load %arg2[%c8, %c0_57, %c0_58] : memref<9x32x128xf32, #tpu.memory_space<vmem>>, vector<1x32x128xf32>
    %67 = vector.shape_cast %66 : vector<1x32x128xf32> to vector<32x128xf32>
    %cst_59 = arith.constant dense<0.000000e+00> : vector<256x128xf32>
    %68 = tpu.matmul %65, %67, %cst_59 {dimension_numbers = #tpu.dot_dimension_numbers<[1], [0], [0], [1], [0, 0, 1, 1], [], []>} : vector<256x32xf32>, vector<32x128xf32>, vector<256x128xf32> -> vector<256x128xf32>
    %c0_60 = arith.constant 0 : index
    %c0_61 = arith.constant 0 : index
    %69 = vector.load %arg4[%c0_60, %c0_61] : memref<256x128xf32, #tpu.memory_space<vmem>>, vector<256x128xf32>
    %70 = arith.addf %69, %68 : vector<256x128xf32>
    %c0_62 = arith.constant 0 : index
    %c0_63 = arith.constant 0 : index
    %71 = vector.load %arg4[%c0_62, %c0_63] : memref<256x128xf32, #tpu.memory_space<vmem>>, vector<256x128xf32>
    tpu.vector_store %arg4[%c0_62, %c0_63], %70 {strides = array<i32>} : memref<256x128xf32, #tpu.memory_space<vmem>>, vector<256x128xf32>,
    %c0_64 = arith.constant 0 : index
    %c0_65 = arith.constant 0 : index
    %72 = vector.load %arg4[%c0_64, %c0_65] : memref<256x128xf32, #tpu.memory_space<vmem>>, vector<256x128xf32>
    %c0_66 = arith.constant 0 : index
    %c0_67 = arith.constant 0 : index
    %73 = vector.load %arg3[%c0_66, %c0_67] : memref<256x128xf32, #tpu.memory_space<vmem>>, vector<256x128xf32>
    tpu.vector_store %arg3[%c0_66, %c0_67], %72 {strides = array<i32>} : memref<256x128xf32, #tpu.memory_space<vmem>>, vector<256x128xf32>,
    return
  }
  func.func @transform_0(%arg0: i32) -> (i32, i32, i32, i32) {
    %c0_i32 = arith.constant 0 : i32
    %c0_i32_0 = arith.constant 0 : i32
    %c0_i32_1 = arith.constant 0 : i32
    %c0_i32_2 = arith.constant 0 : i32
    return %arg0, %c0_i32, %c0_i32_0, %c0_i32_1 : i32, i32, i32, i32
  }
  func.func @transform_1(%arg0: i32) -> (i32, i32, i32) {
    %c0_i32 = arith.constant 0 : i32
    %c0_i32_0 = arith.constant 0 : i32
    %c0_i32_1 = arith.constant 0 : i32
    %c0_i32_2 = arith.constant 0 : i32
    return %c0_i32, %c0_i32_0, %c0_i32_1 : i32, i32, i32
  }
  func.func @transform_2(%arg0: i32) -> (i32, i32) {
    %c0_i32 = arith.constant 0 : i32
    %c0_i32_0 = arith.constant 0 : i32
    return %arg0, %c0_i32 : i32, i32
  }
}

module attributes {stable_mosaic.version = 11 : i64} {
  func.func @_pool_bn_gelu_kernel(%arg0: i32, %arg1: memref<1x8x2x8x256xf32, #tpu.memory_space<vmem>>, %arg2: memref<1x128xf32, #tpu.memory_space<vmem>>, %arg3: memref<1x128xf32, #tpu.memory_space<vmem>>, %arg4: memref<64x128xf32, #tpu.memory_space<vmem>>) attributes {dimension_semantics = [#tpu.dimension_semantics<parallel>], iteration_bounds = array<i64: 2>, scalar_prefetch = 0 : i64, scratch_operands = 0 : i64, tpu.core_type = #tpu.core_type<tc>, window_params = [{transform_indices = @transform_0, window_bounds = array<i64: 1, 8, 2, 8, 256>}, {pipeline_mode = #tpu.pipeline_mode<synchronous>, transform_indices = @transform_1, window_bounds = array<i64: 1, 128>}, {pipeline_mode = #tpu.pipeline_mode<synchronous>, transform_indices = @transform_2, window_bounds = array<i64: 1, 128>}, {transform_indices = @transform_3, window_bounds = array<i64: 64, 128>}]} {
    %c0 = arith.constant 0 : index
    %c0_0 = arith.constant 0 : index
    %c0_1 = arith.constant 0 : index
    %c0_2 = arith.constant 0 : index
    %c0_3 = arith.constant 0 : index
    %0 = vector.load %arg1[%c0, %c0_0, %c0_1, %c0_2, %c0_3] : memref<1x8x2x8x256xf32, #tpu.memory_space<vmem>>, vector<1x8x1x8x256xf32>
    %1 = vector.shape_cast %0 : vector<1x8x1x8x256xf32> to vector<8x8x256xf32>
    %c0_4 = arith.constant 0 : index
    %c0_5 = arith.constant 0 : index
    %c1 = arith.constant 1 : index
    %c0_6 = arith.constant 0 : index
    %c0_7 = arith.constant 0 : index
    %2 = vector.load %arg1[%c0_4, %c0_5, %c1, %c0_6, %c0_7] : memref<1x8x2x8x256xf32, #tpu.memory_space<vmem>>, vector<1x8x1x8x256xf32>
    %3 = vector.shape_cast %2 : vector<1x8x1x8x256xf32> to vector<8x8x256xf32>
    %4 = arith.maximumf %1, %3 : vector<8x8x256xf32>
    %5 = vector.extract_strided_slice %4 {offsets = [0, 0, 0], sizes = [8, 8, 128], strides = [1, 1, 1]} : vector<8x8x256xf32> to vector<8x8x128xf32>
    %6 = vector.extract_strided_slice %4 {offsets = [0, 0, 128], sizes = [8, 8, 128], strides = [1, 1, 1]} : vector<8x8x256xf32> to vector<8x8x128xf32>
    %7 = arith.maximumf %5, %6 : vector<8x8x128xf32>
    %8 = vector.shape_cast %7 : vector<8x8x128xf32> to vector<64x128xf32>
    %c0_8 = arith.constant 0 : index
    %c0_9 = arith.constant 0 : index
    %9 = vector.load %arg2[%c0_8, %c0_9] : memref<1x128xf32, #tpu.memory_space<vmem>>, vector<1x128xf32>
    %10 = vector.broadcast %9 : vector<1x128xf32> to vector<64x128xf32>
    %11 = arith.mulf %8, %10 : vector<64x128xf32>
    %c0_10 = arith.constant 0 : index
    %c0_11 = arith.constant 0 : index
    %12 = vector.load %arg3[%c0_10, %c0_11] : memref<1x128xf32, #tpu.memory_space<vmem>>, vector<1x128xf32>
    %13 = vector.broadcast %12 : vector<1x128xf32> to vector<64x128xf32>
    %14 = arith.addf %11, %13 : vector<64x128xf32>
    %cst = arith.constant 5.000000e-01 : f32
    %15 = vector.broadcast %cst : f32 to vector<64x128xf32>
    %16 = arith.mulf %15, %14 : vector<64x128xf32>
    %cst_12 = arith.constant 0.707106769 : f32
    %17 = vector.broadcast %cst_12 : f32 to vector<64x128xf32>
    %18 = arith.mulf %14, %17 : vector<64x128xf32>
    %cst_13 = arith.constant 0.000000e+00 : f32
    %19 = vector.broadcast %cst_13 : f32 to vector<64x128xf32>
    %20 = arith.cmpf oge, %18, %19 : vector<64x128xf32>
    %cst_14 = arith.constant 0.000000e+00 : f32
    %21 = vector.broadcast %cst_14 : f32 to vector<64x128xf32>
    %22 = arith.subf %21, %18 : vector<64x128xf32>
    %23 = arith.select %20, %18, %22 : vector<64x128xi1>, vector<64x128xf32>
    %cst_15 = arith.constant 0.327591091 : f32
    %24 = vector.broadcast %cst_15 : f32 to vector<64x128xf32>
    %25 = arith.mulf %24, %23 : vector<64x128xf32>
    %cst_16 = arith.constant 1.000000e+00 : f32
    %26 = vector.broadcast %cst_16 : f32 to vector<64x128xf32>
    %27 = arith.addf %26, %25 : vector<64x128xf32>
    %cst_17 = arith.constant 1.000000e+00 : f32
    %28 = vector.broadcast %cst_17 : f32 to vector<64x128xf32>
    %29 = arith.divf %28, %27 : vector<64x128xf32>
    %cst_18 = arith.constant 1.06140542 : f32
    %30 = vector.broadcast %cst_18 : f32 to vector<64x128xf32>
    %31 = arith.mulf %30, %29 : vector<64x128xf32>
    %cst_19 = arith.constant -1.45315206 : f32
    %32 = vector.broadcast %cst_19 : f32 to vector<64x128xf32>
    %33 = arith.addf %31, %32 : vector<64x128xf32>
    %34 = arith.mulf %33, %29 : vector<64x128xf32>
    %cst_20 = arith.constant 1.42141378 : f32
    %35 = vector.broadcast %cst_20 : f32 to vector<64x128xf32>
    %36 = arith.addf %34, %35 : vector<64x128xf32>
    %37 = arith.mulf %36, %29 : vector<64x128xf32>
    %cst_21 = arith.constant -0.284496725 : f32
    %38 = vector.broadcast %cst_21 : f32 to vector<64x128xf32>
    %39 = arith.addf %37, %38 : vector<64x128xf32>
    %40 = arith.mulf %39, %29 : vector<64x128xf32>
    %cst_22 = arith.constant 0.254829586 : f32
    %41 = vector.broadcast %cst_22 : f32 to vector<64x128xf32>
    %42 = arith.addf %40, %41 : vector<64x128xf32>
    %43 = arith.mulf %42, %29 : vector<64x128xf32>
    %44 = arith.mulf %23, %23 : vector<64x128xf32>
    %cst_23 = arith.constant 0.000000e+00 : f32
    %45 = vector.broadcast %cst_23 : f32 to vector<64x128xf32>
    %46 = arith.subf %45, %44 : vector<64x128xf32>
    %47 = math.exp %46 : vector<64x128xf32>
    %48 = arith.mulf %43, %47 : vector<64x128xf32>
    %cst_24 = arith.constant 1.000000e+00 : f32
    %49 = vector.broadcast %cst_24 : f32 to vector<64x128xf32>
    %50 = arith.subf %49, %48 : vector<64x128xf32>
    %cst_25 = arith.constant 0.000000e+00 : f32
    %51 = vector.broadcast %cst_25 : f32 to vector<64x128xf32>
    %52 = arith.cmpf oge, %18, %51 : vector<64x128xf32>
    %cst_26 = arith.constant 0.000000e+00 : f32
    %53 = vector.broadcast %cst_26 : f32 to vector<64x128xf32>
    %54 = arith.subf %53, %50 : vector<64x128xf32>
    %55 = arith.select %52, %50, %54 : vector<64x128xi1>, vector<64x128xf32>
    %cst_27 = arith.constant 1.000000e+00 : f32
    %56 = vector.broadcast %cst_27 : f32 to vector<64x128xf32>
    %57 = arith.addf %56, %55 : vector<64x128xf32>
    %58 = arith.mulf %16, %57 : vector<64x128xf32>
    %c0_28 = arith.constant 0 : index
    %c0_29 = arith.constant 0 : index
    %59 = vector.load %arg4[%c0_28, %c0_29] : memref<64x128xf32, #tpu.memory_space<vmem>>, vector<64x128xf32>
    tpu.vector_store %arg4[%c0_28, %c0_29], %58 {strides = array<i32>} : memref<64x128xf32, #tpu.memory_space<vmem>>, vector<64x128xf32>,
    return
  }
  func.func @transform_0(%arg0: i32) -> (i32, i32, i32, i32, i32) {
    %c0_i32 = arith.constant 0 : i32
    %c0_i32_0 = arith.constant 0 : i32
    %c0_i32_1 = arith.constant 0 : i32
    %c0_i32_2 = arith.constant 0 : i32
    %c0_i32_3 = arith.constant 0 : i32
    return %arg0, %c0_i32, %c0_i32_0, %c0_i32_1, %c0_i32_2 : i32, i32, i32, i32, i32
  }
  func.func @transform_1(%arg0: i32) -> (i32, i32) {
    %c0_i32 = arith.constant 0 : i32
    %c0_i32_0 = arith.constant 0 : i32
    %c0_i32_1 = arith.constant 0 : i32
    return %c0_i32, %c0_i32_0 : i32, i32
  }
  func.func @transform_2(%arg0: i32) -> (i32, i32) {
    %c0_i32 = arith.constant 0 : i32
    %c0_i32_0 = arith.constant 0 : i32
    %c0_i32_1 = arith.constant 0 : i32
    return %c0_i32, %c0_i32_0 : i32, i32
  }
  func.func @transform_3(%arg0: i32) -> (i32, i32) {
    %c0_i32 = arith.constant 0 : i32
    %c0_i32_0 = arith.constant 0 : i32
    return %arg0, %c0_i32 : i32, i32
  }
}

module attributes {stable_mosaic.version = 11 : i64} {
  func.func @kernel(%arg0: i32, %arg1: memref<1x10x10x128xf32, #tpu.memory_space<vmem>>, %arg2: memref<9x128x128xf32, #tpu.memory_space<vmem>>, %arg3: memref<1x128xf32, #tpu.memory_space<vmem>>, %arg4: memref<1x128xf32, #tpu.memory_space<vmem>>, %arg5: memref<64x128xf32, #tpu.memory_space<vmem>>, %arg6: memref<64x128xf32, #tpu.memory_space<vmem>>) attributes {dimension_semantics = [#tpu.dimension_semantics<parallel>], iteration_bounds = array<i64: 2>, scalar_prefetch = 0 : i64, scratch_operands = 1 : i64, tpu.core_type = #tpu.core_type<tc>, window_params = [{transform_indices = @transform_0, window_bounds = array<i64: 1, 10, 10, 128>}, {pipeline_mode = #tpu.pipeline_mode<synchronous>, transform_indices = @transform_1, window_bounds = array<i64: 9, 128, 128>}, {pipeline_mode = #tpu.pipeline_mode<synchronous>, transform_indices = @transform_2, window_bounds = array<i64: 1, 128>}, {pipeline_mode = #tpu.pipeline_mode<synchronous>, transform_indices = @transform_3, window_bounds = array<i64: 1, 128>}, {transform_indices = @transform_4, window_bounds = array<i64: 64, 128>}]} {
    %c0 = arith.constant 0 : index
    %c0_0 = arith.constant 0 : index
    %c0_1 = arith.constant 0 : index
    %c0_2 = arith.constant 0 : index
    %0 = vector.load %arg1[%c0, %c0_0, %c0_1, %c0_2] : memref<1x10x10x128xf32, #tpu.memory_space<vmem>>, vector<1x10x10x128xf32>
    %1 = vector.shape_cast %0 : vector<1x10x10x128xf32> to vector<10x10x128xf32>
    %2 = vector.extract_strided_slice %1 {offsets = [0, 0, 0], sizes = [8, 8, 128], strides = [1, 1, 1]} : vector<10x10x128xf32> to vector<8x8x128xf32>
    %3 = vector.shape_cast %2 : vector<8x8x128xf32> to vector<64x128xf32>
    %c0_3 = arith.constant 0 : index
    %c0_4 = arith.constant 0 : index
    %c0_5 = arith.constant 0 : index
    %4 = vector.load %arg2[%c0_3, %c0_4, %c0_5] : memref<9x128x128xf32, #tpu.memory_space<vmem>>, vector<1x128x128xf32>
    %5 = vector.shape_cast %4 : vector<1x128x128xf32> to vector<128x128xf32>
    %cst = arith.constant dense<0.000000e+00> : vector<64x128xf32>
    %6 = tpu.matmul %3, %5, %cst {dimension_numbers = #tpu.dot_dimension_numbers<[1], [0], [0], [1], [0, 0, 1, 1], [], []>} : vector<64x128xf32>, vector<128x128xf32>, vector<64x128xf32> -> vector<64x128xf32>
    %c0_6 = arith.constant 0 : index
    %c0_7 = arith.constant 0 : index
    %7 = vector.load %arg6[%c0_6, %c0_7] : memref<64x128xf32, #tpu.memory_space<vmem>>, vector<64x128xf32>
    tpu.vector_store %arg6[%c0_6, %c0_7], %6 {strides = array<i32>} : memref<64x128xf32, #tpu.memory_space<vmem>>, vector<64x128xf32>,
    %8 = vector.extract_strided_slice %1 {offsets = [0, 1, 0], sizes = [8, 8, 128], strides = [1, 1, 1]} : vector<10x10x128xf32> to vector<8x8x128xf32>
    %9 = vector.shape_cast %8 : vector<8x8x128xf32> to vector<64x128xf32>
    %c1 = arith.constant 1 : index
    %c0_8 = arith.constant 0 : index
    %c0_9 = arith.constant 0 : index
    %10 = vector.load %arg2[%c1, %c0_8, %c0_9] : memref<9x128x128xf32, #tpu.memory_space<vmem>>, vector<1x128x128xf32>
    %11 = vector.shape_cast %10 : vector<1x128x128xf32> to vector<128x128xf32>
    %cst_10 = arith.constant dense<0.000000e+00> : vector<64x128xf32>
    %12 = tpu.matmul %9, %11, %cst_10 {dimension_numbers = #tpu.dot_dimension_numbers<[1], [0], [0], [1], [0, 0, 1, 1], [], []>} : vector<64x128xf32>, vector<128x128xf32>, vector<64x128xf32> -> vector<64x128xf32>
    %c0_11 = arith.constant 0 : index
    %c0_12 = arith.constant 0 : index
    %13 = vector.load %arg6[%c0_11, %c0_12] : memref<64x128xf32, #tpu.memory_space<vmem>>, vector<64x128xf32>
    %14 = arith.addf %13, %12 : vector<64x128xf32>
    %c0_13 = arith.constant 0 : index
    %c0_14 = arith.constant 0 : index
    %15 = vector.load %arg6[%c0_13, %c0_14] : memref<64x128xf32, #tpu.memory_space<vmem>>, vector<64x128xf32>
    tpu.vector_store %arg6[%c0_13, %c0_14], %14 {strides = array<i32>} : memref<64x128xf32, #tpu.memory_space<vmem>>, vector<64x128xf32>,
    %16 = vector.extract_strided_slice %1 {offsets = [0, 2, 0], sizes = [8, 8, 128], strides = [1, 1, 1]} : vector<10x10x128xf32> to vector<8x8x128xf32>
    %17 = vector.shape_cast %16 : vector<8x8x128xf32> to vector<64x128xf32>
    %c2 = arith.constant 2 : index
    %c0_15 = arith.constant 0 : index
    %c0_16 = arith.constant 0 : index
    %18 = vector.load %arg2[%c2, %c0_15, %c0_16] : memref<9x128x128xf32, #tpu.memory_space<vmem>>, vector<1x128x128xf32>
    %19 = vector.shape_cast %18 : vector<1x128x128xf32> to vector<128x128xf32>
    %cst_17 = arith.constant dense<0.000000e+00> : vector<64x128xf32>
    %20 = tpu.matmul %17, %19, %cst_17 {dimension_numbers = #tpu.dot_dimension_numbers<[1], [0], [0], [1], [0, 0, 1, 1], [], []>} : vector<64x128xf32>, vector<128x128xf32>, vector<64x128xf32> -> vector<64x128xf32>
    %c0_18 = arith.constant 0 : index
    %c0_19 = arith.constant 0 : index
    %21 = vector.load %arg6[%c0_18, %c0_19] : memref<64x128xf32, #tpu.memory_space<vmem>>, vector<64x128xf32>
    %22 = arith.addf %21, %20 : vector<64x128xf32>
    %c0_20 = arith.constant 0 : index
    %c0_21 = arith.constant 0 : index
    %23 = vector.load %arg6[%c0_20, %c0_21] : memref<64x128xf32, #tpu.memory_space<vmem>>, vector<64x128xf32>
    tpu.vector_store %arg6[%c0_20, %c0_21], %22 {strides = array<i32>} : memref<64x128xf32, #tpu.memory_space<vmem>>, vector<64x128xf32>,
    %24 = vector.extract_strided_slice %1 {offsets = [1, 0, 0], sizes = [8, 8, 128], strides = [1, 1, 1]} : vector<10x10x128xf32> to vector<8x8x128xf32>
    %25 = vector.shape_cast %24 : vector<8x8x128xf32> to vector<64x128xf32>
    %c3 = arith.constant 3 : index
    %c0_22 = arith.constant 0 : index
    %c0_23 = arith.constant 0 : index
    %26 = vector.load %arg2[%c3, %c0_22, %c0_23] : memref<9x128x128xf32, #tpu.memory_space<vmem>>, vector<1x128x128xf32>
    %27 = vector.shape_cast %26 : vector<1x128x128xf32> to vector<128x128xf32>
    %cst_24 = arith.constant dense<0.000000e+00> : vector<64x128xf32>
    %28 = tpu.matmul %25, %27, %cst_24 {dimension_numbers = #tpu.dot_dimension_numbers<[1], [0], [0], [1], [0, 0, 1, 1], [], []>} : vector<64x128xf32>, vector<128x128xf32>, vector<64x128xf32> -> vector<64x128xf32>
    %c0_25 = arith.constant 0 : index
    %c0_26 = arith.constant 0 : index
    %29 = vector.load %arg6[%c0_25, %c0_26] : memref<64x128xf32, #tpu.memory_space<vmem>>, vector<64x128xf32>
    %30 = arith.addf %29, %28 : vector<64x128xf32>
    %c0_27 = arith.constant 0 : index
    %c0_28 = arith.constant 0 : index
    %31 = vector.load %arg6[%c0_27, %c0_28] : memref<64x128xf32, #tpu.memory_space<vmem>>, vector<64x128xf32>
    tpu.vector_store %arg6[%c0_27, %c0_28], %30 {strides = array<i32>} : memref<64x128xf32, #tpu.memory_space<vmem>>, vector<64x128xf32>,
    %32 = vector.extract_strided_slice %1 {offsets = [1, 1, 0], sizes = [8, 8, 128], strides = [1, 1, 1]} : vector<10x10x128xf32> to vector<8x8x128xf32>
    %33 = vector.shape_cast %32 : vector<8x8x128xf32> to vector<64x128xf32>
    %c4 = arith.constant 4 : index
    %c0_29 = arith.constant 0 : index
    %c0_30 = arith.constant 0 : index
    %34 = vector.load %arg2[%c4, %c0_29, %c0_30] : memref<9x128x128xf32, #tpu.memory_space<vmem>>, vector<1x128x128xf32>
    %35 = vector.shape_cast %34 : vector<1x128x128xf32> to vector<128x128xf32>
    %cst_31 = arith.constant dense<0.000000e+00> : vector<64x128xf32>
    %36 = tpu.matmul %33, %35, %cst_31 {dimension_numbers = #tpu.dot_dimension_numbers<[1], [0], [0], [1], [0, 0, 1, 1], [], []>} : vector<64x128xf32>, vector<128x128xf32>, vector<64x128xf32> -> vector<64x128xf32>
    %c0_32 = arith.constant 0 : index
    %c0_33 = arith.constant 0 : index
    %37 = vector.load %arg6[%c0_32, %c0_33] : memref<64x128xf32, #tpu.memory_space<vmem>>, vector<64x128xf32>
    %38 = arith.addf %37, %36 : vector<64x128xf32>
    %c0_34 = arith.constant 0 : index
    %c0_35 = arith.constant 0 : index
    %39 = vector.load %arg6[%c0_34, %c0_35] : memref<64x128xf32, #tpu.memory_space<vmem>>, vector<64x128xf32>
    tpu.vector_store %arg6[%c0_34, %c0_35], %38 {strides = array<i32>} : memref<64x128xf32, #tpu.memory_space<vmem>>, vector<64x128xf32>,
    %40 = vector.extract_strided_slice %1 {offsets = [1, 2, 0], sizes = [8, 8, 128], strides = [1, 1, 1]} : vector<10x10x128xf32> to vector<8x8x128xf32>
    %41 = vector.shape_cast %40 : vector<8x8x128xf32> to vector<64x128xf32>
    %c5 = arith.constant 5 : index
    %c0_36 = arith.constant 0 : index
    %c0_37 = arith.constant 0 : index
    %42 = vector.load %arg2[%c5, %c0_36, %c0_37] : memref<9x128x128xf32, #tpu.memory_space<vmem>>, vector<1x128x128xf32>
    %43 = vector.shape_cast %42 : vector<1x128x128xf32> to vector<128x128xf32>
    %cst_38 = arith.constant dense<0.000000e+00> : vector<64x128xf32>
    %44 = tpu.matmul %41, %43, %cst_38 {dimension_numbers = #tpu.dot_dimension_numbers<[1], [0], [0], [1], [0, 0, 1, 1], [], []>} : vector<64x128xf32>, vector<128x128xf32>, vector<64x128xf32> -> vector<64x128xf32>
    %c0_39 = arith.constant 0 : index
    %c0_40 = arith.constant 0 : index
    %45 = vector.load %arg6[%c0_39, %c0_40] : memref<64x128xf32, #tpu.memory_space<vmem>>, vector<64x128xf32>
    %46 = arith.addf %45, %44 : vector<64x128xf32>
    %c0_41 = arith.constant 0 : index
    %c0_42 = arith.constant 0 : index
    %47 = vector.load %arg6[%c0_41, %c0_42] : memref<64x128xf32, #tpu.memory_space<vmem>>, vector<64x128xf32>
    tpu.vector_store %arg6[%c0_41, %c0_42], %46 {strides = array<i32>} : memref<64x128xf32, #tpu.memory_space<vmem>>, vector<64x128xf32>,
    %48 = vector.extract_strided_slice %1 {offsets = [2, 0, 0], sizes = [8, 8, 128], strides = [1, 1, 1]} : vector<10x10x128xf32> to vector<8x8x128xf32>
    %49 = vector.shape_cast %48 : vector<8x8x128xf32> to vector<64x128xf32>
    %c6 = arith.constant 6 : index
    %c0_43 = arith.constant 0 : index
    %c0_44 = arith.constant 0 : index
    %50 = vector.load %arg2[%c6, %c0_43, %c0_44] : memref<9x128x128xf32, #tpu.memory_space<vmem>>, vector<1x128x128xf32>
    %51 = vector.shape_cast %50 : vector<1x128x128xf32> to vector<128x128xf32>
    %cst_45 = arith.constant dense<0.000000e+00> : vector<64x128xf32>
    %52 = tpu.matmul %49, %51, %cst_45 {dimension_numbers = #tpu.dot_dimension_numbers<[1], [0], [0], [1], [0, 0, 1, 1], [], []>} : vector<64x128xf32>, vector<128x128xf32>, vector<64x128xf32> -> vector<64x128xf32>
    %c0_46 = arith.constant 0 : index
    %c0_47 = arith.constant 0 : index
    %53 = vector.load %arg6[%c0_46, %c0_47] : memref<64x128xf32, #tpu.memory_space<vmem>>, vector<64x128xf32>
    %54 = arith.addf %53, %52 : vector<64x128xf32>
    %c0_48 = arith.constant 0 : index
    %c0_49 = arith.constant 0 : index
    %55 = vector.load %arg6[%c0_48, %c0_49] : memref<64x128xf32, #tpu.memory_space<vmem>>, vector<64x128xf32>
    tpu.vector_store %arg6[%c0_48, %c0_49], %54 {strides = array<i32>} : memref<64x128xf32, #tpu.memory_space<vmem>>, vector<64x128xf32>,
    %56 = vector.extract_strided_slice %1 {offsets = [2, 1, 0], sizes = [8, 8, 128], strides = [1, 1, 1]} : vector<10x10x128xf32> to vector<8x8x128xf32>
    %57 = vector.shape_cast %56 : vector<8x8x128xf32> to vector<64x128xf32>
    %c7 = arith.constant 7 : index
    %c0_50 = arith.constant 0 : index
    %c0_51 = arith.constant 0 : index
    %58 = vector.load %arg2[%c7, %c0_50, %c0_51] : memref<9x128x128xf32, #tpu.memory_space<vmem>>, vector<1x128x128xf32>
    %59 = vector.shape_cast %58 : vector<1x128x128xf32> to vector<128x128xf32>
    %cst_52 = arith.constant dense<0.000000e+00> : vector<64x128xf32>
    %60 = tpu.matmul %57, %59, %cst_52 {dimension_numbers = #tpu.dot_dimension_numbers<[1], [0], [0], [1], [0, 0, 1, 1], [], []>} : vector<64x128xf32>, vector<128x128xf32>, vector<64x128xf32> -> vector<64x128xf32>
    %c0_53 = arith.constant 0 : index
    %c0_54 = arith.constant 0 : index
    %61 = vector.load %arg6[%c0_53, %c0_54] : memref<64x128xf32, #tpu.memory_space<vmem>>, vector<64x128xf32>
    %62 = arith.addf %61, %60 : vector<64x128xf32>
    %c0_55 = arith.constant 0 : index
    %c0_56 = arith.constant 0 : index
    %63 = vector.load %arg6[%c0_55, %c0_56] : memref<64x128xf32, #tpu.memory_space<vmem>>, vector<64x128xf32>
    tpu.vector_store %arg6[%c0_55, %c0_56], %62 {strides = array<i32>} : memref<64x128xf32, #tpu.memory_space<vmem>>, vector<64x128xf32>,
    %64 = vector.extract_strided_slice %1 {offsets = [2, 2, 0], sizes = [8, 8, 128], strides = [1, 1, 1]} : vector<10x10x128xf32> to vector<8x8x128xf32>
    %65 = vector.shape_cast %64 : vector<8x8x128xf32> to vector<64x128xf32>
    %c8 = arith.constant 8 : index
    %c0_57 = arith.constant 0 : index
    %c0_58 = arith.constant 0 : index
    %66 = vector.load %arg2[%c8, %c0_57, %c0_58] : memref<9x128x128xf32, #tpu.memory_space<vmem>>, vector<1x128x128xf32>
    %67 = vector.shape_cast %66 : vector<1x128x128xf32> to vector<128x128xf32>
    %cst_59 = arith.constant dense<0.000000e+00> : vector<64x128xf32>
    %68 = tpu.matmul %65, %67, %cst_59 {dimension_numbers = #tpu.dot_dimension_numbers<[1], [0], [0], [1], [0, 0, 1, 1], [], []>} : vector<64x128xf32>, vector<128x128xf32>, vector<64x128xf32> -> vector<64x128xf32>
    %c0_60 = arith.constant 0 : index
    %c0_61 = arith.constant 0 : index
    %69 = vector.load %arg6[%c0_60, %c0_61] : memref<64x128xf32, #tpu.memory_space<vmem>>, vector<64x128xf32>
    %70 = arith.addf %69, %68 : vector<64x128xf32>
    %c0_62 = arith.constant 0 : index
    %c0_63 = arith.constant 0 : index
    %71 = vector.load %arg6[%c0_62, %c0_63] : memref<64x128xf32, #tpu.memory_space<vmem>>, vector<64x128xf32>
    tpu.vector_store %arg6[%c0_62, %c0_63], %70 {strides = array<i32>} : memref<64x128xf32, #tpu.memory_space<vmem>>, vector<64x128xf32>,
    %c0_64 = arith.constant 0 : index
    %c0_65 = arith.constant 0 : index
    %72 = vector.load %arg6[%c0_64, %c0_65] : memref<64x128xf32, #tpu.memory_space<vmem>>, vector<64x128xf32>
    %c0_66 = arith.constant 0 : index
    %c0_67 = arith.constant 0 : index
    %73 = vector.load %arg3[%c0_66, %c0_67] : memref<1x128xf32, #tpu.memory_space<vmem>>, vector<1x128xf32>
    %74 = vector.broadcast %73 : vector<1x128xf32> to vector<64x128xf32>
    %75 = arith.mulf %72, %74 : vector<64x128xf32>
    %c0_68 = arith.constant 0 : index
    %c0_69 = arith.constant 0 : index
    %76 = vector.load %arg4[%c0_68, %c0_69] : memref<1x128xf32, #tpu.memory_space<vmem>>, vector<1x128xf32>
    %77 = vector.broadcast %76 : vector<1x128xf32> to vector<64x128xf32>
    %78 = arith.addf %75, %77 : vector<64x128xf32>
    %cst_70 = arith.constant 5.000000e-01 : f32
    %79 = vector.broadcast %cst_70 : f32 to vector<64x128xf32>
    %80 = arith.mulf %79, %78 : vector<64x128xf32>
    %cst_71 = arith.constant 0.707106769 : f32
    %81 = vector.broadcast %cst_71 : f32 to vector<64x128xf32>
    %82 = arith.mulf %78, %81 : vector<64x128xf32>
    %cst_72 = arith.constant 0.000000e+00 : f32
    %83 = vector.broadcast %cst_72 : f32 to vector<64x128xf32>
    %84 = arith.cmpf oge, %82, %83 : vector<64x128xf32>
    %cst_73 = arith.constant 0.000000e+00 : f32
    %85 = vector.broadcast %cst_73 : f32 to vector<64x128xf32>
    %86 = arith.subf %85, %82 : vector<64x128xf32>
    %87 = arith.select %84, %82, %86 : vector<64x128xi1>, vector<64x128xf32>
    %cst_74 = arith.constant 0.327591091 : f32
    %88 = vector.broadcast %cst_74 : f32 to vector<64x128xf32>
    %89 = arith.mulf %88, %87 : vector<64x128xf32>
    %cst_75 = arith.constant 1.000000e+00 : f32
    %90 = vector.broadcast %cst_75 : f32 to vector<64x128xf32>
    %91 = arith.addf %90, %89 : vector<64x128xf32>
    %cst_76 = arith.constant 1.000000e+00 : f32
    %92 = vector.broadcast %cst_76 : f32 to vector<64x128xf32>
    %93 = arith.divf %92, %91 : vector<64x128xf32>
    %cst_77 = arith.constant 1.06140542 : f32
    %94 = vector.broadcast %cst_77 : f32 to vector<64x128xf32>
    %95 = arith.mulf %94, %93 : vector<64x128xf32>
    %cst_78 = arith.constant -1.45315206 : f32
    %96 = vector.broadcast %cst_78 : f32 to vector<64x128xf32>
    %97 = arith.addf %95, %96 : vector<64x128xf32>
    %98 = arith.mulf %97, %93 : vector<64x128xf32>
    %cst_79 = arith.constant 1.42141378 : f32
    %99 = vector.broadcast %cst_79 : f32 to vector<64x128xf32>
    %100 = arith.addf %98, %99 : vector<64x128xf32>
    %101 = arith.mulf %100, %93 : vector<64x128xf32>
    %cst_80 = arith.constant -0.284496725 : f32
    %102 = vector.broadcast %cst_80 : f32 to vector<64x128xf32>
    %103 = arith.addf %101, %102 : vector<64x128xf32>
    %104 = arith.mulf %103, %93 : vector<64x128xf32>
    %cst_81 = arith.constant 0.254829586 : f32
    %105 = vector.broadcast %cst_81 : f32 to vector<64x128xf32>
    %106 = arith.addf %104, %105 : vector<64x128xf32>
    %107 = arith.mulf %106, %93 : vector<64x128xf32>
    %108 = arith.mulf %87, %87 : vector<64x128xf32>
    %cst_82 = arith.constant 0.000000e+00 : f32
    %109 = vector.broadcast %cst_82 : f32 to vector<64x128xf32>
    %110 = arith.subf %109, %108 : vector<64x128xf32>
    %111 = math.exp %110 : vector<64x128xf32>
    %112 = arith.mulf %107, %111 : vector<64x128xf32>
    %cst_83 = arith.constant 1.000000e+00 : f32
    %113 = vector.broadcast %cst_83 : f32 to vector<64x128xf32>
    %114 = arith.subf %113, %112 : vector<64x128xf32>
    %cst_84 = arith.constant 0.000000e+00 : f32
    %115 = vector.broadcast %cst_84 : f32 to vector<64x128xf32>
    %116 = arith.cmpf oge, %82, %115 : vector<64x128xf32>
    %cst_85 = arith.constant 0.000000e+00 : f32
    %117 = vector.broadcast %cst_85 : f32 to vector<64x128xf32>
    %118 = arith.subf %117, %114 : vector<64x128xf32>
    %119 = arith.select %116, %114, %118 : vector<64x128xi1>, vector<64x128xf32>
    %cst_86 = arith.constant 1.000000e+00 : f32
    %120 = vector.broadcast %cst_86 : f32 to vector<64x128xf32>
    %121 = arith.addf %120, %119 : vector<64x128xf32>
    %122 = arith.mulf %80, %121 : vector<64x128xf32>
    %c0_87 = arith.constant 0 : index
    %c0_88 = arith.constant 0 : index
    %123 = vector.load %arg5[%c0_87, %c0_88] : memref<64x128xf32, #tpu.memory_space<vmem>>, vector<64x128xf32>
    tpu.vector_store %arg5[%c0_87, %c0_88], %122 {strides = array<i32>} : memref<64x128xf32, #tpu.memory_space<vmem>>, vector<64x128xf32>,
    return
  }
  func.func @transform_0(%arg0: i32) -> (i32, i32, i32, i32) {
    %c0_i32 = arith.constant 0 : i32
    %c0_i32_0 = arith.constant 0 : i32
    %c0_i32_1 = arith.constant 0 : i32
    %c0_i32_2 = arith.constant 0 : i32
    return %arg0, %c0_i32, %c0_i32_0, %c0_i32_1 : i32, i32, i32, i32
  }
  func.func @transform_1(%arg0: i32) -> (i32, i32, i32) {
    %c0_i32 = arith.constant 0 : i32
    %c0_i32_0 = arith.constant 0 : i32
    %c0_i32_1 = arith.constant 0 : i32
    %c0_i32_2 = arith.constant 0 : i32
    return %c0_i32, %c0_i32_0, %c0_i32_1 : i32, i32, i32
  }
  func.func @transform_2(%arg0: i32) -> (i32, i32) {
    %c0_i32 = arith.constant 0 : i32
    %c0_i32_0 = arith.constant 0 : i32
    %c0_i32_1 = arith.constant 0 : i32
    return %c0_i32, %c0_i32_0 : i32, i32
  }
  func.func @transform_3(%arg0: i32) -> (i32, i32) {
    %c0_i32 = arith.constant 0 : i32
    %c0_i32_0 = arith.constant 0 : i32
    %c0_i32_1 = arith.constant 0 : i32
    return %c0_i32, %c0_i32_0 : i32, i32
  }
  func.func @transform_4(%arg0: i32) -> (i32, i32) {
    %c0_i32 = arith.constant 0 : i32
    %c0_i32_0 = arith.constant 0 : i32
    return %arg0, %c0_i32 : i32, i32
  }
}

module attributes {stable_mosaic.version = 11 : i64} {
  func.func @kernel(%arg0: i32, %arg1: memref<1x10x10x128xf32, #tpu.memory_space<vmem>>, %arg2: memref<9x128x128xf32, #tpu.memory_space<vmem>>, %arg3: memref<1x128xf32, #tpu.memory_space<vmem>>, %arg4: memref<1x128xf32, #tpu.memory_space<vmem>>, %arg5: memref<64x128xf32, #tpu.memory_space<vmem>>, %arg6: memref<64x128xf32, #tpu.memory_space<vmem>>, %arg7: memref<64x128xf32, #tpu.memory_space<vmem>>) attributes {dimension_semantics = [#tpu.dimension_semantics<parallel>], iteration_bounds = array<i64: 2>, scalar_prefetch = 0 : i64, scratch_operands = 1 : i64, tpu.core_type = #tpu.core_type<tc>, window_params = [{transform_indices = @transform_0, window_bounds = array<i64: 1, 10, 10, 128>}, {pipeline_mode = #tpu.pipeline_mode<synchronous>, transform_indices = @transform_1, window_bounds = array<i64: 9, 128, 128>}, {pipeline_mode = #tpu.pipeline_mode<synchronous>, transform_indices = @transform_2, window_bounds = array<i64: 1, 128>}, {pipeline_mode = #tpu.pipeline_mode<synchronous>, transform_indices = @transform_3, window_bounds = array<i64: 1, 128>}, {transform_indices = @transform_4, window_bounds = array<i64: 64, 128>}, {transform_indices = @transform_5, window_bounds = array<i64: 64, 128>}]} {
    %c0 = arith.constant 0 : index
    %c0_0 = arith.constant 0 : index
    %c0_1 = arith.constant 0 : index
    %c0_2 = arith.constant 0 : index
    %0 = vector.load %arg1[%c0, %c0_0, %c0_1, %c0_2] : memref<1x10x10x128xf32, #tpu.memory_space<vmem>>, vector<1x10x10x128xf32>
    %1 = vector.shape_cast %0 : vector<1x10x10x128xf32> to vector<10x10x128xf32>
    %2 = vector.extract_strided_slice %1 {offsets = [0, 0, 0], sizes = [8, 8, 128], strides = [1, 1, 1]} : vector<10x10x128xf32> to vector<8x8x128xf32>
    %3 = vector.shape_cast %2 : vector<8x8x128xf32> to vector<64x128xf32>
    %c0_3 = arith.constant 0 : index
    %c0_4 = arith.constant 0 : index
    %c0_5 = arith.constant 0 : index
    %4 = vector.load %arg2[%c0_3, %c0_4, %c0_5] : memref<9x128x128xf32, #tpu.memory_space<vmem>>, vector<1x128x128xf32>
    %5 = vector.shape_cast %4 : vector<1x128x128xf32> to vector<128x128xf32>
    %cst = arith.constant dense<0.000000e+00> : vector<64x128xf32>
    %6 = tpu.matmul %3, %5, %cst {dimension_numbers = #tpu.dot_dimension_numbers<[1], [0], [0], [1], [0, 0, 1, 1], [], []>} : vector<64x128xf32>, vector<128x128xf32>, vector<64x128xf32> -> vector<64x128xf32>
    %c0_6 = arith.constant 0 : index
    %c0_7 = arith.constant 0 : index
    %7 = vector.load %arg7[%c0_6, %c0_7] : memref<64x128xf32, #tpu.memory_space<vmem>>, vector<64x128xf32>
    tpu.vector_store %arg7[%c0_6, %c0_7], %6 {strides = array<i32>} : memref<64x128xf32, #tpu.memory_space<vmem>>, vector<64x128xf32>,
    %8 = vector.extract_strided_slice %1 {offsets = [0, 1, 0], sizes = [8, 8, 128], strides = [1, 1, 1]} : vector<10x10x128xf32> to vector<8x8x128xf32>
    %9 = vector.shape_cast %8 : vector<8x8x128xf32> to vector<64x128xf32>
    %c1 = arith.constant 1 : index
    %c0_8 = arith.constant 0 : index
    %c0_9 = arith.constant 0 : index
    %10 = vector.load %arg2[%c1, %c0_8, %c0_9] : memref<9x128x128xf32, #tpu.memory_space<vmem>>, vector<1x128x128xf32>
    %11 = vector.shape_cast %10 : vector<1x128x128xf32> to vector<128x128xf32>
    %cst_10 = arith.constant dense<0.000000e+00> : vector<64x128xf32>
    %12 = tpu.matmul %9, %11, %cst_10 {dimension_numbers = #tpu.dot_dimension_numbers<[1], [0], [0], [1], [0, 0, 1, 1], [], []>} : vector<64x128xf32>, vector<128x128xf32>, vector<64x128xf32> -> vector<64x128xf32>
    %c0_11 = arith.constant 0 : index
    %c0_12 = arith.constant 0 : index
    %13 = vector.load %arg7[%c0_11, %c0_12] : memref<64x128xf32, #tpu.memory_space<vmem>>, vector<64x128xf32>
    %14 = arith.addf %13, %12 : vector<64x128xf32>
    %c0_13 = arith.constant 0 : index
    %c0_14 = arith.constant 0 : index
    %15 = vector.load %arg7[%c0_13, %c0_14] : memref<64x128xf32, #tpu.memory_space<vmem>>, vector<64x128xf32>
    tpu.vector_store %arg7[%c0_13, %c0_14], %14 {strides = array<i32>} : memref<64x128xf32, #tpu.memory_space<vmem>>, vector<64x128xf32>,
    %16 = vector.extract_strided_slice %1 {offsets = [0, 2, 0], sizes = [8, 8, 128], strides = [1, 1, 1]} : vector<10x10x128xf32> to vector<8x8x128xf32>
    %17 = vector.shape_cast %16 : vector<8x8x128xf32> to vector<64x128xf32>
    %c2 = arith.constant 2 : index
    %c0_15 = arith.constant 0 : index
    %c0_16 = arith.constant 0 : index
    %18 = vector.load %arg2[%c2, %c0_15, %c0_16] : memref<9x128x128xf32, #tpu.memory_space<vmem>>, vector<1x128x128xf32>
    %19 = vector.shape_cast %18 : vector<1x128x128xf32> to vector<128x128xf32>
    %cst_17 = arith.constant dense<0.000000e+00> : vector<64x128xf32>
    %20 = tpu.matmul %17, %19, %cst_17 {dimension_numbers = #tpu.dot_dimension_numbers<[1], [0], [0], [1], [0, 0, 1, 1], [], []>} : vector<64x128xf32>, vector<128x128xf32>, vector<64x128xf32> -> vector<64x128xf32>
    %c0_18 = arith.constant 0 : index
    %c0_19 = arith.constant 0 : index
    %21 = vector.load %arg7[%c0_18, %c0_19] : memref<64x128xf32, #tpu.memory_space<vmem>>, vector<64x128xf32>
    %22 = arith.addf %21, %20 : vector<64x128xf32>
    %c0_20 = arith.constant 0 : index
    %c0_21 = arith.constant 0 : index
    %23 = vector.load %arg7[%c0_20, %c0_21] : memref<64x128xf32, #tpu.memory_space<vmem>>, vector<64x128xf32>
    tpu.vector_store %arg7[%c0_20, %c0_21], %22 {strides = array<i32>} : memref<64x128xf32, #tpu.memory_space<vmem>>, vector<64x128xf32>,
    %24 = vector.extract_strided_slice %1 {offsets = [1, 0, 0], sizes = [8, 8, 128], strides = [1, 1, 1]} : vector<10x10x128xf32> to vector<8x8x128xf32>
    %25 = vector.shape_cast %24 : vector<8x8x128xf32> to vector<64x128xf32>
    %c3 = arith.constant 3 : index
    %c0_22 = arith.constant 0 : index
    %c0_23 = arith.constant 0 : index
    %26 = vector.load %arg2[%c3, %c0_22, %c0_23] : memref<9x128x128xf32, #tpu.memory_space<vmem>>, vector<1x128x128xf32>
    %27 = vector.shape_cast %26 : vector<1x128x128xf32> to vector<128x128xf32>
    %cst_24 = arith.constant dense<0.000000e+00> : vector<64x128xf32>
    %28 = tpu.matmul %25, %27, %cst_24 {dimension_numbers = #tpu.dot_dimension_numbers<[1], [0], [0], [1], [0, 0, 1, 1], [], []>} : vector<64x128xf32>, vector<128x128xf32>, vector<64x128xf32> -> vector<64x128xf32>
    %c0_25 = arith.constant 0 : index
    %c0_26 = arith.constant 0 : index
    %29 = vector.load %arg7[%c0_25, %c0_26] : memref<64x128xf32, #tpu.memory_space<vmem>>, vector<64x128xf32>
    %30 = arith.addf %29, %28 : vector<64x128xf32>
    %c0_27 = arith.constant 0 : index
    %c0_28 = arith.constant 0 : index
    %31 = vector.load %arg7[%c0_27, %c0_28] : memref<64x128xf32, #tpu.memory_space<vmem>>, vector<64x128xf32>
    tpu.vector_store %arg7[%c0_27, %c0_28], %30 {strides = array<i32>} : memref<64x128xf32, #tpu.memory_space<vmem>>, vector<64x128xf32>,
    %32 = vector.extract_strided_slice %1 {offsets = [1, 1, 0], sizes = [8, 8, 128], strides = [1, 1, 1]} : vector<10x10x128xf32> to vector<8x8x128xf32>
    %33 = vector.shape_cast %32 : vector<8x8x128xf32> to vector<64x128xf32>
    %c4 = arith.constant 4 : index
    %c0_29 = arith.constant 0 : index
    %c0_30 = arith.constant 0 : index
    %34 = vector.load %arg2[%c4, %c0_29, %c0_30] : memref<9x128x128xf32, #tpu.memory_space<vmem>>, vector<1x128x128xf32>
    %35 = vector.shape_cast %34 : vector<1x128x128xf32> to vector<128x128xf32>
    %cst_31 = arith.constant dense<0.000000e+00> : vector<64x128xf32>
    %36 = tpu.matmul %33, %35, %cst_31 {dimension_numbers = #tpu.dot_dimension_numbers<[1], [0], [0], [1], [0, 0, 1, 1], [], []>} : vector<64x128xf32>, vector<128x128xf32>, vector<64x128xf32> -> vector<64x128xf32>
    %c0_32 = arith.constant 0 : index
    %c0_33 = arith.constant 0 : index
    %37 = vector.load %arg7[%c0_32, %c0_33] : memref<64x128xf32, #tpu.memory_space<vmem>>, vector<64x128xf32>
    %38 = arith.addf %37, %36 : vector<64x128xf32>
    %c0_34 = arith.constant 0 : index
    %c0_35 = arith.constant 0 : index
    %39 = vector.load %arg7[%c0_34, %c0_35] : memref<64x128xf32, #tpu.memory_space<vmem>>, vector<64x128xf32>
    tpu.vector_store %arg7[%c0_34, %c0_35], %38 {strides = array<i32>} : memref<64x128xf32, #tpu.memory_space<vmem>>, vector<64x128xf32>,
    %40 = vector.extract_strided_slice %1 {offsets = [1, 2, 0], sizes = [8, 8, 128], strides = [1, 1, 1]} : vector<10x10x128xf32> to vector<8x8x128xf32>
    %41 = vector.shape_cast %40 : vector<8x8x128xf32> to vector<64x128xf32>
    %c5 = arith.constant 5 : index
    %c0_36 = arith.constant 0 : index
    %c0_37 = arith.constant 0 : index
    %42 = vector.load %arg2[%c5, %c0_36, %c0_37] : memref<9x128x128xf32, #tpu.memory_space<vmem>>, vector<1x128x128xf32>
    %43 = vector.shape_cast %42 : vector<1x128x128xf32> to vector<128x128xf32>
    %cst_38 = arith.constant dense<0.000000e+00> : vector<64x128xf32>
    %44 = tpu.matmul %41, %43, %cst_38 {dimension_numbers = #tpu.dot_dimension_numbers<[1], [0], [0], [1], [0, 0, 1, 1], [], []>} : vector<64x128xf32>, vector<128x128xf32>, vector<64x128xf32> -> vector<64x128xf32>
    %c0_39 = arith.constant 0 : index
    %c0_40 = arith.constant 0 : index
    %45 = vector.load %arg7[%c0_39, %c0_40] : memref<64x128xf32, #tpu.memory_space<vmem>>, vector<64x128xf32>
    %46 = arith.addf %45, %44 : vector<64x128xf32>
    %c0_41 = arith.constant 0 : index
    %c0_42 = arith.constant 0 : index
    %47 = vector.load %arg7[%c0_41, %c0_42] : memref<64x128xf32, #tpu.memory_space<vmem>>, vector<64x128xf32>
    tpu.vector_store %arg7[%c0_41, %c0_42], %46 {strides = array<i32>} : memref<64x128xf32, #tpu.memory_space<vmem>>, vector<64x128xf32>,
    %48 = vector.extract_strided_slice %1 {offsets = [2, 0, 0], sizes = [8, 8, 128], strides = [1, 1, 1]} : vector<10x10x128xf32> to vector<8x8x128xf32>
    %49 = vector.shape_cast %48 : vector<8x8x128xf32> to vector<64x128xf32>
    %c6 = arith.constant 6 : index
    %c0_43 = arith.constant 0 : index
    %c0_44 = arith.constant 0 : index
    %50 = vector.load %arg2[%c6, %c0_43, %c0_44] : memref<9x128x128xf32, #tpu.memory_space<vmem>>, vector<1x128x128xf32>
    %51 = vector.shape_cast %50 : vector<1x128x128xf32> to vector<128x128xf32>
    %cst_45 = arith.constant dense<0.000000e+00> : vector<64x128xf32>
    %52 = tpu.matmul %49, %51, %cst_45 {dimension_numbers = #tpu.dot_dimension_numbers<[1], [0], [0], [1], [0, 0, 1, 1], [], []>} : vector<64x128xf32>, vector<128x128xf32>, vector<64x128xf32> -> vector<64x128xf32>
    %c0_46 = arith.constant 0 : index
    %c0_47 = arith.constant 0 : index
    %53 = vector.load %arg7[%c0_46, %c0_47] : memref<64x128xf32, #tpu.memory_space<vmem>>, vector<64x128xf32>
    %54 = arith.addf %53, %52 : vector<64x128xf32>
    %c0_48 = arith.constant 0 : index
    %c0_49 = arith.constant 0 : index
    %55 = vector.load %arg7[%c0_48, %c0_49] : memref<64x128xf32, #tpu.memory_space<vmem>>, vector<64x128xf32>
    tpu.vector_store %arg7[%c0_48, %c0_49], %54 {strides = array<i32>} : memref<64x128xf32, #tpu.memory_space<vmem>>, vector<64x128xf32>,
    %56 = vector.extract_strided_slice %1 {offsets = [2, 1, 0], sizes = [8, 8, 128], strides = [1, 1, 1]} : vector<10x10x128xf32> to vector<8x8x128xf32>
    %57 = vector.shape_cast %56 : vector<8x8x128xf32> to vector<64x128xf32>
    %c7 = arith.constant 7 : index
    %c0_50 = arith.constant 0 : index
    %c0_51 = arith.constant 0 : index
    %58 = vector.load %arg2[%c7, %c0_50, %c0_51] : memref<9x128x128xf32, #tpu.memory_space<vmem>>, vector<1x128x128xf32>
    %59 = vector.shape_cast %58 : vector<1x128x128xf32> to vector<128x128xf32>
    %cst_52 = arith.constant dense<0.000000e+00> : vector<64x128xf32>
    %60 = tpu.matmul %57, %59, %cst_52 {dimension_numbers = #tpu.dot_dimension_numbers<[1], [0], [0], [1], [0, 0, 1, 1], [], []>} : vector<64x128xf32>, vector<128x128xf32>, vector<64x128xf32> -> vector<64x128xf32>
    %c0_53 = arith.constant 0 : index
    %c0_54 = arith.constant 0 : index
    %61 = vector.load %arg7[%c0_53, %c0_54] : memref<64x128xf32, #tpu.memory_space<vmem>>, vector<64x128xf32>
    %62 = arith.addf %61, %60 : vector<64x128xf32>
    %c0_55 = arith.constant 0 : index
    %c0_56 = arith.constant 0 : index
    %63 = vector.load %arg7[%c0_55, %c0_56] : memref<64x128xf32, #tpu.memory_space<vmem>>, vector<64x128xf32>
    tpu.vector_store %arg7[%c0_55, %c0_56], %62 {strides = array<i32>} : memref<64x128xf32, #tpu.memory_space<vmem>>, vector<64x128xf32>,
    %64 = vector.extract_strided_slice %1 {offsets = [2, 2, 0], sizes = [8, 8, 128], strides = [1, 1, 1]} : vector<10x10x128xf32> to vector<8x8x128xf32>
    %65 = vector.shape_cast %64 : vector<8x8x128xf32> to vector<64x128xf32>
    %c8 = arith.constant 8 : index
    %c0_57 = arith.constant 0 : index
    %c0_58 = arith.constant 0 : index
    %66 = vector.load %arg2[%c8, %c0_57, %c0_58] : memref<9x128x128xf32, #tpu.memory_space<vmem>>, vector<1x128x128xf32>
    %67 = vector.shape_cast %66 : vector<1x128x128xf32> to vector<128x128xf32>
    %cst_59 = arith.constant dense<0.000000e+00> : vector<64x128xf32>
    %68 = tpu.matmul %65, %67, %cst_59 {dimension_numbers = #tpu.dot_dimension_numbers<[1], [0], [0], [1], [0, 0, 1, 1], [], []>} : vector<64x128xf32>, vector<128x128xf32>, vector<64x128xf32> -> vector<64x128xf32>
    %c0_60 = arith.constant 0 : index
    %c0_61 = arith.constant 0 : index
    %69 = vector.load %arg7[%c0_60, %c0_61] : memref<64x128xf32, #tpu.memory_space<vmem>>, vector<64x128xf32>
    %70 = arith.addf %69, %68 : vector<64x128xf32>
    %c0_62 = arith.constant 0 : index
    %c0_63 = arith.constant 0 : index
    %71 = vector.load %arg7[%c0_62, %c0_63] : memref<64x128xf32, #tpu.memory_space<vmem>>, vector<64x128xf32>
    tpu.vector_store %arg7[%c0_62, %c0_63], %70 {strides = array<i32>} : memref<64x128xf32, #tpu.memory_space<vmem>>, vector<64x128xf32>,
    %c0_64 = arith.constant 0 : index
    %c0_65 = arith.constant 0 : index
    %72 = vector.load %arg7[%c0_64, %c0_65] : memref<64x128xf32, #tpu.memory_space<vmem>>, vector<64x128xf32>
    %c0_66 = arith.constant 0 : index
    %c0_67 = arith.constant 0 : index
    %73 = vector.load %arg3[%c0_66, %c0_67] : memref<1x128xf32, #tpu.memory_space<vmem>>, vector<1x128xf32>
    %74 = vector.broadcast %73 : vector<1x128xf32> to vector<64x128xf32>
    %75 = arith.mulf %72, %74 : vector<64x128xf32>
    %c0_68 = arith.constant 0 : index
    %c0_69 = arith.constant 0 : index
    %76 = vector.load %arg4[%c0_68, %c0_69] : memref<1x128xf32, #tpu.memory_space<vmem>>, vector<1x128xf32>
    %77 = vector.broadcast %76 : vector<1x128xf32> to vector<64x128xf32>
    %78 = arith.addf %75, %77 : vector<64x128xf32>
    %cst_70 = arith.constant 5.000000e-01 : f32
    %79 = vector.broadcast %cst_70 : f32 to vector<64x128xf32>
    %80 = arith.mulf %79, %78 : vector<64x128xf32>
    %cst_71 = arith.constant 0.707106769 : f32
    %81 = vector.broadcast %cst_71 : f32 to vector<64x128xf32>
    %82 = arith.mulf %78, %81 : vector<64x128xf32>
    %cst_72 = arith.constant 0.000000e+00 : f32
    %83 = vector.broadcast %cst_72 : f32 to vector<64x128xf32>
    %84 = arith.cmpf oge, %82, %83 : vector<64x128xf32>
    %cst_73 = arith.constant 0.000000e+00 : f32
    %85 = vector.broadcast %cst_73 : f32 to vector<64x128xf32>
    %86 = arith.subf %85, %82 : vector<64x128xf32>
    %87 = arith.select %84, %82, %86 : vector<64x128xi1>, vector<64x128xf32>
    %cst_74 = arith.constant 0.327591091 : f32
    %88 = vector.broadcast %cst_74 : f32 to vector<64x128xf32>
    %89 = arith.mulf %88, %87 : vector<64x128xf32>
    %cst_75 = arith.constant 1.000000e+00 : f32
    %90 = vector.broadcast %cst_75 : f32 to vector<64x128xf32>
    %91 = arith.addf %90, %89 : vector<64x128xf32>
    %cst_76 = arith.constant 1.000000e+00 : f32
    %92 = vector.broadcast %cst_76 : f32 to vector<64x128xf32>
    %93 = arith.divf %92, %91 : vector<64x128xf32>
    %cst_77 = arith.constant 1.06140542 : f32
    %94 = vector.broadcast %cst_77 : f32 to vector<64x128xf32>
    %95 = arith.mulf %94, %93 : vector<64x128xf32>
    %cst_78 = arith.constant -1.45315206 : f32
    %96 = vector.broadcast %cst_78 : f32 to vector<64x128xf32>
    %97 = arith.addf %95, %96 : vector<64x128xf32>
    %98 = arith.mulf %97, %93 : vector<64x128xf32>
    %cst_79 = arith.constant 1.42141378 : f32
    %99 = vector.broadcast %cst_79 : f32 to vector<64x128xf32>
    %100 = arith.addf %98, %99 : vector<64x128xf32>
    %101 = arith.mulf %100, %93 : vector<64x128xf32>
    %cst_80 = arith.constant -0.284496725 : f32
    %102 = vector.broadcast %cst_80 : f32 to vector<64x128xf32>
    %103 = arith.addf %101, %102 : vector<64x128xf32>
    %104 = arith.mulf %103, %93 : vector<64x128xf32>
    %cst_81 = arith.constant 0.254829586 : f32
    %105 = vector.broadcast %cst_81 : f32 to vector<64x128xf32>
    %106 = arith.addf %104, %105 : vector<64x128xf32>
    %107 = arith.mulf %106, %93 : vector<64x128xf32>
    %108 = arith.mulf %87, %87 : vector<64x128xf32>
    %cst_82 = arith.constant 0.000000e+00 : f32
    %109 = vector.broadcast %cst_82 : f32 to vector<64x128xf32>
    %110 = arith.subf %109, %108 : vector<64x128xf32>
    %111 = math.exp %110 : vector<64x128xf32>
    %112 = arith.mulf %107, %111 : vector<64x128xf32>
    %cst_83 = arith.constant 1.000000e+00 : f32
    %113 = vector.broadcast %cst_83 : f32 to vector<64x128xf32>
    %114 = arith.subf %113, %112 : vector<64x128xf32>
    %cst_84 = arith.constant 0.000000e+00 : f32
    %115 = vector.broadcast %cst_84 : f32 to vector<64x128xf32>
    %116 = arith.cmpf oge, %82, %115 : vector<64x128xf32>
    %cst_85 = arith.constant 0.000000e+00 : f32
    %117 = vector.broadcast %cst_85 : f32 to vector<64x128xf32>
    %118 = arith.subf %117, %114 : vector<64x128xf32>
    %119 = arith.select %116, %114, %118 : vector<64x128xi1>, vector<64x128xf32>
    %cst_86 = arith.constant 1.000000e+00 : f32
    %120 = vector.broadcast %cst_86 : f32 to vector<64x128xf32>
    %121 = arith.addf %120, %119 : vector<64x128xf32>
    %122 = arith.mulf %80, %121 : vector<64x128xf32>
    %c0_87 = arith.constant 0 : index
    %c0_88 = arith.constant 0 : index
    %123 = vector.load %arg5[%c0_87, %c0_88] : memref<64x128xf32, #tpu.memory_space<vmem>>, vector<64x128xf32>
    %124 = arith.addf %122, %123 : vector<64x128xf32>
    %c0_89 = arith.constant 0 : index
    %c0_90 = arith.constant 0 : index
    %125 = vector.load %arg6[%c0_89, %c0_90] : memref<64x128xf32, #tpu.memory_space<vmem>>, vector<64x128xf32>
    tpu.vector_store %arg6[%c0_89, %c0_90], %124 {strides = array<i32>} : memref<64x128xf32, #tpu.memory_space<vmem>>, vector<64x128xf32>,
    return
  }
  func.func @transform_0(%arg0: i32) -> (i32, i32, i32, i32) {
    %c0_i32 = arith.constant 0 : i32
    %c0_i32_0 = arith.constant 0 : i32
    %c0_i32_1 = arith.constant 0 : i32
    %c0_i32_2 = arith.constant 0 : i32
    return %arg0, %c0_i32, %c0_i32_0, %c0_i32_1 : i32, i32, i32, i32
  }
  func.func @transform_1(%arg0: i32) -> (i32, i32, i32) {
    %c0_i32 = arith.constant 0 : i32
    %c0_i32_0 = arith.constant 0 : i32
    %c0_i32_1 = arith.constant 0 : i32
    %c0_i32_2 = arith.constant 0 : i32
    return %c0_i32, %c0_i32_0, %c0_i32_1 : i32, i32, i32
  }
  func.func @transform_2(%arg0: i32) -> (i32, i32) {
    %c0_i32 = arith.constant 0 : i32
    %c0_i32_0 = arith.constant 0 : i32
    %c0_i32_1 = arith.constant 0 : i32
    return %c0_i32, %c0_i32_0 : i32, i32
  }
  func.func @transform_3(%arg0: i32) -> (i32, i32) {
    %c0_i32 = arith.constant 0 : i32
    %c0_i32_0 = arith.constant 0 : i32
    %c0_i32_1 = arith.constant 0 : i32
    return %c0_i32, %c0_i32_0 : i32, i32
  }
  func.func @transform_4(%arg0: i32) -> (i32, i32) {
    %c0_i32 = arith.constant 0 : i32
    %c0_i32_0 = arith.constant 0 : i32
    return %arg0, %c0_i32 : i32, i32
  }
  func.func @transform_5(%arg0: i32) -> (i32, i32) {
    %c0_i32 = arith.constant 0 : i32
    %c0_i32_0 = arith.constant 0 : i32
    return %arg0, %c0_i32 : i32, i32
  }
}

</mosaic_0001>

<bundles_post_ra>
// kernel: conv_group_forward.5
= control target key start
LH: loop header
LB: loop body
LE: loop exit
PB: predicated region body
PF: predicated region fallthrough
CT: control target
= control target key end

     0   :  { %s645_s12 = smov 0   ;;  %s909_s0 = inlined_call_operand.vmem [shape: f32[2,8,2,8,256], index: 0, kind: input, shape index: {}]   ;;  %s910_s1 = inlined_call_operand.vmem [shape: f32[1,128], index: 1, kind: input, shape index: {}]   ;;  %s911_s2 = inlined_call_operand.vmem [shape: f32[1,128], index: 2, kind: input, shape index: {}]   ;;  %s912_s3 = inlined_call_operand.vmem [shape: f32[128,128], index: 3, kind: output, shape index: {}]  }
   0x1 LB: > { %s651_s13 = sadd.s32 4294967295, %s623_s12   ;;  %p551_p0 = scmp.ge.s32.totalorder %s623_s12, 1  ;;  %s623_s12 = sphi %s645_s12, %s13_s12  }
   0x2   : > { %p137_p1 = scmp.lt.s32.totalorder %s623_s12, 3 }
   0x4   : > { %p138_p2 = pnand %p551_p0, %p137_p1 }
   0x5   : > { %p161_p3 = scmp.lt.s32.totalorder (!%p138_p2), %s651_s13, 1  ;;  %v669_v5 = vld [vmem:[%s910_s1] ss:$0 sm:$0xff] (!%p138_p2)  ;;  %s554_s23 = sshll.u32 (!%p138_p2), %s651_s13, 3 }
   0x6   : > { %141 = sbr.rel (%p138_p2) target bundleno = 101 (0x65), region = 32  ;;  %v679_v12 = vld [vmem:[%s911_s2] ss:$0 sm:$0xff] (!%p138_p2)  ;;  %p829_p4 = scmp.lt.s32.totalorder (!%p138_p2), %s554_s23, 15 }
   0xd   : > { %s162_s14 = scalar_select %p161_p3, %s651_s13, 1 }
   0xe   : > { %s915_s23 = smov (!%p829_p4, %s554_s23), 15 }
   0xf   : > { %s576_s15 = sshll.u32 %s162_s14, 8  ;;  %s555_s25 = sshll.u32 %s915_s23, 3 }
  0x10   : > { %s660_s18 = scalar_lea.vmem %s909_s0, %s576_s15  ;;  %s870_s28 = scalar_lea.vmem %s912_s3, %s555_s25 }
  0x11   : > { %v172_v0 = vld [vmem:[%s660_s18] sm:$0xff]  ;;  %v173_v1 = vld [vmem:[%s660_s18 + $0x8] sm:$0xff]  ;;  %v556_v2 = vld [vmem:[%s660_s18 + $0x10] sm:$0xff] }
  0x12   : > { %v557_v3 = vld [vmem:[%s660_s18 + $0x18] sm:$0xff]  ;;  %v205_v4 = vmax.f32 %v172_v0, %v556_v2  ;;  %v174_v6 = vld [vmem:[%s660_s18 + $0x20] sm:$0xff]  ;;  %v175_v7 = vld [vmem:[%s660_s18 + $0x28] sm:$0xff] }
  0x13   : > { %v206_v8 = vmax.f32 %v173_v1, %v557_v3  ;;  %v558_v9 = vld [vmem:[%s660_s18 + $0x30] sm:$0xff]  ;;  %v559_v10 = vld [vmem:[%s660_s18 + $0x38] sm:$0xff]  ;;  %v176_v11 = vld [vmem:[%s660_s18 + $0x40] sm:$0xff] }
  0x14   : > { %v207_v13 = vmax.f32 %v174_v6, %v558_v9  ;;  %v208_v14 = vmax.f32 %v175_v7, %v559_v10  ;;  %v177_v15 = vld [vmem:[%s660_s18 + $0x48] sm:$0xff]  ;;  %v560_v16 = vld [vmem:[%s660_s18 + $0x50] sm:$0xff]  ;;  %v561_v17 = vld [vmem:[%s660_s18 + $0x58] sm:$0xff] }
  0x15   : > { %v221_v18 = vmax.f32 %v205_v4, %v206_v8  ;;  %v209_v19 = vmax.f32 %v176_v11, %v560_v16  ;;  %v210_v20 = vmax.f32 %v177_v15, %v561_v17  ;;  %v178_v21 = vld [vmem:[%s660_s18 + $0x60] sm:$0xff]  ;;  %v179_v22 = vld [vmem:[%s660_s18 + $0x68] sm:$0xff]  ;;  %v562_v23 = vld [vmem:[%s660_s18 + $0x70] sm:$0xff] }
  0x16   : > { %v222_v24 = vmax.f32 %v207_v13, %v208_v14  ;;  %v563_v25 = vld [vmem:[%s660_s18 + $0x78] sm:$0xff]  ;;  %v211_v26 = vmax.f32 %v178_v21, %v562_v23  ;;  %v180_v27 = vld [vmem:[%s660_s18 + $0x80] sm:$0xff]  ;;  %v181_v28 = vld [vmem:[%s660_s18 + $0x88] sm:$0xff] }
  0x17   : > { %v236_v29 = vmul.f32 %v669_v5, %v221_v18  ;;  %v223_v30 = vmax.f32 %v209_v19, %v210_v20  ;;  %v212_v31 = vmax.f32 %v179_v22, %v563_v25  ;;  %v564_v32 = vld [vmem:[%s660_s18 + $0x90] sm:$0xff]  ;;  %v565_v33 = vld [vmem:[%s660_s18 + $0x98] sm:$0xff]  ;;  %v182_v34 = vld [vmem:[%s660_s18 + $0xa0] sm:$0xff] }
  0x18   : > { %v237_v35 = vmul.f32 %v669_v5, %v222_v24  ;;  %v213_v36 = vmax.f32 %v180_v27, %v564_v32  ;;  %v214_v37 = vmax.f32 %v181_v28, %v565_v33  ;;  %v183_v38 = vld [vmem:[%s660_s18 + $0xa8] sm:$0xff]  ;;  %v566_v39 = vld [vmem:[%s660_s18 + $0xb0] sm:$0xff]  ;;  %v567_v40 = vld [vmem:[%s660_s18 + $0xb8] sm:$0xff] }
  0x19   : > { %v699_v41 = vadd.f32 %v679_v12, %v236_v29  ;;  %v238_v42 = vmul.f32 %v669_v5, %v223_v30  ;;  %v224_v43 = vmax.f32 %v211_v26, %v212_v31  ;;  %v215_v46 = vmax.f32 %v182_v34, %v566_v39  ;;  %v184_v8 = vld [vmem:[%s660_s18 + $0xc0] sm:$0xff]  ;;  %v568_v9 = vld [vmem:[%s660_s18 + $0xd0] sm:$0xff]  ;;  %v185_v13 = vld [vmem:[%s660_s18 + $0xc8] sm:$0xff] }
  0x1a   : > { %v703_v44 = vadd.f32 %v679_v12, %v237_v35  ;;  %v225_v45 = vmax.f32 %v213_v36, %v214_v37  ;;  %v216_v50 = vmax.f32 %v183_v38, %v567_v40  ;;  %v569_v14 = vld [vmem:[%s660_s18 + $0xd8] sm:$0xff]  ;;  %v217_v18 = vmax.f32 %v184_v8, %v568_v9  ;;  %v186_v19 = vld [vmem:[%s660_s18 + $0xe0] sm:$0xff]  ;;  %v570_v20 = vld [vmem:[%s660_s18 + $0xf0] sm:$0xff] }
  0x1b   : > { %v706_v47 = vmul.f32 0.70710677, %v699_v41  ;;  %v709_v48 = vadd.f32 %v679_v12, %v238_v42  ;;  %v239_v49 = vmul.f32 %v669_v5, %v224_v43  ;;  %v218_v23 = vmax.f32 %v185_v13, %v569_v14  ;;  %v187_v27 = vld [vmem:[%s660_s18 + $0xe8] sm:$0xff]  ;;  %v571_v28 = vld [vmem:[%s660_s18 + $0xf8] sm:$0xff] }
  0x1c   : > { %v713_v51 = vmul.f32 0.70710677, %v703_v44  ;;  %v240_v56 = vmul.f32 %v669_v5, %v225_v45  ;;  %v226_v59 = vmax.f32 %v215_v46, %v216_v50  ;;  %v219_v31 = vmax.f32 %v186_v19, %v570_v20 }
  0x1d   : > { %vm275_vm0 = vcmp.ge.f32.partialorder %v706_v47, 0.0  ;;  %v283_v52 = vsub.f32 0.0, %v706_v47  ;;  %v718_v53 = vmul.f32 0.70710677, %v709_v48  ;;  %v723_v55 = vadd.f32 %v679_v12, %v239_v49 }
  0x1e   : > { %vm276_vm1 = vcmp.ge.f32.partialorder %v713_v51, 0.0  ;;  %v284_v54 = vsub.f32 0.0, %v713_v51  ;;  %v741_v3 = vadd.f32 %v679_v12, %v240_v56  ;;  %v241_v7 = vmul.f32 %v669_v5, %v226_v59 }
  0x1f   : > { %v291_v57 = vsel %vm275_vm0, %v706_v47, %v283_v52  ;;  %vm277_vm2 = vcmp.ge.f32.partialorder %v718_v53, 0.0  ;;  %v285_v58 = vsub.f32 0.0, %v718_v53  ;;  %v738_v0 = vmul.f32 0.70710677, %v723_v55 }
  0x20   : > { %v299_v60 = vmul.f32 0.3275911, %v291_v57  ;;  %v292_v61 = vsel %vm276_vm1, %v713_v51, %v284_v54  ;;  %v403_v10 = vmul.f32 %v291_v57, %v291_v57  ;;  %v756_v21 = vmul.f32 0.70710677, %v741_v3 }
  0x21   : > { %v300_v62 = vmul.f32 0.3275911, %v292_v61  ;;  %v293_v63 = vsel %vm277_vm2, %v718_v53, %v285_v58  ;;  %vm278_vm3 = vcmp.ge.f32.partialorder %v738_v0, 0.0  ;;  %v286_v6 = vsub.f32 0.0, %v738_v0 }
  0x22   : > { %v307_v1 = vadd.f32 1.0, %v299_v60  ;;  %v301_v2 = vmul.f32 0.3275911, %v293_v63  ;;  %v404_v15 = vmul.f32 %v292_v61, %v292_v61  ;;  %v759_v22 = vadd.f32 %v679_v12, %v241_v7 }
  0x23   : > { %v308_v4 = vadd.f32 1.0, %v300_v62  ;;  %v294_v16 = vsel %vm278_vm3, %v738_v0, %v286_v6  ;;  %v411_v24 = vsub.f32 0.0, %v403_v10  ;;  %v405_v25 = vmul.f32 %v293_v63, %v293_v63 }
  0x24   : > { %585 = vrcp.f32 %v307_v1  ;;  %v309_v11 = vadd.f32 1.0, %v301_v2  ;;  %v302_v17 = vmul.f32 0.3275911, %v294_v16  ;;  %v412_v29 = vsub.f32 0.0, %v404_v15 }
  0x25   : > { %587 = vrcp.f32 %v308_v4  ;;  %vm279_vm4 = vcmp.ge.f32.partialorder %v756_v21, 0.0  ;;  %v287_v30 = vsub.f32 0.0, %v756_v21  ;;  %v406_v32 = vmul.f32 %v294_v16, %v294_v16 }
  0x26   : > { %589 = vrcp.f32 %v309_v11  ;;  %v310_v26 = vadd.f32 1.0, %v302_v17  ;;  %v766_v33 = vmul.f32 0.70710677, %v759_v22  ;;  %v227_v34 = vmax.f32 %v217_v18, %v218_v23 }
  0x27   : > { %v295_v35 = vsel %vm279_vm4, %v756_v21, %v287_v30  ;;  %v220_v36 = vmax.f32 %v187_v27, %v571_v28  ;;  %v419_v37 = vmul.f32 1.442695, %v411_v24  ;;  %v413_v39 = vsub.f32 0.0, %v405_v25 }
  0x28   : > { %591 = vrcp.f32 %v310_v26  ;;  %v303_v38 = vmul.f32 0.3275911, %v295_v35  ;;  %vm280_vm5 = vcmp.ge.f32.partialorder %v766_v33, 0.0  ;;  %v288_v40 = vsub.f32 0.0, %v766_v33 }
  0x29   : > { %v242_v42 = vmul.f32 %v669_v5, %v227_v34  ;;  %v228_v43 = vmax.f32 %v219_v31, %v220_v36  ;;  %v777_v46 = vmul.f32 0.5, %v699_v41  ;;  %v421_v49 = vmul.f32 1.442695, %v412_v29 }
  0x2a   : > { %v414_v50 = vsub.f32 0.0, %v406_v32  ;;  %v311_v52 = vadd.f32 1.0, %v303_v38  ;;  %v296_v57 = vsel %vm280_vm5, %v766_v33, %v288_v40  ;;  %v407_v41 = vmul.f32 %v295_v35, %v295_v35 }
  0x2b   : > { %v786_v58 = vadd.f32 %v679_v12, %v242_v42  ;;  %v243_v59 = vmul.f32 %v669_v5, %v228_v43  ;;  %v304_v61 = vmul.f32 0.3275911, %v296_v57  ;;  %v423_v63 = vmul.f32 1.442695, %v413_v39 }
  0x2c   : > { %593 = vrcp.f32 %v311_v52  ;;  %v425_v9 = vmul.f32 1.442695, %v414_v50  ;;  %v415_v13 = vsub.f32 0.0, %v407_v41  ;;  %v408_v18 = vmul.f32 %v296_v57, %v296_v57 }
  0x2d   : > { %595 = vpow2.f32 %v419_v37  ;;  %v791_v1 = vmul.f32 0.70710677, %v786_v58  ;;  %v312_v6 = vadd.f32 1.0, %v304_v61  ;;  %v796_v7 = vadd.f32 %v679_v12, %v243_v59 }
  0x2e   : > { %v774_v45 = vpop.eup %585  ;;  %597 = vpow2.f32 %v421_v49  ;;  %v815_v27 = vmul.f32 0.5, %v703_v44  ;;  %v427_v36 = vmul.f32 1.442695, %v415_v13  ;;  %v416_v37 = vsub.f32 0.0, %v408_v18 }
  0x2f   : > { %v779_v54 = vpop.eup %587  ;;  %v331_v56 = vmul.f32 1.0614054, %v774_v45  ;;  %vm281_vm6 = vcmp.ge.f32.partialorder %v791_v1, 0.0  ;;  %599 = vrcp.f32 %v312_v6  ;;  %v289_v14 = vsub.f32 0.0, %v791_v1 }
  0x30   : > { %v332_v60 = vmul.f32 1.0614054, %v779_v54  ;;  %v793_v2 = vpop.eup %589  ;;  %601 = vpow2.f32 %v423_v63  ;;  %v810_v20 = vmul.f32 0.70710677, %v796_v7  ;;  %v429_v63 = vmul.f32 1.442695, %v416_v37 }
  0x31   : > { %v339_v62 = vadd.f32 -1.4531521, %v331_v56  ;;  %v333_v8 = vmul.f32 1.0614054, %v793_v2  ;;  %v297_v19 = vsel %vm281_vm6, %v791_v1, %v289_v14  ;;  %603 = vpow2.f32 %v425_v9 }
  0x32   : > { %v340_v4 = vadd.f32 -1.4531521, %v332_v60  ;;  %v801_v10 = vpop.eup %591  ;;  %v305_v26 = vmul.f32 0.3275911, %v297_v19  ;;  %vm282_vm7 = vcmp.ge.f32.partialorder %v810_v20, 0.0  ;;  %v290_v44 = vsub.f32 0.0, %v810_v20 }
  0x33   : > { %v347_v5 = vmul.f32 %v774_v45, %v339_v62  ;;  %v341_v16 = vadd.f32 -1.4531521, %v333_v8  ;;  %v334_v12 = vmul.f32 1.0614054, %v801_v10  ;;  %v409_v52 = vmul.f32 %v297_v19, %v297_v19 }
  0x34   : > { %v348_v11 = vmul.f32 %v779_v54, %v340_v4  ;;  %v313_v32 = vadd.f32 1.0, %v305_v26  ;;  %v298_v56 = vsel %vm282_vm7, %v810_v20, %v290_v44  ;;  %v262_v51 = vmul.f32 0.5, %v723_v55 }
  0x35   : > { %v355_v15 = vadd.f32 1.4214138, %v347_v5  ;;  %v349_v24 = vmul.f32 %v793_v2, %v341_v16  ;;  %v342_v25 = vadd.f32 -1.4531521, %v334_v12  ;;  %v306_v4 = vmul.f32 0.3275911, %v298_v56 }
  0x36   : > { %v356_v17 = vadd.f32 1.4214138, %v348_v11  ;;  %v821_v34 = vpop.eup %593  ;;  %605 = vrcp.f32 %v313_v32 }
  0x37   : > { %v363_v23 = vmul.f32 %v774_v45, %v355_v15  ;;  %v357_v30 = vadd.f32 1.4214138, %v349_v24  ;;  %v350_v31 = vmul.f32 %v801_v10, %v342_v25  ;;  %v596_v38 = vpop.eup %595  ;;  %v335_v43 = vmul.f32 1.0614054, %v821_v34 }
  0x38   : > { %v364_v28 = vmul.f32 %v779_v54, %v356_v17  ;;  %v598_v49 = vpop.eup %597  ;;  %607 = vpow2.f32 %v427_v36  ;;  %v417_v15 = vsub.f32 0.0, %v409_v52  ;;  %v314_v16 = vadd.f32 1.0, %v306_v4 }
  0x39   : > { %v371_v29 = vadd.f32 -0.28449672, %v363_v23  ;;  %v365_v40 = vmul.f32 %v793_v2, %v357_v30  ;;  %v358_v42 = vadd.f32 1.4214138, %v350_v31  ;;  %v343_v41 = vadd.f32 -1.4531521, %v335_v43  ;;  %v838_v61 = vpop.eup %599 }
  0x3a   : > { %v372_v35 = vadd.f32 -0.28449672, %v364_v28  ;;  %v602_v6 = vpop.eup %601  ;;  %v336_v14 = vmul.f32 1.0614054, %v838_v61  ;;  %609 = vrcp.f32 %v314_v16  ;;  %v410_v25 = vmul.f32 %v298_v56, %v298_v56 }
  0x3b   : > { %v379_v39 = vmul.f32 %v774_v45, %v371_v29  ;;  %v373_v59 = vadd.f32 -0.28449672, %v365_v40  ;;  %v366_v60 = vmul.f32 %v801_v10, %v358_v42  ;;  %v351_v11 = vmul.f32 %v821_v34, %v343_v41  ;;  %v604_v19 = vpop.eup %603 }
  0x3c   : > { %v380_v50 = vmul.f32 %v779_v54, %v372_v35  ;;  %v344_v24 = vadd.f32 -1.4531521, %v336_v14  ;;  %v261_v31 = vmul.f32 0.5, %v709_v48  ;;  %611 = vpow2.f32 %v429_v63 }
  0x3d   : > { %v387_v57 = vadd.f32 0.2548296, %v379_v39  ;;  %v381_v8 = vmul.f32 %v793_v2, %v373_v59  ;;  %v374_v9 = vadd.f32 -0.28449672, %v366_v60  ;;  %v359_v18 = vadd.f32 1.4214138, %v351_v11 }
  0x3e   : > { %v388_v62 = vadd.f32 0.2548296, %v380_v50  ;;  %v352_v32 = vmul.f32 %v838_v61, %v344_v24  ;;  %v418_v42 = vsub.f32 0.0, %v410_v25 }
  0x3f   : > { %v395_v5 = vmul.f32 %v774_v45, %v387_v57  ;;  %v389_v17 = vadd.f32 0.2548296, %v381_v8  ;;  %v382_v45 = vmul.f32 %v801_v10, %v374_v9  ;;  %v367_v29 = vmul.f32 %v821_v34, %v359_v18 }
  0x40   : > { %v396_v13 = vmul.f32 %v779_v54, %v388_v62  ;;  %v360_v40 = vadd.f32 1.4214138, %v352_v32  ;;  %v433_v16 = vmul.f32 1.442695, %v418_v42 }
  0x41   : > { %v435_v12 = vmul.f32 %v596_v38, %v395_v5  ;;  %v397_v26 = vmul.f32 %v793_v2, %v389_v17  ;;  %v390_v28 = vadd.f32 0.2548296, %v382_v45  ;;  %v375_v44 = vadd.f32 -0.28449672, %v367_v29  ;;  %v858_v38 = vpop.eup %605 }
  0x42   : > { %v436_v23 = vmul.f32 %v598_v49, %v396_v13  ;;  %v431_v2 = vmul.f32 1.442695, %v417_v15  ;;  %v608_v52 = vpop.eup %607  ;;  %v337_v59 = vmul.f32 1.0614054, %v858_v38 }
  0x43   : > { %v443_v54 = vsub.f32 1.0, %v435_v12  ;;  %v437_v36 = vmul.f32 %v602_v6, %v397_v26  ;;  %v398_v37 = vmul.f32 %v801_v10, %v390_v28  ;;  %v383_v50 = vmul.f32 %v821_v34, %v375_v44 }
  0x44   : > { %v444_v30 = vsub.f32 1.0, %v436_v23  ;;  %v368_v10 = vmul.f32 %v838_v61, %v360_v40  ;;  %v345_v6 = vadd.f32 -1.4531521, %v337_v59  ;;  %v610_v13 = vpop.eup %609  ;;  %613 = vpow2.f32 %v431_v2 }
  0x45   : > { %v451_v35 = vsub.f32 0.0, %v443_v54  ;;  %v445_v49 = vsub.f32 1.0, %v437_v36  ;;  %v438_v48 = vmul.f32 %v604_v19, %v398_v37  ;;  %v391_v62 = vadd.f32 0.2548296, %v383_v50 }
  0x46   : > { %v452_v39 = vsub.f32 0.0, %v444_v30  ;;  %v376_v4 = vadd.f32 -0.28449672, %v368_v10  ;;  %v338_v53 = vmul.f32 1.0614054, %v610_v13  ;;  %v612_v12 = vpop.eup %611  ;;  %v263_v28 = vmul.f32 0.5, %v741_v3 }
  0x47   : > { %v459_v43 = vsel %vm275_vm0, %v443_v54, %v451_v35  ;;  %v453_v60 = vsub.f32 0.0, %v445_v49  ;;  %v446_v41 = vsub.f32 1.0, %v438_v48  ;;  %v399_v11 = vmul.f32 %v821_v34, %v391_v62 }
  0x48   : > { %v467_v56 = vadd.f32 1.0, %v459_v43  ;;  %v460_v57 = vsel %vm276_vm1, %v444_v30, %v452_v39  ;;  %v384_v15 = vmul.f32 %v838_v61, %v376_v4  ;;  %v346_v23 = vadd.f32 -1.4531521, %v338_v53 }
  0x49   : > { %v468_v47 = vadd.f32 1.0, %v460_v57  ;;  %v461_v8 = vsel %vm277_vm2, %v445_v49, %v453_v60  ;;  %v454_v9 = vsub.f32 0.0, %v446_v41  ;;  %615 = vpow2.f32 %v433_v16 }
  0x4a   : > { %v475_v63 = vmul.f32 %v467_v56, %v777_v46  ;;  %v469_v14 = vadd.f32 1.0, %v461_v8  ;;  %v353_v46 = vmul.f32 %v858_v38, %v345_v6  ;;  %v392_v45 = vadd.f32 0.2548296, %v384_v15 }
  0x4b   : > { %v476_v5 = vmul.f32 %v468_v47, %v815_v27  ;;  %v462_v55 = vsel %vm278_vm3, %v446_v41, %v454_v9  ;;  %v439_v27 = vmul.f32 %v608_v52, %v399_v11  ;;  %v354_v0 = vmul.f32 %v610_v13, %v346_v23 }
  0x4c   : > { %483 = vst [vmem:[%s870_s28] sm:$0xff] %v475_v63  ;;  %v477_v17 = vmul.f32 %v469_v14, %v261_v31  ;;  %v470_v34 = vadd.f32 1.0, %v462_v55  ;;  %v361_v18 = vadd.f32 1.4214138, %v353_v46  ;;  %v400_v25 = vmul.f32 %v838_v61, %v392_v45 }
  0x4d   : > { %484 = vst [vmem:[%s870_s28 + $0x8] sm:$0xff] %v476_v5  ;;  %v447_v19 = vsub.f32 1.0, %v439_v27  ;;  %v362_v32 = vadd.f32 1.4214138, %v354_v0  ;;  %v264_v3 = vmul.f32 0.5, %v759_v22  ;;  %v265_v22 = vmul.f32 0.5, %v786_v58 }
  0x4e   : > { %485 = vst [vmem:[%s870_s28 + $0x10] sm:$0xff] %v477_v17  ;;  %v478_v24 = vmul.f32 %v470_v34, %v262_v51  ;;  %v369_v54 = vmul.f32 %v858_v38, %v361_v18  ;;  %v440_v29 = vmul.f32 %v612_v12, %v400_v25  ;;  %v614_v44 = vpop.eup %613  ;;  %v266_v51 = vmul.f32 0.5, %v796_v7 }
  0x4f   : > { %v455_v26 = vsub.f32 0.0, %v447_v19  ;;  %v370_v61 = vmul.f32 %v610_v13, %v362_v32 }
  0x50   : > { %486 = vst [vmem:[%s870_s28 + $0x18] sm:$0xff] %v478_v24  ;;  %v377_v30 = vadd.f32 -0.28449672, %v369_v54  ;;  %v448_v36 = vsub.f32 1.0, %v440_v29 }
  0x51   : > { %v463_v31 = vsel %vm279_vm4, %v447_v19, %v455_v26  ;;  %v378_v42 = vadd.f32 -0.28449672, %v370_v61 }
  0x52   : > { %v471_v35 = vadd.f32 1.0, %v463_v31  ;;  %v385_v37 = vmul.f32 %v858_v38, %v377_v30  ;;  %v456_v40 = vsub.f32 0.0, %v448_v36 }
  0x53   : > { %v386_v48 = vmul.f32 %v610_v13, %v378_v42  ;;  %v616_v57 = vpop.eup %615 }
  0x54   : > { %v479_v39 = vmul.f32 %v471_v35, %v263_v28  ;;  %v393_v2 = vadd.f32 0.2548296, %v385_v37  ;;  %v464_v43 = vsel %vm280_vm5, %v448_v36, %v456_v40 }
  0x55   : > { %v472_v49 = vadd.f32 1.0, %v464_v43  ;;  %v394_v56 = vadd.f32 0.2548296, %v386_v48 }
  0x56   : > { %487 = vst [vmem:[%s870_s28 + $0x20] sm:$0xff] %v479_v39  ;;  %v401_v21 = vmul.f32 %v858_v38, %v393_v2 }
  0x57   : > { %v480_v52 = vmul.f32 %v472_v49, %v264_v3  ;;  %v402_v59 = vmul.f32 %v610_v13, %v394_v56 }
  0x58   : > { %v441_v50 = vmul.f32 %v614_v44, %v401_v21 }
  0x59   : > { %488 = vst [vmem:[%s870_s28 + $0x28] sm:$0xff] %v480_v52  ;;  %v442_v60 = vmul.f32 %v616_v57, %v402_v59 }
  0x5a   : > { %v449_v10 = vsub.f32 1.0, %v441_v50 }
  0x5b   : > { %v450_v38 = vsub.f32 1.0, %v442_v60 }
  0x5c   : > { %v457_v47 = vsub.f32 0.0, %v449_v10 }
  0x5d   : > { %v458_v63 = vsub.f32 0.0, %v450_v38 }
  0x5e   : > { %v465_v33 = vsel %vm281_vm6, %v449_v10, %v457_v47 }
  0x5f   : > { %v473_v41 = vadd.f32 1.0, %v465_v33  ;;  %v466_v4 = vsel %vm282_vm7, %v450_v38, %v458_v63 }
  0x60   : > { %v474_v6 = vadd.f32 1.0, %v466_v4 }
  0x61   : > { %v481_v62 = vmul.f32 %v473_v41, %v265_v22 }
  0x62   : > { %v482_v5 = vmul.f32 %v474_v6, %v266_v51 }
  0x63   : > { %489 = vst [vmem:[%s870_s28 + $0x30] sm:$0xff] %v481_v62 }
  0x64   : > { %490 = vst [vmem:[%s870_s28 + $0x38] sm:$0xff] %v482_v5 }
  0x65 PF: > { %s13_s12 = sadd.s32 1, %s623_s12  }
  0x66   : > { %p10_p5 = scmp.ge.s32.totalorder %s13_s12, 4  }
  0x68   :  { %12 = sbr.rel (!%p10_p5) target bundleno = 1 (0x1), region = 63 }

// kernel: conv_group_forward.4
= control target key start
LH: loop header
LB: loop body
LE: loop exit
PB: predicated region body
PF: predicated region fallthrough
CT: control target
= control target key end

     0   :  { %s5163_s9 = smov 0   ;;  %s6409_s0 = inlined_call_operand.vmem [shape: f32[2,18,18,32], index: 0, kind: input, shape index: {}]   ;;  %s6410_s1 = inlined_call_operand.vmem [shape: f32[9,32,128], index: 1, kind: input, shape index: {}]   ;;  %s6411_s2 = inlined_call_operand.vmem [shape: f32[512,128], index: 2, kind: output, shape index: {}]  }
   0x1 LB: > { %s5169_s10 = sadd.s32 4294967295, %s5146_s9   ;;  %p3645_p0 = scmp.ge.s32.totalorder %s5146_s9, 1  ;;  %s5146_s9 = sphi %s5163_s9, %s12_s9  }
   0x2   : > { %p112_p1 = scmp.lt.s32.totalorder %s5146_s9, 3 }
   0x4   : > { %p113_p2 = pnand %p3645_p0, %p112_p1 }
   0x6   : > { %116 = sbr.rel (%p113_p2) target bundleno = 526 (0x20e), region = 28 }
   0xd   : > { %v199_v0 = vld [vmem:[%s6410_s1] sm:$0xff]  ;;  %v200_v1 = vld [vmem:[%s6410_s1 + $0x8] sm:$0xff]  ;;  %p134_p3 = scmp.lt.s32.totalorder %s5169_s10, 1  ;;  %v201_v5 = vld [vmem:[%s6410_s1 + $0x10] sm:$0xff]  ;;  %vm203_vm0 = vcmask 261120   ;;  %vm573_vm1 = vcmask 1046528  }
   0xe   : > { %v3789_v2 = vld [vmem:[%s6410_s1 + $0x80] sm:$0xff]  ;;  %v4799_v3 = vpack.c.bf16 %v200_v1, %v199_v0  ;;  %v3790_v4 = vld [vmem:[%s6410_s1 + $0x88] sm:$0xff]  ;;  %v202_v6 = vld [vmem:[%s6410_s1 + $0x18] sm:$0xff]  ;;  %vm1044_vm2 = vcmask 1045504  }
   0xf   : > { %v5192_v7 = vpack.c.bf16 %v3790_v4, %v3789_v2  ;;  %v4803_v8 = vpack.c.bf16 %v202_v6, %v201_v5  ;;  %v3791_v9 = vld [vmem:[%s6410_s1 + $0x90] sm:$0xff]  ;;  %v3792_v10 = vld [vmem:[%s6410_s1 + $0x98] sm:$0xff]  ;;  %s135_s27 = scalar_select %p134_p3, %s5169_s10, 1  ;;  %v3681_v11 = vld [vmem:[%s6410_s1 + $0x20] sm:$0xff] }
  0x10   : > { %4800 = vmatprep.subr.bf16.mxu1 %v4799_v3  ;;  %v5204_v12 = vpack.c.bf16 %v3792_v10, %v3791_v9  ;;  %v3682_v13 = vld [vmem:[%s6410_s1 + $0x28] sm:$0xff]  ;;  %v3825_v14 = vld [vmem:[%s6410_s1 + $0xa0] sm:$0xff]  ;;  %v3827_v18 = vld [vmem:[%s6410_s1 + $0xb0] sm:$0xff] }
  0x11   : > { %6486 = vst [vmem:[#allocation3_spill] sm:$0xff] %v5192_v7  ;;  %v3826_v15 = vld [vmem:[%s6410_s1 + $0xa8] sm:$0xff]  ;;  %4832 = vmatprep.subr.bf16.mxu0 %v5192_v7  ;;  %4802 = vmatpush3.bf16.msra.mxu1 %v4799_v3  ;;  %s5131_s8 = smul.u32 432, %s135_s27  ;;  %v4807_v16 = vpack.c.bf16 %v3682_v13, %v3681_v11  ;;  %v3828_v19 = vld [vmem:[%s6410_s1 + $0xb8] sm:$0xff]  ;;  %v3683_v23 = vld [vmem:[%s6410_s1 + $0x30] sm:$0xff] }
  0x12   : > { %6487 = vst [vmem:[#allocation4_spill] sm:$0xff] %v5204_v12  ;;  %4834 = vmatpush3.bf16.msra.mxu0 %v5192_v7  ;;  %4804 = vmatprep.subr.bf16.mxu1 %v4803_v8  ;;  %v4839_v17 = vpack.c.bf16 %v3826_v15, %v3825_v14  ;;  %v3684_v28 = vld [vmem:[%s6410_s1 + $0x38] sm:$0xff]  ;;  %v4843_v38 = vpack.c.bf16 %v3828_v19, %v3827_v18  ;;  %v3861_v44 = vld [vmem:[%s6410_s1 + $0xc0] sm:$0xff]  ;;  %v3862_v52 = vld [vmem:[%s6410_s1 + $0xc8] sm:$0xff] }
  0x13   : > { %4836 = vmatprep.subr.bf16.mxu0 %v5204_v12  ;;  %s5221_s13 = scalar_lea.vmem %s6409_s0, %s5131_s8  ;;  %v4811_v51 = vpack.c.bf16 %v3684_v28, %v3683_v23  ;;  %v3717_v53 = vld [vmem:[%s6410_s1 + $0x40] sm:$0xff]  ;;  %v3718_v54 = vld [vmem:[%s6410_s1 + $0x48] sm:$0xff]  ;;  %v5337_v61 = vpack.c.bf16 %v3862_v52, %v3861_v44 }
  0x14   : > { %v5230_v20 = vld [vmem:[%s5221_s13] sm:$0xff]  ;;  %v5233_v21 = vld [vmem:[%s5221_s13 + $0x8] sm:$0xff]  ;;  %v5236_v22 = vld [vmem:[%s5221_s13 + $0x18] sm:$0xff]  ;;  %v5347_v0 = vpack.c.bf16 %v3718_v54, %v3717_v53 }
  0x15   : > { %6488 = vst [vmem:[#allocation5_spill] sm:$0xff] %v5236_v22  ;;  %4806 = vmatpush3.bf16.msra.mxu1 %v4803_v8  ;;  %4303 = vmatprep.mubr.msk.f32.mxu1 %vm203_vm0, %v5230_v20  ;;  %v1045_v24 = vrot.slane %v5230_v20, 2  ;;  %v6412_v25 = vrot.slane %v5233_v21, 2  ;;  %v5246_v26 = vld [vmem:[%s5221_s13 + $0x20] sm:$0xff]  ;;  %v5249_v27 = vld [vmem:[%s5221_s13 + $0x30] sm:$0xff]  ;;  %v579_v29 = vrot.slane %v5236_v22, 1 }
  0x16   : > { %6489 = vst [vmem:[#allocation6_spill] sm:$0xff] %v5246_v26  ;;  %6490 = vst [vmem:[#allocation7_spill] sm:$0xff] %v5249_v27  ;;  %4838 = vmatpush3.bf16.msra.mxu0 %v5204_v12  ;;  %4808 = vmatprep.subr.bf16.mxu1 %v4807_v16  ;;  %v580_v30 = vrot.slane %v5246_v26, 1  ;;  %v5258_v31 = vld [vmem:[%s5221_s13 + $0x28] sm:$0x3]  ;;  %v5261_v32 = vld [vmem:[%s5221_s13 + $0x38] sm:$0xff] }
  0x17   : > { %6491 = vst [vmem:[#allocation8_spill] sm:$0xff] %v5261_v32  ;;  %v584_v33 = vrot.slane %v5249_v27, 1  ;;  %4840 = vmatprep.subr.bf16.mxu0 %v4839_v17  ;;  %v582_v34 = vrot.slane %v5258_v31, 1  ;;  %v585_v35 = vrot.slane %v5261_v32, 1  ;;  %v5267_v36 = vld [vmem:[%s5221_s13 + $0x40] sm:$0x3]  ;;  %v5291_v45 = vsel %vm1044_vm2, %v1045_v24, %v6412_v25 }
  0x18   : > { %v5270_v37 = vld [vmem:[%s5221_s13 + $0x48] sm:$0xff]  ;;  %4304 = vmatmul.mubr.msk.f32.vlgmr.msra.gmra.mrb[0].mxu1 %vm203_vm0, %v5233_v21  ;;  %v5275_v39 = vsel %vm573_vm1, %v579_v29, %v580_v30  ;;  %v587_v40 = vrot.slane %v5267_v36, 1  ;;  %v5279_v41 = vld [vmem:[%s5221_s13 + $0x50] sm:$0xff]  ;;  %v5283_v43 = vld [vmem:[%s5221_s13 + $0x58] sm:$0x3]  ;;  %6493 = vst [vmem:[#allocation10_spill] sm:$0xff] %v5291_v45 }
  0x19   : > { %6492 = vst [vmem:[#allocation9_spill] sm:$0xff] %v5270_v37  ;;  %v589_v42 = vrot.slane %v5270_v37, 1  ;;  %4527 = vmatprep.mubr.msk.f32.mxu0 %vm203_vm0, %v5275_v39  ;;  %4810 = vmatpush3.bf16.msra.mxu1 %v4807_v16  ;;  %v5296_v46 = vsel %vm573_vm1, %v580_v30, %v582_v34  ;;  %v5299_v47 = vsel %vm573_vm1, %v584_v33, %v585_v35  ;;  %v590_v48 = vrot.slane %v5279_v41, 1  ;;  %v5303_v49 = vld [vmem:[%s5221_s13 + $0x60] sm:$0xff]  ;;  %v5306_v50 = vld [vmem:[%s5221_s13 + $0x68] sm:$0xff]  ;;  %v5342_v62 = vld [vmem:[%s5221_s13 + $0x78] sm:$0xff] }
  0x1a   : > { %4528 = vmatmul.mubr.msk.f32.vlgmr.msra.gmra.mrb[0].mxu0 %vm203_vm0, %v5296_v46  ;;  %4306 = vmatprep.mubr.msk.f32.mxu1 %vm203_vm0, %v5236_v22  ;;  %v5324_v55 = vsel %vm573_vm1, %v585_v35, %v587_v40  ;;  %v592_v56 = vrot.slane %v5283_v43, 1  ;;  %v594_v58 = vrot.slane %v5303_v49, 1  ;;  %v595_v59 = vrot.slane %v5306_v50, 1  ;;  %v5335_v60 = vld [vmem:[%s5221_s13 + $0x70] sm:$0x3]  ;;  %v5345_v63 = vld [vmem:[%s5221_s13 + $0x80] sm:$0xff] }
  0x1b   : > { %4842 = vmatpush3.bf16.msra.mxu0 %v4839_v17  ;;  %4530 = vmatprep.mubr.msk.f32.mxu0 %vm203_vm0, %v5299_v47  ;;  %v5330_v57 = vsel %vm573_vm1, %v589_v42, %v590_v48  ;;  %v597_v2 = vrot.slane %v5335_v60, 1  ;;  %v599_v4 = vrot.slane %v5342_v62, 1  ;;  %v600_v5 = vrot.slane %v5345_v63, 1  ;;  %v5365_v6 = vld [vmem:[%s5221_s13 + $0x88] sm:$0x3]  ;;  %v5371_v8 = vld [vmem:[%s5221_s13 + $0x90] sm:$0xff] }
  0x1c   : > { %4307 = vmatmul.mubr.msk.f32.gmra.mrb[2].mxu1 %vm203_vm0, %v5246_v26  ;;  %4844 = vmatprep.subr.bf16.mxu0 %v4843_v38  ;;  %v5354_v1 = vsel %vm573_vm1, %v590_v48, %v592_v56  ;;  %v5360_v3 = vsel %vm573_vm1, %v594_v58, %v595_v59  ;;  %v5374_v9 = vld [vmem:[%s5221_s13 + $0x98] sm:$0xff]  ;;  %v602_v11 = vrot.slane %v5365_v6, 1  ;;  %v604_v14 = vrot.slane %v5371_v8, 1  ;;  %v5393_v16 = vld [vmem:[%s5221_s13 + $0xa0] sm:$0x3]  ;;  %v5398_v17 = vld [vmem:[%s5221_s13 + $0xa8] sm:$0xff] }
  0x1d   : > { %4309 = vmatprep.mubr.msk.f32.mxu1 %vm203_vm0, %v5249_v27  ;;  %4812 = vmatprep.subr.bf16.mxu1 %v4811_v51  ;;  %6494 = vst [vmem:[#allocation11_spill] sm:$0xff] %v5354_v1  ;;  %6495 = vst [vmem:[#allocation12_spill] sm:$0xff] %v5360_v3  ;;  %v5382_v10 = vsel %vm573_vm1, %v595_v59, %v597_v2  ;;  %v5388_v13 = vsel %vm573_vm1, %v599_v4, %v600_v5  ;;  %v605_v15 = vrot.slane %v5374_v9, 1  ;;  %v5401_v18 = vld [vmem:[%s5221_s13 + $0xb0] sm:$0xff]  ;;  %v5419_v30 = vld [vmem:[%s5221_s13 + $0xb8] sm:$0x3] }
  0x1e   : > { %4531 = vmatmul.mubr.msk.f32.gmra.mrb[2].mxu0 %vm203_vm0, %v5324_v55  ;;  %4814 = vmatpush3.bf16.msra.mxu1 %v4811_v51  ;;  %6496 = vst [vmem:[#allocation13_spill] sm:$0xff] %v5382_v10  ;;  %6497 = vst [vmem:[#allocation14_spill] sm:$0xff] %v5388_v13  ;;  %v5408_v19 = vsel %vm573_vm1, %v600_v5, %v602_v11  ;;  %v607_v23 = vrot.slane %v5393_v16, 1  ;;  %v609_v28 = vrot.slane %v5398_v17, 1  ;;  %v610_v29 = vrot.slane %v5401_v18, 1  ;;  %v5424_v33 = vld [vmem:[%s5221_s13 + $0xc0] sm:$0xff] }
  0x1f   : > { %4533 = vmatprep.mubr.msk.f32.mxu0 %vm203_vm0, %v5330_v57  ;;  %4846 = vmatpush3.bf16.msra.mxu0 %v4843_v38  ;;  %v5414_v24 = vsel %vm573_vm1, %v604_v14, %v605_v15  ;;  %v5427_v34 = vld [vmem:[%s5221_s13 + $0xc8] sm:$0xff]  ;;  %v612_v38 = vrot.slane %v5419_v30, 1  ;;  %v614_v42 = vrot.slane %v5424_v33, 1  ;;  %v5445_v48 = vld [vmem:[%s5221_s13 + $0xd0] sm:$0x3]  ;;  %v1050_v54 = vrot.slane %v5236_v22, 2 }
  0x20   : > { %4310 = vmatmul.mubr.msk.f32.gmra.mrb[4].mxu1 %vm203_vm0, %v5261_v32  ;;  %4848 = vmatprep.subr.bf16.mxu0 %v5337_v61  ;;  %v5434_v35 = vsel %vm573_vm1, %v605_v15, %v607_v23  ;;  %v5440_v40 = vsel %vm573_vm1, %v609_v28, %v610_v29  ;;  %v615_v44 = vrot.slane %v5427_v34, 1  ;;  %v617_v52 = vrot.slane %v5445_v48, 1  ;;  %v3864_v11 = vld [vmem:[%s6410_s1 + $0xd8] sm:$0xff]  ;;  %v5538_v25 = vld [vmem:[%s5221_s13 + $0x10] sm:$0x3]  ;;  %v3753_v45 = vld [vmem:[%s6410_s1 + $0x60] sm:$0xff] }
  0x21   : > { %4312 = vmatprep.mubr.msk.f32.mxu1 %vm203_vm0, %v5270_v37  ;;  %4816 = vmatprep.subr.bf16.mxu1 %v5347_v0  ;;  %v5454_v51 = vsel %vm573_vm1, %v610_v29, %v612_v38  ;;  %v1051_v56 = vrot.slane %v5246_v26, 2  ;;  %v1053_v58 = vrot.slane %v5258_v31, 2  ;;  %v1055_v4 = vrot.slane %v5249_v27, 2  ;;  %v3863_v31 = vld [vmem:[%s6410_s1 + $0xd0] sm:$0xff]  ;;  %v5492_v14 = vld [vmem:[%s5221_s13 + $0xd8] sm:$0xff] }
  0x22   : > { %4534 = vmatmul.mubr.msk.f32.gmra.mrb[4].mxu0 %vm203_vm0, %v5354_v1  ;;  %v5460_v53 = vsel %vm573_vm1, %v614_v42, %v615_v44  ;;  %v5472_v59 = vsel %vm573_vm1, %v615_v44, %v617_v52  ;;  %v1056_v5 = vrot.slane %v5261_v32, 2  ;;  %v1058_v23 = vrot.slane %v5267_v36, 2  ;;  %v5510_v44 = vld [vmem:[%s5221_s13 + $0xe0] sm:$0xff]  ;;  %v3898_v52 = vld [vmem:[%s6410_s1 + $0xe8] sm:$0xff] }
  0x23   : > { %4536 = vmatprep.mubr.msk.f32.mxu0 %vm203_vm0, %v5360_v3  ;;  %v5477_v2 = vsel %vm1044_vm2, %v1050_v54, %v1051_v56  ;;  %v5497_v15 = vsel %vm1044_vm2, %v1051_v56, %v1053_v58  ;;  %v1060_v29 = vrot.slane %v5270_v37, 2  ;;  %v1061_v38 = vrot.slane %v5279_v41, 2  ;;  %v3897_v36 = vld [vmem:[%s6410_s1 + $0xe0] sm:$0xff]  ;;  %v5521_v54 = vld [vmem:[%s5221_s13 + $0xf0] sm:$0xff] }
  0x24   : > { %4313 = vmatmul.mubr.msk.f32.gmra.mrb[6].mxu1 %vm203_vm0, %v5279_v41  ;;  %6498 = vst [vmem:[#allocation15_spill] sm:$0xff] %v5477_v2  ;;  %6499 = vst [vmem:[#allocation16_spill] sm:$0xff] %v5497_v15  ;;  %v5503_v28 = vsel %vm1044_vm2, %v1055_v4, %v1056_v5  ;;  %v4851_v42 = vpack.c.bf16 %v3864_v11, %v3863_v31  ;;  %v5527_v56 = vsel %vm1044_vm2, %v1056_v5, %v1058_v23  ;;  %v5551_v23 = vld [vmem:[%s5221_s13 + $0x108] sm:$0xff] }
  0x25   : > { %4315 = vmatprep.mubr.msk.f32.mxu1 %vm203_vm0, %v5303_v49  ;;  %6500 = vst [vmem:[#allocation17_spill] sm:$0xff] %v5503_v28  ;;  %6501 = vst [vmem:[#allocation18_spill] sm:$0xff] %v5527_v56  ;;  %v1063_v58 = vrot.slane %v5283_v43, 2  ;;  %v5533_v4 = vsel %vm1044_vm2, %v1060_v29, %v1061_v38  ;;  %v1065_v31 = vrot.slane %v5303_v49, 2  ;;  %v1066_v11 = vrot.slane %v5306_v50, 2  ;;  %v5545_v43 = vld [vmem:[%s5221_s13 + $0xf8] sm:$0xff] }
  0x26   : > { %4537 = vmatmul.mubr.msk.f32.gmra.mrb[6].mxu0 %vm203_vm0, %v5382_v10  ;;  %6502 = vst [vmem:[#allocation19_spill] sm:$0xff] %v5533_v4  ;;  %v1048_v5 = vrot.slane %v5538_v25, 2  ;;  %v1070_v22 = vrot.slane %v5342_v62, 2  ;;  %v1088_v7 = vrot.slane %v5445_v48, 2  ;;  %v577_v48 = vrot.slane %v5538_v25, 1  ;;  %v3720_v25 = vld [vmem:[%s6410_s1 + $0x58] sm:$0xff] }
  0x27   : > { %4539 = vmatprep.mubr.msk.f32.mxu0 %vm203_vm0, %v5388_v13  ;;  %v5556_v29 = vsel %vm1044_vm2, %v1061_v38, %v1063_v58  ;;  %v5567_v26 = vsel %vm1044_vm2, %v1065_v31, %v1066_v11  ;;  %v1071_v38 = vrot.slane %v5345_v63, 2  ;;  %v1073_v31 = vrot.slane %v5365_v6, 2  ;;  %v5603_v6 = vld [vmem:[%s5221_s13 + $0x138] sm:$0xff] }
  0x28   : > { %4316 = vmatmul.mubr.msk.f32.gmra.mrb[8].mxu1 %vm203_vm0, %v5306_v50  ;;  %6503 = vst [vmem:[#allocation20_spill] sm:$0xff] %v5556_v29  ;;  %6506 = vst [vmem:[#allocation22_spill] sm:$0xff] %v5567_v26 }
  0x29   : > { %4318 = vmatprep.mubr.msk.f32.mxu1 %vm203_vm0, %v5342_v62  ;;  %6511 = vst [vmem:[#allocation27_spill] sm:$0xff] %v5603_v6 }
  0x2a   : > { %4540 = vmatmul.mubr.msk.f32.gmra.mrb[8].mxu0 %vm203_vm0, %v5408_v19 }
  0x2b   : > { %4542 = vmatprep.mubr.msk.f32.mxu0 %vm203_vm0, %v5414_v24 }
  0x2c   : > { %4319 = vmatmul.mubr.msk.f32.gmra.mrb[10].mxu1 %vm203_vm0, %v5345_v63 }
  0x2d   : > { %4321 = vmatprep.mubr.msk.f32.mxu1 %vm203_vm0, %v5371_v8 }
  0x2e   : > { %4543 = vmatmul.mubr.msk.f32.gmra.mrb[10].mxu0 %vm203_vm0, %v5434_v35 }
  0x2f   : > { %4545 = vmatprep.mubr.msk.f32.mxu0 %vm203_vm0, %v5440_v40 }
  0x30   : > { %4322 = vmatmul.mubr.msk.f32.gmra.mrb[12].mxu1 %vm203_vm0, %v5374_v9 }
  0x31   : > { %4324 = vmatprep.mubr.msk.f32.mxu1 %vm203_vm0, %v5398_v17 }
  0x32   : > { %4546 = vmatmul.mubr.msk.f32.gmra.mrb[12].mxu0 %vm203_vm0, %v5454_v51 }
  0x33   : > { %4548 = vmatprep.mubr.msk.f32.mxu0 %vm203_vm0, %v5460_v53 }
  0x34   : > { %4325 = vmatmul.mubr.msk.f32.gmra.mrb[14].mxu1 %vm203_vm0, %v5401_v18 }
  0x35   : > { %4327 = vmatprep.mubr.msk.f32.mxu1 %vm203_vm0, %v5424_v33 }
  0x36   : > { %4549 = vmatmul.mubr.msk.f32.gmra.mrb[14].mxu0 %vm203_vm0, %v5472_v59 }
  0x37   : > { %4583 = vmatprep.mubr.msk.f32.mxu0 %vm203_vm0, %v5477_v2 }
  0x38   : > { %4328 = vmatmul.mubr.msk.f32.gmra.mrb[16].mxu1 %vm203_vm0, %v5427_v34 }
  0x39   : > { %4330 = vmatprep.mubr.msk.f32.mxu1 %vm203_vm0, %v5492_v14 }
  0x3a   : > { %4584 = vmatmul.mubr.msk.f32.vlgmr.msra.gmra.mrb[0].mxu0 %vm203_vm0, %v5497_v15  ;;  %v3719_v15 = vld [vmem:[%s6410_s1 + $0x50] sm:$0xff] }
  0x3b   : > { %4850 = vmatpush3.bf16.msra.mxu0 %v5337_v61  ;;  %4586 = vmatprep.mubr.msk.f32.mxu0 %vm203_vm0, %v5503_v28  ;;  %v5540_v61 = vpack.c.bf16 %v3898_v52, %v3897_v36  ;;  %v1068_v36 = vrot.slane %v5335_v60, 2  ;;  %v6504_v52 = vrot.slane %v5233_v21, 2  ;;  %v5575_v60 = vld [vmem:[%s5221_s13 + $0x110] sm:$0xff]  ;;  %v5667_v28 = vld [vmem:[%s5221_s13 + $0xe8] sm:$0x3]  ;;  %v4819_v2 = vpack.c.bf16 %v3720_v25, %v3719_v15 }
  0x3c   : > { %4331 = vmatmul.mubr.msk.f32.gmra.mrb[18].mxu1 %vm203_vm0, %v5510_v44  ;;  %4852 = vmatprep.subr.bf16.mxu0 %v4851_v42  ;;  %v5746_v25 = vld [vmem:[%s5221_s13 + $0x130] sm:$0x3] }
  0x3d   : > { %4333 = vmatprep.mubr.msk.f32.mxu1 %vm203_vm0, %v5521_v54  ;;  %v5562_v12 = vsel %vm1044_vm2, %v6504_v52, %v1048_v5  ;;  %v5585_v58 = vsel %vm1044_vm2, %v1066_v11, %v1068_v36  ;;  %v5591_v5 = vsel %vm1044_vm2, %v1070_v22, %v1071_v38  ;;  %v1075_v52 = vrot.slane %v5371_v8, 2 }
  0x3e   : > { %4587 = vmatmul.mubr.msk.f32.gmra.mrb[2].mxu0 %vm203_vm0, %v5527_v56  ;;  %6505 = vst [vmem:[#allocation21_spill] sm:$0xff] %v5562_v12  ;;  %6508 = vst [vmem:[#allocation24_spill] sm:$0xff] %v5585_v58  ;;  %v5608_v22 = vsel %vm1044_vm2, %v1071_v38, %v1073_v31  ;;  %v1078_v11 = vrot.slane %v5393_v16, 2  ;;  %v5626_v16 = vld [vmem:[%s5221_s13 + $0x150] sm:$0xff]  ;;  %v1083_v31 = vrot.slane %v5419_v30, 2  ;;  %v1085_v56 = vrot.slane %v5424_v33, 2 }
  0x3f   : > { %4589 = vmatprep.mubr.msk.f32.mxu0 %vm203_vm0, %v5533_v4  ;;  %4854 = vmatpush3.bf16.msra.mxu0 %v4851_v42  ;;  %v5580_v42 = vld [vmem:[%s5221_s13 + $0x120] sm:$0xff]  ;;  %6509 = vst [vmem:[#allocation25_spill] sm:$0xff] %v5591_v5  ;;  %6512 = vst [vmem:[#allocation28_spill] sm:$0xff] %v5608_v22  ;;  %v1080_v4 = vrot.slane %v5398_v17, 2  ;;  %v575_v30 = vrot.slane %v5233_v21, 1  ;;  %v1090_v21 = vrot.slane %v5492_v14, 2 }
  0x40   : > { %4334 = vmatmul.mubr.msk.f32.gmra.mrb[20].mxu1 %vm203_vm0, %v5545_v43  ;;  %4856 = vmatprep.subr.bf16.mxu0 %v5540_v61  ;;  %6507 = vst [vmem:[#allocation23_spill] sm:$0xff] %v5580_v42  ;;  %6515 = vst [vmem:[#allocation31_spill] sm:$0xff] %v5626_v16 }
  0x41   : > { %4336 = vmatprep.mubr.msk.f32.mxu1 %vm203_vm0, %v5551_v23 }
  0x42   : > { %4590 = vmatmul.mubr.msk.f32.gmra.mrb[4].mxu0 %vm203_vm0, %v5556_v29  ;;  %v1076_v29 = vrot.slane %v5374_v9, 2 }
  0x43   : > { %4592 = vmatprep.mubr.msk.f32.mxu0 %vm203_vm0, %v5567_v26  ;;  %v5598_v26 = vld [vmem:[%s5221_s13 + $0x128] sm:$0xff] }
  0x44   : > { %4337 = vmatmul.mubr.msk.f32.gmra.mrb[22].mxu1 %vm203_vm0, %v5575_v60  ;;  %6510 = vst [vmem:[#allocation26_spill] sm:$0xff] %v5598_v26  ;;  %v5614_v36 = vsel %vm1044_vm2, %v1075_v52, %v1076_v29  ;;  %v5631_v38 = vsel %vm1044_vm2, %v1076_v29, %v1078_v11  ;;  %v574_v29 = vrot.slane %v5230_v20, 1 }
  0x45   : > { %4339 = vmatprep.mubr.msk.f32.mxu1 %vm203_vm0, %v5580_v42  ;;  %6513 = vst [vmem:[#allocation29_spill] sm:$0xff] %v5614_v36  ;;  %6516 = vst [vmem:[#allocation32_spill] sm:$0xff] %v5631_v38 }
  0x46   : > { %4593 = vmatmul.mubr.msk.f32.gmra.mrb[6].mxu0 %vm203_vm0, %v5585_v58  ;;  %v1081_v58 = vrot.slane %v5401_v18, 2 }
  0x47   : > { %4595 = vmatprep.mubr.msk.f32.mxu0 %vm203_vm0, %v5591_v5  ;;  %v5621_v5 = vld [vmem:[%s5221_s13 + $0x140] sm:$0xff] }
  0x48   : > { %4340 = vmatmul.mubr.msk.f32.gmra.mrb[24].mxu1 %vm203_vm0, %v5598_v26  ;;  %6514 = vst [vmem:[#allocation30_spill] sm:$0xff] %v5621_v5  ;;  %v5637_v52 = vsel %vm1044_vm2, %v1080_v4, %v1081_v58  ;;  %v5651_v4 = vld [vmem:[%s5221_s13 + $0x168] sm:$0xff]  ;;  %v5656_v11 = vsel %vm1044_vm2, %v1081_v58, %v1083_v31  ;;  %v5672_v58 = vld [vmem:[%s5221_s13 + $0x170] sm:$0xff] }
  0x49   : > { %4342 = vmatprep.mubr.msk.f32.mxu1 %vm203_vm0, %v5603_v6  ;;  %6517 = vst [vmem:[#allocation33_spill] sm:$0xff] %v5637_v52  ;;  %6519 = vst [vmem:[#allocation35_spill] sm:$0xff] %v5651_v4 }
  0x4a   : > { %4596 = vmatmul.mubr.msk.f32.gmra.mrb[8].mxu0 %vm203_vm0, %v5608_v22  ;;  %v1086_v22 = vrot.slane %v5427_v34, 2  ;;  %6520 = vst [vmem:[#allocation36_spill] sm:$0xff] %v5656_v11  ;;  %6522 = vst [vmem:[#allocation38_spill] sm:$0xff] %v5672_v58 }
  0x4b   : > { %4598 = vmatprep.mubr.msk.f32.mxu0 %vm203_vm0, %v5614_v36  ;;  %v5644_v36 = vld [vmem:[%s5221_s13 + $0x158] sm:$0xff] }
  0x4c   : > { %4343 = vmatmul.mubr.msk.f32.gmra.mrb[26].mxu1 %vm203_vm0, %v5621_v5  ;;  %6518 = vst [vmem:[#allocation34_spill] sm:$0xff] %v5644_v36  ;;  %v5662_v20 = vsel %vm1044_vm2, %v1085_v56, %v1086_v22  ;;  %v576_v56 = vsel %vm573_vm1, %v574_v29, %v575_v30  ;;  %v5681_v31 = vsel %vm1044_vm2, %v1086_v22, %v1088_v7  ;;  %v1096_v7 = vrot.slane %v5545_v43, 2  ;;  %v5698_v22 = vld [vmem:[%s5221_s13 + $0x100] sm:$0x3] }
  0x4d   : > { %4345 = vmatprep.mubr.msk.f32.mxu1 %vm203_vm0, %v5626_v16  ;;  %6521 = vst [vmem:[#allocation37_spill] sm:$0xff] %v5662_v20  ;;  %6523 = vst [vmem:[#allocation39_spill] sm:$0xff] %v5681_v31  ;;  %v1098_v12 = vrot.slane %v5698_v22, 2 }
  0x4e   : > { %4599 = vmatmul.mubr.msk.f32.gmra.mrb[10].mxu0 %vm203_vm0, %v5631_v38  ;;  %v1091_v38 = vrot.slane %v5510_v44, 2 }
  0x4f   : > { %4601 = vmatprep.mubr.msk.f32.mxu0 %vm203_vm0, %v5637_v52  ;;  %v1093_v52 = vrot.slane %v5667_v28, 2 }
  0x50   : > { %4346 = vmatmul.mubr.msk.f32.gmra.mrb[28].mxu1 %vm203_vm0, %v5644_v36  ;;  %v5693_v29 = vsel %vm1044_vm2, %v1090_v21, %v1091_v38 }
  0x51   : > { %4348 = vmatprep.mubr.msk.f32.mxu1 %vm203_vm0, %v5651_v4  ;;  %v5707_v21 = vsel %vm1044_vm2, %v1091_v38, %v1093_v52  ;;  %v1101_v38 = vrot.slane %v5575_v60, 2  ;;  %v5723_v52 = vld [vmem:[%s5221_s13 + $0x118] sm:$0x3] }
  0x52   : > { %4602 = vmatmul.mubr.msk.f32.gmra.mrb[12].mxu0 %vm203_vm0, %v5656_v11  ;;  %v578_v11 = vsel %vm573_vm1, %v575_v30, %v577_v48  ;;  %v3754_v30 = vld [vmem:[%s6410_s1 + $0x68] sm:$0xff]  ;;  %v1100_v48 = vrot.slane %v5551_v23, 2 }
  0x53   : > { %4604 = vmatprep.mubr.msk.f32.mxu0 %vm203_vm0, %v5662_v20  ;;  %v1095_v20 = vrot.slane %v5521_v54, 2 }
  0x54   : > { %4349 = vmatmul.mubr.msk.f32.gmra.mrb[30].mxu1 %vm203_vm0, %v5672_v58 }
  0x55   : > { %4359 = vmatprep.mubr.msk.f32.mxu1 %vm203_vm0, %v576_v56  ;;  %v5718_v15 = vsel %vm1044_vm2, %v1095_v20, %v1096_v7  ;;  %v5735_v20 = vsel %vm1044_vm2, %v1096_v7, %v1098_v12  ;;  %v1103_v56 = vrot.slane %v5723_v52, 2 }
  0x56   : > { %4605 = vmatmul.mubr.msk.f32.gmra.mrb[14].mxu0 %vm203_vm0, %v5681_v31  ;;  %6524 = vst [vmem:[#allocation40_spill] sm:$0xff] %v5718_v15  ;;  %6525 = vst [vmem:[#allocation41_spill] sm:$0xff] %v5735_v20 }
  0x57   : > { %4607 = vmatprep.mubr.msk.f32.mxu0 %vm203_vm0, %v5693_v29  ;;  %v5756_v12 = vsel %vm1044_vm2, %v1101_v38, %v1103_v56 }
  0x58   : > { %4360 = vmatmul.mubr.msk.f32.vlgmr.msra.gmra.mrb[0].mxu1 %vm203_vm0, %v578_v11  ;;  %v5730_v11 = vpack.c.bf16 %v3754_v30, %v3753_v45  ;;  %v1106_v45 = vrot.slane %v5598_v26, 2  ;;  %6527 = vst [vmem:[#allocation43_spill] sm:$0xff] %v5756_v12  ;;  %v1111_v30 = vrot.slane %v5621_v5, 2 }
  0x59   : > { %4818 = vmatpush3.bf16.msra.mxu1 %v5347_v0  ;;  %4362 = vmatprep.mubr.msk.f32.mxu1 %vm203_vm0, %v5275_v39  ;;  %v5741_v39 = vsel %vm1044_vm2, %v1100_v48, %v1101_v38  ;;  %v1105_v0 = vrot.slane %v5580_v42, 2  ;;  %v5767_v48 = vld [vmem:[%s5221_s13 + $0x148] sm:$0x3] }
  0x5a   : > { %4608 = vmatmul.mubr.msk.f32.gmra.mrb[16].mxu0 %vm203_vm0, %v5707_v21  ;;  %4820 = vmatprep.subr.bf16.mxu1 %v4819_v2  ;;  %6526 = vst [vmem:[#allocation42_spill] sm:$0xff] %v5741_v39  ;;  %v1113_v56 = vrot.slane %v5767_v48, 2 }
  0x5b   : > { %4610 = vmatprep.mubr.msk.f32.mxu0 %vm203_vm0, %v5718_v15  ;;  %v5762_v7 = vsel %vm1044_vm2, %v1105_v0, %v1106_v45  ;;  %v5833_v15 = vld [vmem:[%s5221_s13 + $0x190] sm:$0x3] }
  0x5c   : > { %4363 = vmatmul.mubr.msk.f32.gmra.mrb[2].mxu1 %vm203_vm0, %v5296_v46  ;;  %v1108_v46 = vrot.slane %v5746_v25, 2  ;;  %6528 = vst [vmem:[#allocation44_spill] sm:$0xff] %v5762_v7  ;;  %6533 = vst [vmem:[#allocation49_spill] sm:$0xff] %v5833_v15 }
  0x5d   : > { %4365 = vmatprep.mubr.msk.f32.mxu1 %vm203_vm0, %v5299_v47  ;;  %4822 = vmatpush3.bf16.msra.mxu1 %v4819_v2  ;;  %v1110_v2 = vrot.slane %v5603_v6, 2 }
  0x5e   : > { %4611 = vmatmul.mubr.msk.f32.gmra.mrb[18].mxu0 %vm203_vm0, %v5735_v20  ;;  %4824 = vmatprep.subr.bf16.mxu1 %v5730_v11  ;;  %v5776_v38 = vsel %vm1044_vm2, %v1106_v45, %v1108_v46  ;;  %v5787_v20 = vld [vmem:[%s5221_s13 + $0x160] sm:$0x3]  ;;  %v5796_v45 = vsel %vm1044_vm2, %v1111_v30, %v1113_v56  ;;  %v5815_v56 = vld [vmem:[%s5221_s13 + $0x188] sm:$0xff] }
  0x5f   : > { %4613 = vmatprep.mubr.msk.f32.mxu0 %vm203_vm0, %v5741_v39  ;;  %6529 = vst [vmem:[#allocation45_spill] sm:$0xff] %v5776_v38  ;;  %v5782_v0 = vsel %vm1044_vm2, %v1110_v2, %v1111_v30  ;;  %v1115_v39 = vrot.slane %v5626_v16, 2  ;;  %v1118_v46 = vrot.slane %v5787_v20, 2  ;;  %v5812_v30 = vld [vmem:[%s5221_s13 + $0x180] sm:$0xff] }
  0x60   : > { %4366 = vmatmul.mubr.msk.f32.gmra.mrb[4].mxu1 %vm203_vm0, %v5324_v55  ;;  %6530 = vst [vmem:[#allocation46_spill] sm:$0xff] %v5782_v0 }
  0x61   : > { %4368 = vmatprep.mubr.msk.f32.mxu1 %vm203_vm0, %v5330_v57 }
  0x62   : > { %4614 = vmatmul.mubr.msk.f32.gmra.mrb[20].mxu0 %vm203_vm0, %v5756_v12  ;;  %v1116_v12 = vrot.slane %v5644_v36, 2 }
  0x63   : > { %4616 = vmatprep.mubr.msk.f32.mxu0 %vm203_vm0, %v5762_v7  ;;  %v1120_v7 = vrot.slane %v5651_v4, 2 }
  0x64   : > { %4369 = vmatmul.mubr.msk.f32.gmra.mrb[6].mxu1 %vm203_vm0, %v5354_v1  ;;  %v5802_v2 = vsel %vm1044_vm2, %v1115_v39, %v1116_v12  ;;  %v5822_v39 = vsel %vm1044_vm2, %v1116_v12, %v1118_v46  ;;  %v2184_v1 = vrot.slane %v5815_v56, 2 }
  0x65   : > { %4371 = vmatprep.mubr.msk.f32.mxu1 %vm203_vm0, %v5360_v3  ;;  %v1121_v3 = vrot.slane %v5672_v58, 2  ;;  %6531 = vst [vmem:[#allocation47_spill] sm:$0xff] %v5822_v39 }
  0x66   : > { %4617 = vmatmul.mubr.msk.f32.gmra.mrb[22].mxu0 %vm203_vm0, %v5776_v38  ;;  %v5807_v38 = vld [vmem:[%s5221_s13 + $0x178] sm:$0x3] }
  0x67   : > { %4619 = vmatprep.mubr.msk.f32.mxu0 %vm203_vm0, %v5782_v0  ;;  %v1123_v0 = vrot.slane %v5807_v38, 2 }
  0x68   : > { %4372 = vmatmul.mubr.msk.f32.gmra.mrb[8].mxu1 %vm203_vm0, %v5382_v10  ;;  %v2183_v10 = vrot.slane %v5812_v30, 2 }
  0x69   : > { %4374 = vmatprep.mubr.msk.f32.mxu1 %vm203_vm0, %v5388_v13  ;;  %v5828_v13 = vsel %vm1044_vm2, %v1120_v7, %v1121_v3  ;;  %v5842_v12 = vsel %vm1044_vm2, %v1121_v3, %v1123_v0  ;;  %v2186_v7 = vrot.slane %v5833_v15, 2  ;;  %v3899_v0 = vld [vmem:[%s6410_s1 + $0xf0] sm:$0xff]  ;;  %v3900_v15 = vld [vmem:[%s6410_s1 + $0xf8] sm:$0xff] }
  0x6a   : > { %4620 = vmatmul.mubr.msk.f32.gmra.mrb[24].mxu0 %vm203_vm0, %v5796_v45  ;;  %6532 = vst [vmem:[#allocation48_spill] sm:$0xff] %v5828_v13  ;;  %6534 = vst [vmem:[#allocation50_spill] sm:$0xff] %v5842_v12  ;;  %v5848_v46 = vsel %vm1044_vm2, %v2183_v10, %v2184_v1  ;;  %v622_v10 = vrot.slane %v5667_v28, 1  ;;  %v4859_v28 = vpack.c.bf16 %v3900_v15, %v3899_v0  ;;  %v629_v0 = vrot.slane %v5551_v23, 1 }
  0x6b   : > { %4622 = vmatprep.mubr.msk.f32.mxu0 %vm203_vm0, %v5802_v2  ;;  %6535 = vst [vmem:[#allocation51_spill] sm:$0xff] %v5848_v46  ;;  %v5859_v3 = vsel %vm1044_vm2, %v2184_v1, %v2186_v7  ;;  %v624_v7 = vrot.slane %v5521_v54, 1 }
  0x6c   : > { %4375 = vmatmul.mubr.msk.f32.gmra.mrb[10].mxu1 %vm203_vm0, %v5408_v19  ;;  %6536 = vst [vmem:[#allocation52_spill] sm:$0xff] %v5859_v3 }
  0x6d   : > { %4377 = vmatprep.mubr.msk.f32.mxu1 %vm203_vm0, %v5414_v24 }
  0x6e   : > { %4623 = vmatmul.mubr.msk.f32.gmra.mrb[26].mxu0 %vm203_vm0, %v5822_v39  ;;  %v619_v39 = vrot.slane %v5492_v14, 1 }
  0x6f   : > { %4625 = vmatprep.mubr.msk.f32.mxu0 %vm203_vm0, %v5828_v13  ;;  %v620_v13 = vrot.slane %v5510_v44, 1 }
  0x70   : > { %4378 = vmatmul.mubr.msk.f32.gmra.mrb[12].mxu1 %vm203_vm0, %v5434_v35 }
  0x71   : > { %4380 = vmatprep.mubr.msk.f32.mxu1 %vm203_vm0, %v5440_v40  ;;  %v5875_v1 = vsel %vm573_vm1, %v619_v39, %v620_v13  ;;  %v627_v39 = vrot.slane %v5698_v22, 1 }
  0x72   : > { %4626 = vmatmul.mubr.msk.f32.gmra.mrb[28].mxu0 %vm203_vm0, %v5842_v12  ;;  %v5886_v12 = vsel %vm573_vm1, %v620_v13, %v622_v10  ;;  %v630_v13 = vrot.slane %v5575_v60, 1 }
  0x73   : > { %4628 = vmatprep.mubr.msk.f32.mxu0 %vm203_vm0, %v5848_v46  ;;  %v625_v46 = vrot.slane %v5545_v43, 1 }
  0x74   : > { %4381 = vmatmul.mubr.msk.f32.gmra.mrb[14].mxu1 %vm203_vm0, %v5454_v51 }
  0x75   : > { %4383 = vmatprep.mubr.msk.f32.mxu1 %vm203_vm0, %v5460_v53  ;;  %v5898_v15 = vsel %vm573_vm1, %v624_v7, %v625_v46  ;;  %v5912_v10 = vsel %vm573_vm1, %v625_v46, %v627_v39  ;;  %v632_v7 = vrot.slane %v5723_v52, 1  ;;  %v637_v52 = vrot.slane %v5746_v25, 1 }
  0x76   : > { %4629 = vmatmul.mubr.msk.f32.gmra.mrb[30].mxu0 %vm203_vm0, %v5859_v3  ;;  %v3933_v3 = vld [vmem:[%s6410_s1 + $0x100] sm:$0xff]  ;;  %v642_v39 = vrot.slane %v5767_v48, 1  ;;  %v647_v48 = vrot.slane %v5787_v20, 1 }
  0x77   : > { %4639 = vmatprep.mubr.msk.f32.mxu0 %vm203_vm0, %v5249_v27  ;;  %v3934_v27 = vld [vmem:[%s6410_s1 + $0x108] sm:$0xff] }
  0x78   : > { %4384 = vmatmul.mubr.msk.f32.gmra.mrb[16].mxu1 %vm203_vm0, %v5472_v59  ;;  %v5907_v22 = vpack.c.bf16 %v3934_v27, %v3933_v3  ;;  %v5930_v27 = vsel %vm573_vm1, %v630_v13, %v632_v7  ;;  %v639_v3 = vrot.slane %v5603_v6, 1 }
  0x79   : > { %4386 = vmatprep.mubr.msk.f32.mxu1 %vm203_vm0, %v5875_v1 }
  0x7a   : > { %4640 = vmatmul.mubr.msk.f32.vlgmr.msra.gmra.mrb[0].mxu0 %vm203_vm0, %v5261_v32  ;;  %v635_v32 = vrot.slane %v5598_v26, 1 }
  0x7b   : > { %4858 = vmatpush3.bf16.msra.mxu0 %v5540_v61  ;;  %4642 = vmatprep.mubr.msk.f32.mxu0 %vm203_vm0, %v5270_v37  ;;  %v5918_v61 = vsel %vm573_vm1, %v629_v0, %v630_v13  ;;  %v634_v37 = vrot.slane %v5580_v42, 1  ;;  %v644_v0 = vrot.slane %v5626_v16, 1  ;;  %v645_v13 = vrot.slane %v5644_v36, 1 }
  0x7c   : > { %4387 = vmatmul.mubr.msk.f32.gmra.mrb[18].mxu1 %vm203_vm0, %v5886_v12  ;;  %4860 = vmatprep.subr.bf16.mxu0 %v4859_v28  ;;  %v5947_v25 = vsel %vm573_vm1, %v635_v32, %v637_v52  ;;  %v649_v52 = vrot.slane %v5651_v4, 1 }
  0x7d   : > { %4389 = vmatprep.mubr.msk.f32.mxu1 %vm203_vm0, %v5898_v15  ;;  %v5936_v46 = vsel %vm573_vm1, %v634_v37, %v635_v32  ;;  %v5970_v7 = vsel %vm573_vm1, %v644_v0, %v645_v13  ;;  %v5981_v20 = vsel %vm573_vm1, %v645_v13, %v647_v48  ;;  %v3756_v13 = vld [vmem:[%s6410_s1 + $0x78] sm:$0xff] }
  0x7e   : > { %4643 = vmatmul.mubr.msk.f32.gmra.mrb[2].mxu0 %vm203_vm0, %v5279_v41  ;;  %v6537_v48 = vld [vmem:[#allocation10_spill] sm:$0xff] }
  0x7f   : > { %4645 = vmatprep.mubr.msk.f32.mxu0 %vm203_vm0, %v5303_v49  ;;  %4862 = vmatpush3.bf16.msra.mxu0 %v4859_v28  ;;  %v640_v28 = vrot.slane %v5621_v5, 1 }
  0x80   : > { %4390 = vmatmul.mubr.msk.f32.gmra.mrb[20].mxu1 %vm203_vm0, %v5912_v10  ;;  %4864 = vmatprep.subr.bf16.mxu0 %v5907_v22 }
  0x81   : > { %4392 = vmatprep.mubr.msk.f32.mxu1 %vm203_vm0, %v5918_v61  ;;  %v5953_v37 = vsel %vm573_vm1, %v639_v3, %v640_v28  ;;  %v5964_v32 = vsel %vm573_vm1, %v640_v28, %v642_v39  ;;  %v650_v3 = vrot.slane %v5672_v58, 1  ;;  %v652_v28 = vrot.slane %v5807_v38, 1  ;;  %v3755_v38 = vld [vmem:[%s6410_s1 + $0x70] sm:$0xff] }
  0x82   : > { %4646 = vmatmul.mubr.msk.f32.gmra.mrb[4].mxu0 %vm203_vm0, %v5306_v50 }
  0x83   : > { %4648 = vmatprep.mubr.msk.f32.mxu0 %vm203_vm0, %v5342_v62  ;;  %v5987_v39 = vsel %vm573_vm1, %v649_v52, %v650_v3  ;;  %v5996_v0 = vsel %vm573_vm1, %v650_v3, %v652_v28  ;;  %v4827_v52 = vpack.c.bf16 %v3756_v13, %v3755_v38  ;;  %v6538_v3 = vld [vmem:[#allocation21_spill] sm:$0xff]  ;;  %v6539_v28 = vld [vmem:[#allocation15_spill] sm:$0xff]  ;;  %v6543_v13 = vld [vmem:[#allocation18_spill] sm:$0xff] }
  0x84   : > { %4393 = vmatmul.mubr.msk.f32.gmra.mrb[22].mxu1 %vm203_vm0, %v5930_v27  ;;  %v6541_v38 = vld [vmem:[#allocation17_spill] sm:$0xff] }
  0x85   : > { %4395 = vmatprep.mubr.msk.f32.mxu1 %vm203_vm0, %v5936_v46 }
  0x86   : > { %4649 = vmatmul.mubr.msk.f32.gmra.mrb[6].mxu0 %vm203_vm0, %v5345_v63 }
  0x87   : > { %4651 = vmatprep.mubr.msk.f32.mxu0 %vm203_vm0, %v5371_v8 }
  0x88   : > { %4396 = vmatmul.mubr.msk.f32.gmra.mrb[24].mxu1 %vm203_vm0, %v5947_v25 }
  0x89   : > { %4398 = vmatprep.mubr.msk.f32.mxu1 %vm203_vm0, %v5953_v37 }
  0x8a   : > { %4652 = vmatmul.mubr.msk.f32.gmra.mrb[8].mxu0 %vm203_vm0, %v5374_v9 }
  0x8b   : > { %4654 = vmatprep.mubr.msk.f32.mxu0 %vm203_vm0, %v5398_v17 }
  0x8c   : > { %4399 = vmatmul.mubr.msk.f32.gmra.mrb[26].mxu1 %vm203_vm0, %v5964_v32 }
  0x8d   : > { %4401 = vmatprep.mubr.msk.f32.mxu1 %vm203_vm0, %v5970_v7 }
  0x8e   : > { %4655 = vmatmul.mubr.msk.f32.gmra.mrb[10].mxu0 %vm203_vm0, %v5401_v18 }
  0x8f   : > { %4657 = vmatprep.mubr.msk.f32.mxu0 %vm203_vm0, %v5424_v33 }
  0x90   : > { %4402 = vmatmul.mubr.msk.f32.gmra.mrb[28].mxu1 %vm203_vm0, %v5981_v20 }
  0x91   : > { %4404 = vmatprep.mubr.msk.f32.mxu1 %vm203_vm0, %v5987_v39 }
  0x92   : > { %4658 = vmatmul.mubr.msk.f32.gmra.mrb[12].mxu0 %vm203_vm0, %v5427_v34 }
  0x93   : > { %4660 = vmatprep.mubr.msk.f32.mxu0 %vm203_vm0, %v5492_v14 }
  0x94   : > { %4405 = vmatmul.mubr.msk.f32.gmra.mrb[30].mxu1 %vm203_vm0, %v5996_v0 }
  0x95   : > { %4415 = vmatprep.mubr.msk.f32.mxu1 %vm203_vm0, %v6537_v48  ;;  %v6540_v48 = vld [vmem:[#allocation16_spill] sm:$0xff] }
  0x96   : > { %4661 = vmatmul.mubr.msk.f32.gmra.mrb[14].mxu0 %vm203_vm0, %v5510_v44 }
  0x97   : > { %4663 = vmatprep.mubr.msk.f32.mxu0 %vm203_vm0, %v5521_v54 }
  0x98   : > { %4416 = vmatmul.mubr.msk.f32.vlgmr.msra.gmra.mrb[0].mxu1 %vm203_vm0, %v6538_v3  ;;  %v6544_v3 = vld [vmem:[#allocation19_spill] sm:$0xff] }
  0x99   : > { %4826 = vmatpush3.bf16.msra.mxu1 %v5730_v11  ;;  %4418 = vmatprep.mubr.msk.f32.mxu1 %vm203_vm0, %v6539_v28  ;;  %v6542_v11 = vld [vmem:[#allocation3_spill] sm:$0xff]  ;;  %v6546_v28 = vld [vmem:[#allocation22_spill] sm:$0xff] }
  0x9a   : > { %4664 = vmatmul.mubr.msk.f32.gmra.mrb[16].mxu0 %vm203_vm0, %v5545_v43  ;;  %4828 = vmatprep.subr.bf16.mxu1 %v4827_v52 }
  0x9b   : > { %4666 = vmatprep.mubr.msk.f32.mxu0 %vm203_vm0, %v5551_v23 }
  0x9c   : > { %4419 = vmatmul.mubr.msk.f32.gmra.mrb[2].mxu1 %vm203_vm0, %v6540_v48  ;;  %v6547_v48 = vld [vmem:[#allocation24_spill] sm:$0xff] }
  0x9d   : > { %4421 = vmatprep.mubr.msk.f32.mxu1 %vm203_vm0, %v6541_v38  ;;  %4830 = vmatpush3.bf16.msra.mxu1 %v4827_v52  ;;  %v6545_v52 = vld [vmem:[#allocation20_spill] sm:$0xff] }
  0x9e   : > { %4667 = vmatmul.mubr.msk.f32.gmra.mrb[18].mxu0 %vm203_vm0, %v5575_v60  ;;  %4871 = vmatprep.subr.bf16.mxu1 %v6542_v11 }
  0x9f   : > { %4669 = vmatprep.mubr.msk.f32.mxu0 %vm203_vm0, %v5580_v42  ;;  %v6550_v42 = vld [vmem:[#allocation29_spill] sm:$0xff] }
  0xa0   : > { %4422 = vmatmul.mubr.msk.f32.gmra.mrb[4].mxu1 %vm203_vm0, %v6543_v13 }
  0xa1   : > { %4424 = vmatprep.mubr.msk.f32.mxu1 %vm203_vm0, %v6544_v3 }
  0xa2   : > { %4670 = vmatmul.mubr.msk.f32.gmra.mrb[20].mxu0 %vm203_vm0, %v5598_v26  ;;  %v6548_v26 = vld [vmem:[#allocation25_spill] sm:$0xff] }
  0xa3   : > { %4672 = vmatprep.mubr.msk.f32.mxu0 %vm203_vm0, %v5603_v6  ;;  %v6549_v6 = vld [vmem:[#allocation28_spill] sm:$0xff] }
  0xa4   : > { %4425 = vmatmul.mubr.msk.f32.gmra.mrb[6].mxu1 %vm203_vm0, %v6545_v52 }
  0xa5   : > { %4427 = vmatprep.mubr.msk.f32.mxu1 %vm203_vm0, %v6546_v28 }
  0xa6   : > { %4673 = vmatmul.mubr.msk.f32.gmra.mrb[22].mxu0 %vm203_vm0, %v5621_v5  ;;  %v6069_v5 = vld [vmem:[%s5221_s13 + $0x198] sm:$0xff] }
  0xa7   : > { %4675 = vmatprep.mubr.msk.f32.mxu0 %vm203_vm0, %v5626_v16  ;;  %v6551_v16 = vld [vmem:[#allocation32_spill] sm:$0xff] }
  0xa8   : > { %4428 = vmatmul.mubr.msk.f32.gmra.mrb[8].mxu1 %vm203_vm0, %v6547_v48 }
  0xa9   : > { %4430 = vmatprep.mubr.msk.f32.mxu1 %vm203_vm0, %v6548_v26 }
  0xaa   : > { %4676 = vmatmul.mubr.msk.f32.gmra.mrb[24].mxu0 %vm203_vm0, %v5644_v36  ;;  %v6552_v36 = vld [vmem:[#allocation33_spill] sm:$0xff] }
  0xab   : > { %4678 = vmatprep.mubr.msk.f32.mxu0 %vm203_vm0, %v5651_v4  ;;  %v6078_v4 = vld [vmem:[%s5221_s13 + $0x1a0] sm:$0xff] }
  0xac   : > { %4431 = vmatmul.mubr.msk.f32.gmra.mrb[10].mxu1 %vm203_vm0, %v6549_v6 }
  0xad   : > { %4433 = vmatprep.mubr.msk.f32.mxu1 %vm203_vm0, %v6550_v42  ;;  %v6554_v42 = vld [vmem:[#allocation37_spill] sm:$0xff] }
  0xae   : > { %4679 = vmatmul.mubr.msk.f32.gmra.mrb[26].mxu0 %vm203_vm0, %v5672_v58  ;;  %v6553_v58 = vld [vmem:[#allocation36_spill] sm:$0xff] }
  0xaf   : > { %4681 = vmatprep.mubr.msk.f32.mxu0 %vm203_vm0, %v5812_v30 }
  0xb0   : > { %4434 = vmatmul.mubr.msk.f32.gmra.mrb[12].mxu1 %vm203_vm0, %v6551_v16  ;;  %v3935_v16 = vld [vmem:[%s6410_s1 + $0x110] sm:$0xff] }
  0xb1   : > { %4436 = vmatprep.mubr.msk.f32.mxu1 %vm203_vm0, %v6552_v36  ;;  %v3936_v36 = vld [vmem:[%s6410_s1 + $0x118] sm:$0xff] }
  0xb2   : > { %4682 = vmatmul.mubr.msk.f32.gmra.mrb[28].mxu0 %vm203_vm0, %v5815_v56 }
  0xb3   : > { %4684 = vmatprep.mubr.msk.f32.mxu0 %vm203_vm0, %v6069_v5 }
  0xb4   : > { %4437 = vmatmul.mubr.msk.f32.gmra.mrb[14].mxu1 %vm203_vm0, %v6553_v58  ;;  %v4867_v58 = vpack.c.bf16 %v3936_v36, %v3935_v16  ;;  %v6557_v36 = vld [vmem:[#allocation12_spill] sm:$0xff]  ;;  %v6559_v16 = vld [vmem:[#allocation42_spill] sm:$0xff] }
  0xb5   : > { %4439 = vmatprep.mubr.msk.f32.mxu1 %vm203_vm0, %v6554_v42 }
  0xb6   : > { %4685 = vmatmul.mubr.msk.f32.gmra.mrb[30].mxu0 %vm203_vm0, %v6078_v4 }
  0xb7   : > { %4695 = vmatprep.mubr.msk.f32.mxu0 %vm203_vm0, %v5299_v47  ;;  %v6555_v47 = vld [vmem:[#allocation40_spill] sm:$0xff] }
  0xb8   : > { %4440 = vmatmul.mubr.msk.f32.gmra.mrb[16].mxu1 %vm203_vm0, %v5681_v31  ;;  %v6556_v31 = vld [vmem:[#allocation11_spill] sm:$0xff] }
  0xb9   : > { %4442 = vmatprep.mubr.msk.f32.mxu1 %vm203_vm0, %v5693_v29 }
  0xba   : > { %4696 = vmatmul.mubr.msk.f32.vlgmr.msra.gmra.mrb[0].mxu0 %vm203_vm0, %v5324_v55  ;;  %v6558_v55 = vld [vmem:[#allocation41_spill] sm:$0xff] }
  0xbb   : > { %4866 = vmatpush3.bf16.msra.mxu0 %v5907_v22  ;;  %4698 = vmatprep.mubr.msk.f32.mxu0 %vm203_vm0, %v5330_v57  ;;  %v6560_v57 = vld [vmem:[#allocation13_spill] sm:$0xff]  ;;  %v6561_v22 = vld [vmem:[#allocation14_spill] sm:$0xff] }
  0xbc   : > { %4443 = vmatmul.mubr.msk.f32.gmra.mrb[18].mxu1 %vm203_vm0, %v5707_v21  ;;  %4868 = vmatprep.subr.bf16.mxu0 %v4867_v58 }
  0xbd   : > { %4445 = vmatprep.mubr.msk.f32.mxu1 %vm203_vm0, %v6555_v47  ;;  %v6562_v47 = vld [vmem:[#allocation43_spill] sm:$0xff] }
  0xbe   : > { %4699 = vmatmul.mubr.msk.f32.gmra.mrb[2].mxu0 %vm203_vm0, %v6556_v31  ;;  %v6563_v31 = vld [vmem:[#allocation44_spill] sm:$0xff] }
  0xbf   : > { %4701 = vmatprep.mubr.msk.f32.mxu0 %vm203_vm0, %v6557_v36  ;;  %4870 = vmatpush3.bf16.msra.mxu0 %v4867_v58  ;;  %v6564_v58 = vld [vmem:[#allocation45_spill] sm:$0xff]  ;;  %v6565_v36 = vld [vmem:[#allocation46_spill] sm:$0xff] }
  0xc0   : > { %4446 = vmatmul.mubr.msk.f32.gmra.mrb[20].mxu1 %vm203_vm0, %v6558_v55 }
  0xc1   : > { %4448 = vmatprep.mubr.msk.f32.mxu1 %vm203_vm0, %v6559_v16 }
  0xc2   : > { %4702 = vmatmul.mubr.msk.f32.gmra.mrb[4].mxu0 %vm203_vm0, %v6560_v57  ;;  %v6573_v57 = vld [vmem:[#allocation8_spill] sm:$0xff] }
  0xc3   : > { %4704 = vmatprep.mubr.msk.f32.mxu0 %vm203_vm0, %v6561_v22  ;;  %v6574_v22 = vld [vmem:[#allocation9_spill] sm:$0xff] }
  0xc4   : > { %4449 = vmatmul.mubr.msk.f32.gmra.mrb[22].mxu1 %vm203_vm0, %v6562_v47 }
  0xc5   : > { %4451 = vmatprep.mubr.msk.f32.mxu1 %vm203_vm0, %v6563_v31 }
  0xc6   : > { %4705 = vmatmul.mubr.msk.f32.gmra.mrb[6].mxu0 %vm203_vm0, %v5408_v19  ;;  %v6566_v19 = vld [vmem:[#allocation47_spill] sm:$0xff] }
  0xc7   : > { %4707 = vmatprep.mubr.msk.f32.mxu0 %vm203_vm0, %v5414_v24  ;;  %v6567_v24 = vld [vmem:[#allocation48_spill] sm:$0xff] }
  0xc8   : > { %4452 = vmatmul.mubr.msk.f32.gmra.mrb[24].mxu1 %vm203_vm0, %v6564_v58 }
  0xc9   : > { %4454 = vmatprep.mubr.msk.f32.mxu1 %vm203_vm0, %v6565_v36 }
  0xca   : > { %4708 = vmatmul.mubr.msk.f32.gmra.mrb[8].mxu0 %vm203_vm0, %v5434_v35  ;;  %v6568_v35 = vld [vmem:[#allocation50_spill] sm:$0xff] }
  0xcb   : > { %4710 = vmatprep.mubr.msk.f32.mxu0 %vm203_vm0, %v5440_v40  ;;  %v6569_v40 = vld [vmem:[#allocation5_spill] sm:$0xff] }
  0xcc   : > { %4455 = vmatmul.mubr.msk.f32.gmra.mrb[26].mxu1 %vm203_vm0, %v5796_v45 }
  0xcd   : > { %4457 = vmatprep.mubr.msk.f32.mxu1 %vm203_vm0, %v5802_v2 }
  0xce   : > { %4711 = vmatmul.mubr.msk.f32.gmra.mrb[10].mxu0 %vm203_vm0, %v5454_v51  ;;  %v6570_v51 = vld [vmem:[#allocation6_spill] sm:$0xff] }
  0xcf   : > { %4713 = vmatprep.mubr.msk.f32.mxu0 %vm203_vm0, %v5460_v53  ;;  %v6571_v53 = vld [vmem:[#allocation7_spill] sm:$0xff] }
  0xd0   : > { %4458 = vmatmul.mubr.msk.f32.gmra.mrb[28].mxu1 %vm203_vm0, %v6566_v19 }
  0xd1   : > { %4460 = vmatprep.mubr.msk.f32.mxu1 %vm203_vm0, %v6567_v24 }
  0xd2   : > { %4714 = vmatmul.mubr.msk.f32.gmra.mrb[12].mxu0 %vm203_vm0, %v5472_v59  ;;  %v6572_v59 = vld [vmem:[#allocation4_spill] sm:$0xff] }
  0xd3   : > { %4716 = vmatprep.mubr.msk.f32.mxu0 %vm203_vm0, %v5875_v1 }
  0xd4   : > { %4461 = vmatmul.mubr.msk.f32.gmra.mrb[30].mxu1 %vm203_vm0, %v6568_v35 }
  0xd5   : > { %4471 = vmatprep.mubr.msk.f32.mxu1 %vm203_vm0, %v6569_v40  ;;  %v2852_v40 = vrot.slane %v6078_v4, 1 }
  0xd6   : > { %4717 = vmatmul.mubr.msk.f32.gmra.mrb[14].mxu0 %vm203_vm0, %v5886_v12 }
  0xd7   : > { %4719 = vmatprep.mubr.msk.f32.mxu0 %vm203_vm0, %v5898_v15 }
  0xd8   : > { %4472 = vmatmul.mubr.msk.f32.vlgmr.msra.gmra.mrb[0].mxu1 %vm203_vm0, %v6570_v51  ;;  %v6213_v51 = vld [vmem:[%s5221_s13 + $0x1a8] sm:$0x3]  ;;  %s3647_s13 = sshll.u32 %s5169_s10, 5 }
  0xd9   : > { %4873 = vmatpush3.bf16.msra.mxu1 %v6542_v11  ;;  %4474 = vmatprep.mubr.msk.f32.mxu1 %vm203_vm0, %v6571_v53  ;;  %v2851_v11 = vrot.slane %v6069_v5, 1  ;;  %v2854_v53 = vrot.slane %v6213_v51, 1  ;;  %p140_p4 = scmp.lt.s32.totalorder %s3647_s13, 63 }
  0xda   : > { %4720 = vmatmul.mubr.msk.f32.gmra.mrb[16].mxu0 %vm203_vm0, %v5912_v10  ;;  %4872 = vmatprep.subr.bf16.mxu1 %v6572_v59 }
  0xdb   : > { %4722 = vmatprep.mubr.msk.f32.mxu0 %vm203_vm0, %v5918_v61  ;;  %s6593_s13 = smov (!%p140_p4, %s3647_s13), 63 }
  0xdc   : > { %4475 = vmatmul.mubr.msk.f32.gmra.mrb[2].mxu1 %vm203_vm0, %v6573_v57  ;;  %s3648_s11 = sshll.u32 %s6593_s13, 3 }
  0xdd   : > { %4477 = vmatprep.mubr.msk.f32.mxu1 %vm203_vm0, %v6574_v22  ;;  %4874 = vmatpush3.bf16.msra.mxu1 %v6572_v59  ;;  %s6372_s15 = scalar_lea.vmem %s6411_s2, %s3648_s11 }
  0xde   : > { %4723 = vmatmul.mubr.msk.f32.gmra.mrb[18].mxu0 %vm203_vm0, %v5930_v27 }
  0xdf   : > { %4725 = vmatprep.mubr.msk.f32.mxu0 %vm203_vm0, %v5936_v46 }
  0xe0   : > { %4478 = vmatmul.mubr.msk.f32.gmra.mrb[4].mxu1 %vm203_vm0, %v5279_v41  ;;  %v1848_v41 = vrot.slane %v5812_v30, 1 }
  0xe1   : > { %4480 = vmatprep.mubr.msk.f32.mxu1 %vm203_vm0, %v5303_v49  ;;  %v1849_v49 = vrot.slane %v5815_v56, 1 }
  0xe2   : > { %4726 = vmatmul.mubr.msk.f32.gmra.mrb[20].mxu0 %vm203_vm0, %v5947_v25 }
  0xe3   : > { %4728 = vmatprep.mubr.msk.f32.mxu0 %vm203_vm0, %v5953_v37 }
  0xe4   : > { %4481 = vmatmul.mubr.msk.f32.gmra.mrb[6].mxu1 %vm203_vm0, %v5306_v50  ;;  %v6575_v50 = vld [vmem:[#allocation49_spill] sm:$0xff] }
  0xe5   : > { %4483 = vmatprep.mubr.msk.f32.mxu1 %vm203_vm0, %v5342_v62  ;;  %v1851_v62 = vrot.slane %v6575_v50, 1 }
  0xe6   : > { %4729 = vmatmul.mubr.msk.f32.gmra.mrb[22].mxu0 %vm203_vm0, %v5964_v32 }
  0xe7   : > { %4731 = vmatprep.mubr.msk.f32.mxu0 %vm203_vm0, %v5970_v7 }
  0xe8   : > { %4484 = vmatmul.mubr.msk.f32.gmra.mrb[8].mxu1 %vm203_vm0, %v5345_v63  ;;  %v6210_v63 = vsel %vm573_vm1, %v1848_v41, %v1849_v49 }
  0xe9   : > { %4486 = vmatprep.mubr.msk.f32.mxu1 %vm203_vm0, %v5371_v8  ;;  %v6222_v8 = vsel %vm573_vm1, %v1849_v49, %v1851_v62 }
  0xea   : > { %4732 = vmatmul.mubr.msk.f32.gmra.mrb[24].mxu0 %vm203_vm0, %v5981_v20 }
  0xeb   : > { %4734 = vmatprep.mubr.msk.f32.mxu0 %vm203_vm0, %v5987_v39 }
  0xec   : > { %4487 = vmatmul.mubr.msk.f32.gmra.mrb[10].mxu1 %vm203_vm0, %v5374_v9  ;;  %v2853_v9 = vsel %vm573_vm1, %v2851_v11, %v2852_v40 }
  0xed   : > { %4489 = vmatprep.mubr.msk.f32.mxu1 %vm203_vm0, %v5398_v17  ;;  %v2855_v17 = vsel %vm573_vm1, %v2852_v40, %v2854_v53 }
  0xee   : > { %4735 = vmatmul.mubr.msk.f32.gmra.mrb[26].mxu0 %vm203_vm0, %v5996_v0 }
  0xef   : > { %4737 = vmatprep.mubr.msk.f32.mxu0 %vm203_vm0, %v6210_v63 }
  0xf0   : > { %4490 = vmatmul.mubr.msk.f32.gmra.mrb[12].mxu1 %vm203_vm0, %v5401_v18  ;;  %v6576_v18 = vld [vmem:[#allocation23_spill] sm:$0xff] }
  0xf1   : > { %4492 = vmatprep.mubr.msk.f32.mxu1 %vm203_vm0, %v5424_v33  ;;  %v6577_v33 = vld [vmem:[#allocation26_spill] sm:$0xff] }
  0xf2   : > { %4738 = vmatmul.mubr.msk.f32.gmra.mrb[28].mxu0 %vm203_vm0, %v6222_v8 }
  0xf3   : > { %4740 = vmatprep.mubr.msk.f32.mxu0 %vm203_vm0, %v2853_v9 }
  0xf4   : > { %4493 = vmatmul.mubr.msk.f32.gmra.mrb[14].mxu1 %vm203_vm0, %v5427_v34  ;;  %v6578_v34 = vld [vmem:[#allocation27_spill] sm:$0xff] }
  0xf5   : > { %4495 = vmatprep.mubr.msk.f32.mxu1 %vm203_vm0, %v5492_v14  ;;  %v6579_v14 = vld [vmem:[#allocation29_spill] sm:$0xff] }
  0xf6   : > { %4741 = vmatmul.mubr.msk.f32.gmra.mrb[30].mxu0 %vm203_vm0, %v2855_v17 }
  0xf7   : > { %4751 = vmatprep.mubr.msk.f32.mxu0 %vm203_vm0, %v6541_v38  ;;  %v6587_v38 = vld [vmem:[#allocation38_spill] sm:$0xff] }
  0xf8   : > { %4496 = vmatmul.mubr.msk.f32.gmra.mrb[16].mxu1 %vm203_vm0, %v5510_v44  ;;  %v6580_v44 = vld [vmem:[#allocation30_spill] sm:$0xff] }
  0xf9   : > { %4498 = vmatprep.mubr.msk.f32.mxu1 %vm203_vm0, %v5521_v54  ;;  %v6581_v54 = vld [vmem:[#allocation31_spill] sm:$0xff] }
  0xfa   : > { %4752 = vmatmul.mubr.msk.f32.vlgmr.msra.gmra.mrb[0].mxu0 %vm203_vm0, %v6543_v13  ;;  %v6588_v13 = vld [vmem:[#allocation39_spill] sm:$0xff] }
  0xfb   : > { %4754 = vmatprep.mubr.msk.f32.mxu0 %vm203_vm0, %v6544_v3 }
  0xfc   : > { %4499 = vmatmul.mubr.msk.f32.gmra.mrb[18].mxu1 %vm203_vm0, %v5545_v43  ;;  %v6582_v43 = vld [vmem:[#allocation32_spill] sm:$0xff] }
  0xfd   : > { %4501 = vmatprep.mubr.msk.f32.mxu1 %vm203_vm0, %v5551_v23  ;;  %v6584_v23 = vld [vmem:[#allocation34_spill] sm:$0xff] }
  0xfe   : > { %4755 = vmatmul.mubr.msk.f32.gmra.mrb[2].mxu0 %vm203_vm0, %v6545_v52 }
  0xff   : > { %4757 = vmatprep.mubr.msk.f32.mxu0 %vm203_vm0, %v6546_v28 }
 0x100   : > { %4502 = vmatmul.mubr.msk.f32.gmra.mrb[20].mxu1 %vm203_vm0, %v5575_v60  ;;  %v6585_v60 = vld [vmem:[#allocation35_spill] sm:$0xff] }
 0x101   : > { %4504 = vmatprep.mubr.msk.f32.mxu1 %vm203_vm0, %v6576_v18 }
 0x102   : > { %4758 = vmatmul.mubr.msk.f32.gmra.mrb[4].mxu0 %vm203_vm0, %v6547_v48 }
 0x103   : > { %4760 = vmatprep.mubr.msk.f32.mxu0 %vm203_vm0, %v6548_v26  ;;  %v6583_v26 = vld [vmem:[#allocation33_spill] sm:$0xff] }
 0x104   : > { %4505 = vmatmul.mubr.msk.f32.gmra.mrb[22].mxu1 %vm203_vm0, %v6577_v33 }
 0x105   : > { %4507 = vmatprep.mubr.msk.f32.mxu1 %vm203_vm0, %v6578_v34 }
 0x106   : > { %4761 = vmatmul.mubr.msk.f32.gmra.mrb[6].mxu0 %vm203_vm0, %v6549_v6  ;;  %v6586_v6 = vld [vmem:[#allocation36_spill] sm:$0xff] }
 0x107   : > { %4763 = vmatprep.mubr.msk.f32.mxu0 %vm203_vm0, %v6579_v14 }
 0x108   : > { %4508 = vmatmul.mubr.msk.f32.gmra.mrb[24].mxu1 %vm203_vm0, %v6580_v44 }
 0x109   : > { %4510 = vmatprep.mubr.msk.f32.mxu1 %vm203_vm0, %v6581_v54 }
 0x10a   : > { %4764 = vmatmul.mubr.msk.f32.gmra.mrb[8].mxu0 %vm203_vm0, %v6582_v43 }
 0x10b   : > { %4766 = vmatprep.mubr.msk.f32.mxu0 %vm203_vm0, %v6583_v26 }
 0x10c   : > { %4511 = vmatmul.mubr.msk.f32.gmra.mrb[26].mxu1 %vm203_vm0, %v6584_v23 }
 0x10d   : > { %4513 = vmatprep.mubr.msk.f32.mxu1 %vm203_vm0, %v6585_v60 }
 0x10e   : > { %4767 = vmatmul.mubr.msk.f32.gmra.mrb[10].mxu0 %vm203_vm0, %v6586_v6 }
 0x10f   : > { %4769 = vmatprep.mubr.msk.f32.mxu0 %vm203_vm0, %v6554_v42  ;;  %v6589_v42 = vld [vmem:[#allocation40_spill] sm:$0xff] }
 0x110   : > { %4514 = vmatmul.mubr.msk.f32.gmra.mrb[28].mxu1 %vm203_vm0, %v6587_v38 }
 0x111   : > { %4516 = vmatprep.mubr.msk.f32.mxu1 %vm203_vm0, %v5812_v30 }
 0x112   : > { %4770 = vmatmul.mubr.msk.f32.gmra.mrb[12].mxu0 %vm203_vm0, %v6588_v13 }
 0x113   : > { %4772 = vmatprep.mubr.msk.f32.mxu0 %vm203_vm0, %v5693_v29  ;;  %v3186_v29 = vrot.slane %v6069_v5, 2 }
 0x114   : > { %4517 = vmatmul.mubr.msk.f32.gmra.mrb[30].mxu1 %vm203_vm0, %v5815_v56 }
 0x115   : > { %4551 = vmatprep.mubr.msk.f32.mxu1 %vm203_vm0, %v5875_v1 }
 0x116   : > { %4773 = vmatmul.mubr.msk.f32.gmra.mrb[14].mxu0 %vm203_vm0, %v5707_v21  ;;  %v3187_v21 = vrot.slane %v6078_v4, 2  ;;  %v6591_v4 = vld [vmem:[#allocation52_spill] sm:$0xff] }
 0x117   : > { %4775 = vmatprep.mubr.msk.f32.mxu0 %vm203_vm0, %v6589_v42 }
 0x118   : > { %4552 = vmatmul.mubr.msk.f32.vlgmr.msra.gmra.mrb[16].mxu1 %vm203_vm0, %v5886_v12  ;;  %v3188_v5 = vsel %vm1044_vm2, %v3186_v29, %v3187_v21 }
 0x119   : > { %4554 = vmatprep.mubr.msk.f32.mxu1 %vm203_vm0, %v5898_v15 }
 0x11a   : > { %4776 = vmatmul.mubr.msk.f32.gmra.mrb[16].mxu0 %vm203_vm0, %v6558_v55 }
 0x11b   : > { %4778 = vmatprep.mubr.msk.f32.mxu0 %vm203_vm0, %v6559_v16 }
 0x11c   : > { %4555 = vmatmul.mubr.msk.f32.gmra.mrb[18].mxu1 %vm203_vm0, %v5912_v10 }
 0x11d   : > { %4557 = vmatprep.mubr.msk.f32.mxu1 %vm203_vm0, %v5918_v61 }
 0x11e   : > { %4779 = vmatmul.mubr.msk.f32.gmra.mrb[18].mxu0 %vm203_vm0, %v6562_v47 }
 0x11f   : > { %4781 = vmatprep.mubr.msk.f32.mxu0 %vm203_vm0, %v6563_v31 }
 0x120   : > { %4558 = vmatmul.mubr.msk.f32.gmra.mrb[20].mxu1 %vm203_vm0, %v5930_v27 }
 0x121   : > { %4560 = vmatprep.mubr.msk.f32.mxu1 %vm203_vm0, %v5936_v46 }
 0x122   : > { %4782 = vmatmul.mubr.msk.f32.gmra.mrb[20].mxu0 %vm203_vm0, %v6564_v58 }
 0x123   : > { %4784 = vmatprep.mubr.msk.f32.mxu0 %vm203_vm0, %v6565_v36 }
 0x124   : > { %4561 = vmatmul.mubr.msk.f32.gmra.mrb[22].mxu1 %vm203_vm0, %v5947_v25 }
 0x125   : > { %4563 = vmatprep.mubr.msk.f32.mxu1 %vm203_vm0, %v5953_v37 }
 0x126   : > { %4785 = vmatmul.mubr.msk.f32.gmra.mrb[22].mxu0 %vm203_vm0, %v5796_v45  ;;  %v6590_v45 = vld [vmem:[#allocation51_spill] sm:$0xff] }
 0x127   : > { %4787 = vmatprep.mubr.msk.f32.mxu0 %vm203_vm0, %v5802_v2  ;;  %v3189_v2 = vrot.slane %v6213_v51, 2 }
 0x128   : > { %4564 = vmatmul.mubr.msk.f32.gmra.mrb[24].mxu1 %vm203_vm0, %v5964_v32 }
 0x129   : > { %4566 = vmatprep.mubr.msk.f32.mxu1 %vm203_vm0, %v5970_v7  ;;  %v3190_v30 = vsel %vm1044_vm2, %v3187_v21, %v3189_v2 }
 0x12a   : > { %4788 = vmatmul.mubr.msk.f32.gmra.mrb[24].mxu0 %vm203_vm0, %v6566_v19 }
 0x12b   : > { %4790 = vmatprep.mubr.msk.f32.mxu0 %vm203_vm0, %v6567_v24 }
 0x12c   : > { %4567 = vmatmul.mubr.msk.f32.gmra.mrb[26].mxu1 %vm203_vm0, %v5981_v20 }
 0x12d   : > { %4569 = vmatprep.mubr.msk.f32.mxu1 %vm203_vm0, %v5987_v39 }
 0x12e   : > { %4791 = vmatmul.mubr.msk.f32.gmra.mrb[26].mxu0 %vm203_vm0, %v6568_v35 }
 0x12f   : > { %4793 = vmatprep.mubr.msk.f32.mxu0 %vm203_vm0, %v6590_v45 }
 0x130   : > { %4570 = vmatmul.mubr.msk.f32.gmra.mrb[28].mxu1 %vm203_vm0, %v5996_v0 }
 0x131   : > { %4572 = vmatprep.mubr.msk.f32.mxu1 %vm203_vm0, %v6210_v63 }
 0x132   : > { %4794 = vmatmul.mubr.msk.f32.gmra.mrb[28].mxu0 %vm203_vm0, %v6591_v4 }
 0x133   : > { %4796 = vmatprep.mubr.msk.f32.mxu0 %vm203_vm0, %v3188_v5 }
 0x134   : > { %4573 = vmatmul.mubr.msk.f32.gmra.mrb[30].mxu1 %vm203_vm0, %v6222_v8 }
 0x136   : > { %4797 = vmatmul.mubr.msk.f32.gmra.mrb[30].mxu0 %vm203_vm0, %v3190_v30 }
 0x1ab   : > { %v4473_v56 = vpop.f32.mrb[0].mxu1 }
 0x1ac   : > { %v1592_v12 = vpop.f32.mrb[1].mxu1 }
 0x1af   : > { %v4476_v1 = vpop.f32.mrb[2].mxu1 }
 0x1b0   : > { %v1602_v15 = vpop.f32.mrb[3].mxu1 }
 0x1b3   : > { %v4479_v10 = vpop.f32.mrb[4].mxu1 }
 0x1b4   : > { %v1612_v61 = vpop.f32.mrb[5].mxu1 }
 0x1b7   : > { %v4482_v27 = vpop.f32.mrb[6].mxu1 }
 0x1b8   : > { %v1622_v46 = vpop.f32.mrb[7].mxu1 }
 0x1bb   : > { %v4485_v25 = vpop.f32.mrb[8].mxu1 }
 0x1bc   : > { %v1632_v37 = vpop.f32.mrb[9].mxu1 }
 0x1bf   : > { %v4488_v32 = vpop.f32.mrb[10].mxu1 }
 0x1c0   : > { %v1642_v7 = vpop.f32.mrb[11].mxu1 }
 0x1c3   : > { %v4491_v20 = vpop.f32.mrb[12].mxu1 }
 0x1c4   : > { %v1652_v39 = vpop.f32.mrb[13].mxu1 }
 0x1c7   : > { %v4494_v0 = vpop.f32.mrb[14].mxu1 }
 0x1c8   : > { %v1662_v3 = vpop.f32.mrb[15].mxu1 }
 0x1cd   : > { %v4753_v52 = vpop.f32.mrb[0].mxu0 }
 0x1ce   : > { %v4875_v28 = vadd.f32 %v4753_v52, %v4473_v56  ;;  %v3266_v48 = vpop.f32.mrb[1].mxu0 }
 0x1cf   : > { %v4876_v47 = vadd.f32 %v3266_v48, %v1592_v12 }
 0x1d0   : > { %3554 = vst [vmem:[%s6372_s15 + $0x8] sm:$0xff] %v4875_v28 }
 0x1d1   : > { %3553 = vst [vmem:[%s6372_s15] sm:$0xff] %v4876_v47  ;;  %v4756_v55 = vpop.f32.mrb[2].mxu0 }
 0x1d2   : > { %v4877_v16 = vadd.f32 %v4756_v55, %v4476_v1  ;;  %v3276_v31 = vpop.f32.mrb[3].mxu0 }
 0x1d3   : > { %v4878_v58 = vadd.f32 %v3276_v31, %v1602_v15 }
 0x1d4   : > { %3556 = vst [vmem:[%s6372_s15 + $0x18] sm:$0xff] %v4877_v16 }
 0x1d5   : > { %3555 = vst [vmem:[%s6372_s15 + $0x10] sm:$0xff] %v4878_v58  ;;  %v4759_v36 = vpop.f32.mrb[4].mxu0 }
 0x1d6   : > { %v4879_v19 = vadd.f32 %v4759_v36, %v4479_v10  ;;  %v3286_v24 = vpop.f32.mrb[5].mxu0 }
 0x1d7   : > { %v4880_v35 = vadd.f32 %v3286_v24, %v1612_v61 }
 0x1d8   : > { %3558 = vst [vmem:[%s6372_s15 + $0x28] sm:$0xff] %v4879_v19 }
 0x1d9   : > { %3557 = vst [vmem:[%s6372_s15 + $0x20] sm:$0xff] %v4880_v35  ;;  %v4762_v59 = vpop.f32.mrb[6].mxu0 }
 0x1da   : > { %v4881_v57 = vadd.f32 %v4762_v59, %v4482_v27  ;;  %v3296_v22 = vpop.f32.mrb[7].mxu0 }
 0x1db   : > { %v4882_v41 = vadd.f32 %v3296_v22, %v1622_v46 }
 0x1dc   : > { %3560 = vst [vmem:[%s6372_s15 + $0x38] sm:$0xff] %v4881_v57 }
 0x1dd   : > { %3559 = vst [vmem:[%s6372_s15 + $0x30] sm:$0xff] %v4882_v41  ;;  %v4765_v49 = vpop.f32.mrb[8].mxu0 }
 0x1de   : > { %v4883_v50 = vadd.f32 %v4765_v49, %v4485_v25  ;;  %v3306_v62 = vpop.f32.mrb[9].mxu0 }
 0x1df   : > { %v4884_v11 = vadd.f32 %v3306_v62, %v1632_v37 }
 0x1e0   : > { %3562 = vst [vmem:[%s6372_s15 + $0x48] sm:$0xff] %v4883_v50 }
 0x1e1   : > { %3561 = vst [vmem:[%s6372_s15 + $0x40] sm:$0xff] %v4884_v11  ;;  %v4768_v40 = vpop.f32.mrb[10].mxu0 }
 0x1e2   : > { %v4885_v63 = vadd.f32 %v4768_v40, %v4488_v32  ;;  %v3316_v51 = vpop.f32.mrb[11].mxu0 }
 0x1e3   : > { %v4886_v8 = vadd.f32 %v3316_v51, %v1642_v7 }
 0x1e4   : > { %3564 = vst [vmem:[%s6372_s15 + $0x58] sm:$0xff] %v4885_v63 }
 0x1e5   : > { %3563 = vst [vmem:[%s6372_s15 + $0x50] sm:$0xff] %v4886_v8  ;;  %v4771_v53 = vpop.f32.mrb[12].mxu0 }
 0x1e6   : > { %v4887_v9 = vadd.f32 %v4771_v53, %v4491_v20  ;;  %v3326_v17 = vpop.f32.mrb[13].mxu0 }
 0x1e7   : > { %v4888_v18 = vadd.f32 %v3326_v17, %v1652_v39 }
 0x1e8   : > { %3566 = vst [vmem:[%s6372_s15 + $0x68] sm:$0xff] %v4887_v9 }
 0x1e9   : > { %3565 = vst [vmem:[%s6372_s15 + $0x60] sm:$0xff] %v4888_v18  ;;  %v4774_v33 = vpop.f32.mrb[14].mxu0 }
 0x1ea   : > { %v4889_v34 = vadd.f32 %v4774_v33, %v4494_v0  ;;  %v3336_v14 = vpop.f32.mrb[15].mxu0 }
 0x1eb   : > { %v4890_v44 = vadd.f32 %v3336_v14, %v1662_v3  ;;  %v4553_v54 = vpop.f32.mrb[16].mxu1 }
 0x1ec   : > { %3568 = vst [vmem:[%s6372_s15 + $0x78] sm:$0xff] %v4889_v34  ;;  %v2008_v43 = vpop.f32.mrb[17].mxu1 }
 0x1ed   : > { %3567 = vst [vmem:[%s6372_s15 + $0x70] sm:$0xff] %v4890_v44  ;;  %v4777_v26 = vpop.f32.mrb[16].mxu0 }
 0x1ee   : > { %v4891_v23 = vadd.f32 %v4777_v26, %v4553_v54  ;;  %v3346_v60 = vpop.f32.mrb[17].mxu0 }
 0x1ef   : > { %v4892_v6 = vadd.f32 %v3346_v60, %v2008_v43  ;;  %v4556_v38 = vpop.f32.mrb[18].mxu1 }
 0x1f0   : > { %3570 = vst [vmem:[%s6372_s15 + $0x88] sm:$0xff] %v4891_v23  ;;  %v2018_v13 = vpop.f32.mrb[19].mxu1 }
 0x1f1   : > { %3569 = vst [vmem:[%s6372_s15 + $0x80] sm:$0xff] %v4892_v6  ;;  %v4780_v42 = vpop.f32.mrb[18].mxu0 }
 0x1f2   : > { %v4893_v29 = vadd.f32 %v4780_v42, %v4556_v38  ;;  %v3356_v21 = vpop.f32.mrb[19].mxu0 }
 0x1f3   : > { %v4894_v45 = vadd.f32 %v3356_v21, %v2018_v13  ;;  %v4559_v2 = vpop.f32.mrb[20].mxu1 }
 0x1f4   : > { %3572 = vst [vmem:[%s6372_s15 + $0x98] sm:$0xff] %v4893_v29  ;;  %v2028_v5 = vpop.f32.mrb[21].mxu1 }
 0x1f5   : > { %3571 = vst [vmem:[%s6372_s15 + $0x90] sm:$0xff] %v4894_v45  ;;  %v4783_v4 = vpop.f32.mrb[20].mxu0 }
 0x1f6   : > { %v4895_v30 = vadd.f32 %v4783_v4, %v4559_v2  ;;  %v3366_v56 = vpop.f32.mrb[21].mxu0 }
 0x1f7   : > { %v4896_v12 = vadd.f32 %v3366_v56, %v2028_v5  ;;  %v4562_v1 = vpop.f32.mrb[22].mxu1 }
 0x1f8   : > { %3574 = vst [vmem:[%s6372_s15 + $0xa8] sm:$0xff] %v4895_v30  ;;  %v2038_v15 = vpop.f32.mrb[23].mxu1 }
 0x1f9   : > { %3573 = vst [vmem:[%s6372_s15 + $0xa0] sm:$0xff] %v4896_v12  ;;  %v4786_v10 = vpop.f32.mrb[22].mxu0 }
 0x1fa   : > { %v4897_v61 = vadd.f32 %v4786_v10, %v4562_v1  ;;  %v3376_v27 = vpop.f32.mrb[23].mxu0 }
 0x1fb   : > { %v4898_v46 = vadd.f32 %v3376_v27, %v2038_v15  ;;  %v4565_v25 = vpop.f32.mrb[24].mxu1 }
 0x1fc   : > { %3576 = vst [vmem:[%s6372_s15 + $0xb8] sm:$0xff] %v4897_v61  ;;  %v2048_v37 = vpop.f32.mrb[25].mxu1 }
 0x1fd   : > { %3575 = vst [vmem:[%s6372_s15 + $0xb0] sm:$0xff] %v4898_v46  ;;  %v4789_v32 = vpop.f32.mrb[24].mxu0 }
 0x1fe   : > { %v4899_v7 = vadd.f32 %v4789_v32, %v4565_v25  ;;  %v3386_v20 = vpop.f32.mrb[25].mxu0 }
 0x1ff   : > { %v4900_v39 = vadd.f32 %v3386_v20, %v2048_v37  ;;  %v4568_v0 = vpop.f32.mrb[26].mxu1 }
 0x200   : > { %3578 = vst [vmem:[%s6372_s15 + $0xc8] sm:$0xff] %v4899_v7  ;;  %v2058_v3 = vpop.f32.mrb[27].mxu1 }
 0x201   : > { %3577 = vst [vmem:[%s6372_s15 + $0xc0] sm:$0xff] %v4900_v39  ;;  %v4792_v52 = vpop.f32.mrb[26].mxu0 }
 0x202   : > { %v4901_v28 = vadd.f32 %v4792_v52, %v4568_v0  ;;  %v3396_v48 = vpop.f32.mrb[27].mxu0 }
 0x203   : > { %v4902_v47 = vadd.f32 %v3396_v48, %v2058_v3  ;;  %v4571_v55 = vpop.f32.mrb[28].mxu1 }
 0x204   : > { %3580 = vst [vmem:[%s6372_s15 + $0xd8] sm:$0xff] %v4901_v28  ;;  %v2068_v16 = vpop.f32.mrb[29].mxu1 }
 0x205   : > { %3579 = vst [vmem:[%s6372_s15 + $0xd0] sm:$0xff] %v4902_v47  ;;  %v4795_v31 = vpop.f32.mrb[28].mxu0 }
 0x206   : > { %v4903_v58 = vadd.f32 %v4795_v31, %v4571_v55  ;;  %v3406_v36 = vpop.f32.mrb[29].mxu0 }
 0x207   : > { %v4904_v19 = vadd.f32 %v3406_v36, %v2068_v16  ;;  %v4574_v24 = vpop.f32.mrb[30].mxu1 }
 0x208   : > { %3582 = vst [vmem:[%s6372_s15 + $0xe8] sm:$0xff] %v4903_v58  ;;  %v2078_v35 = vpop.f32.mrb[31].mxu1 }
 0x209   : > { %3581 = vst [vmem:[%s6372_s15 + $0xe0] sm:$0xff] %v4904_v19  ;;  %v4798_v59 = vpop.f32.mrb[30].mxu0 }
 0x20a   : > { %v4905_v57 = vadd.f32 %v4798_v59, %v4574_v24  ;;  %v3416_v22 = vpop.f32.mrb[31].mxu0 }
 0x20b   : > { %v4906_v41 = vadd.f32 %v3416_v22, %v2078_v35 }
 0x20c   : > { %3584 = vst [vmem:[%s6372_s15 + $0xf8] sm:$0xff] %v4905_v57 }
 0x20d   : > { %3583 = vst [vmem:[%s6372_s15 + $0xf0] sm:$0xff] %v4906_v41 }
 0x20e PF: > { %s12_s9 = sadd.s32 1, %s5146_s9  }
 0x20f   : > { %p9_p5 = scmp.ge.s32.totalorder %s12_s9, 4  }
 0x211   :  { %11 = sbr.rel (!%p9_p5) target bundleno = 1 (0x1), region = 66 }

// kernel: conv_group_forward.6
= control target key start
LH: loop header
LB: loop body
LE: loop exit
PB: predicated region body
PF: predicated region fallthrough
CT: control target
= control target key end

     0   :  { %s3138_s15 = smov 0   ;;  %s4036_s0 = inlined_call_operand.vmem [shape: f32[2,10,10,128], index: 0, kind: input, shape index: {}]   ;;  %s4037_s1 = inlined_call_operand.vmem [shape: f32[9,128,128], index: 1, kind: input, shape index: {}]   ;;  %s4038_s2 = inlined_call_operand.vmem [shape: f32[1,128], index: 2, kind: input, shape index: {}]   ;;  %s4039_s3 = inlined_call_operand.vmem [shape: f32[1,128], index: 3, kind: input, shape index: {}]   ;;  %s4040_s4 = inlined_call_operand.vmem [shape: f32[128,128], index: 4, kind: output, shape index: {}]  }
   0x1 LB: > { %s3144_s16 = sadd.s32 4294967295, %s3111_s15   ;;  %p1948_p0 = scmp.ge.s32.totalorder %s3111_s15, 1  ;;  %s3111_s15 = sphi %s3138_s15, %s14_s15  }
   0x2   : > { %p162_p1 = scmp.lt.s32.totalorder %s3111_s15, 3 }
   0x4   : > { %p163_p2 = pnand %p1948_p0, %p162_p1 }
   0x5   : > { %v219_v0 = vld [vmem:[%s4037_s1] sm:$0xff] (!%p163_p2)  ;;  %v220_v1 = vld [vmem:[%s4037_s1 + $0x8] sm:$0xff] (!%p163_p2)  ;;  %p188_p3 = scmp.lt.s32.totalorder (!%p163_p2), %s3144_s16, 1  ;;  %v221_v5 = vld [vmem:[%s4037_s1 + $0x10] sm:$0xff] (!%p163_p2)  ;;  %vm364_vm0 = vcmask (!%p163_p2), 1046528   ;;  %vm543_vm1 = vcmask (!%p163_p2), 1045504  }
   0x6   : > { %166 = sbr.rel (%p163_p2) target bundleno = 458 (0x1ca), region = 36  ;;  %v2000_v2 = vld [vmem:[%s4037_s1 + $0x200] sm:$0xff] (!%p163_p2)  ;;  %v2696_v3 = vpack.c.bf16 (!%p163_p2), %v220_v1, %v219_v0  ;;  %v2001_v4 = vld [vmem:[%s4037_s1 + $0x208] sm:$0xff] (!%p163_p2)  ;;  %v222_v6 = vld [vmem:[%s4037_s1 + $0x18] sm:$0xff] (!%p163_p2) }
   0x7   : > { %v2824_v7 = vpack.c.bf16 (!%p163_p2), %v2001_v4, %v2000_v2  ;;  %v2700_v8 = vpack.c.bf16 (!%p163_p2), %v222_v6, %v221_v5  ;;  %v2002_v9 = vld [vmem:[%s4037_s1 + $0x210] sm:$0xff] (!%p163_p2)  ;;  %v2003_v10 = vld [vmem:[%s4037_s1 + $0x218] sm:$0xff] (!%p163_p2)  ;;  %v223_v11 = vld [vmem:[%s4037_s1 + $0x20] sm:$0xff] (!%p163_p2) }
   0x8   : > { %2697 = vmatprep.subr.bf16.mxu1 (!%p163_p2), %v2696_v3  ;;  %v2828_v12 = vpack.c.bf16 (!%p163_p2), %v2003_v10, %v2002_v9  ;;  %v224_v13 = vld [vmem:[%s4037_s1 + $0x28] sm:$0xff] (!%p163_p2)  ;;  %v2004_v14 = vld [vmem:[%s4037_s1 + $0x220] sm:$0xff] (!%p163_p2)  ;;  %v225_v18 = vld [vmem:[%s4037_s1 + $0x30] sm:$0xff] (!%p163_p2) }
   0x9   : > { %v2005_v15 = vld [vmem:[%s4037_s1 + $0x228] sm:$0xff] (!%p163_p2)  ;;  %2825 = vmatprep.subr.bf16.mxu0 (!%p163_p2), %v2824_v7  ;;  %2699 = vmatpush3.bf16.msra.mxu1 (!%p163_p2), %v2696_v3  ;;  %v2704_v16 = vpack.c.bf16 (!%p163_p2), %v224_v13, %v223_v11  ;;  %v226_v19 = vld [vmem:[%s4037_s1 + $0x38] sm:$0xff] (!%p163_p2)  ;;  %v2006_v20 = vld [vmem:[%s4037_s1 + $0x230] sm:$0xff] (!%p163_p2) }
   0xa   : > { %2827 = vmatpush3.bf16.msra.mxu0 (!%p163_p2), %v2824_v7  ;;  %2701 = vmatprep.subr.bf16.mxu1 (!%p163_p2), %v2700_v8  ;;  %v2832_v17 = vpack.c.bf16 (!%p163_p2), %v2005_v15, %v2004_v14  ;;  %v2007_v21 = vld [vmem:[%s4037_s1 + $0x238] sm:$0xff] (!%p163_p2)  ;;  %v2708_v22 = vpack.c.bf16 (!%p163_p2), %v226_v19, %v225_v18  ;;  %v227_v24 = vld [vmem:[%s4037_s1 + $0x40] sm:$0xff] (!%p163_p2)  ;;  %v228_v25 = vld [vmem:[%s4037_s1 + $0x48] sm:$0xff] (!%p163_p2) }
   0xb   : > { %2829 = vmatprep.subr.bf16.mxu0 (!%p163_p2), %v2828_v12  ;;  %v2836_v23 = vpack.c.bf16 (!%p163_p2), %v2007_v21, %v2006_v20  ;;  %v2008_v27 = vld [vmem:[%s4037_s1 + $0x240] sm:$0xff] (!%p163_p2)  ;;  %v2009_v28 = vld [vmem:[%s4037_s1 + $0x248] sm:$0xff] (!%p163_p2)  ;;  %v2712_v32 = vpack.c.bf16 (!%p163_p2), %v228_v25, %v227_v24  ;;  %v229_v35 = vld [vmem:[%s4037_s1 + $0x50] sm:$0xff] (!%p163_p2) }
   0xc   : > { %v2840_v34 = vpack.c.bf16 (!%p163_p2), %v2009_v28, %v2008_v27  ;;  %v230_v36 = vld [vmem:[%s4037_s1 + $0x58] sm:$0xff] (!%p163_p2)  ;;  %v2010_v37 = vld [vmem:[%s4037_s1 + $0x250] sm:$0xff] (!%p163_p2)  ;;  %v231_v42 = vld [vmem:[%s4037_s1 + $0x60] sm:$0xff] (!%p163_p2) }
   0xd   : > { %s189_s9 = scalar_select %p188_p3, %s3144_s16, 1  ;;  %2703 = vmatpush3.bf16.msra.mxu1 %v2700_v8  ;;  %v2011_v38 = vld [vmem:[%s4037_s1 + $0x258] sm:$0xff]  ;;  %v2716_v40 = vpack.c.bf16 %v230_v36, %v229_v35  ;;  %v232_v43 = vld [vmem:[%s4037_s1 + $0x68] sm:$0xff]  ;;  %v2012_v44 = vld [vmem:[%s4037_s1 + $0x260] sm:$0xff] }
   0xe   : > { %2831 = vmatpush3.bf16.msra.mxu0 %v2828_v12  ;;  %2705 = vmatprep.subr.bf16.mxu1 %v2704_v16  ;;  %v2844_v41 = vpack.c.bf16 %v2011_v38, %v2010_v37  ;;  %v2013_v45 = vld [vmem:[%s4037_s1 + $0x268] sm:$0xff]  ;;  %v2720_v46 = vpack.c.bf16 %v232_v43, %v231_v42  ;;  %v233_v48 = vld [vmem:[%s4037_s1 + $0x70] sm:$0xff]  ;;  %v234_v49 = vld [vmem:[%s4037_s1 + $0x78] sm:$0xff] }
   0xf   : > { %s3064_s18 = smul.u32 160, %s189_s9  ;;  %2833 = vmatprep.subr.bf16.mxu0 %v2832_v17  ;;  %v2848_v47 = vpack.c.bf16 %v2013_v45, %v2012_v44  ;;  %v2014_v50 = vld [vmem:[%s4037_s1 + $0x270] sm:$0xff]  ;;  %v2015_v51 = vld [vmem:[%s4037_s1 + $0x278] sm:$0xff]  ;;  %v2724_v52 = vpack.c.bf16 %v234_v49, %v233_v48  ;;  %v1952_v53 = vld [vmem:[%s4037_s1 + $0x80] sm:$0xff] }
  0x10   : > { %v2852_v54 = vpack.c.bf16 %v2015_v51, %v2014_v50  ;;  %v1953_v55 = vld [vmem:[%s4037_s1 + $0x88] sm:$0xff]  ;;  %v2016_v58 = vld [vmem:[%s4037_s1 + $0x280] sm:$0xff]  ;;  %v1954_v63 = vld [vmem:[%s4037_s1 + $0x90] sm:$0xff] }
  0x11   : > { %s3201_s29 = scalar_lea.vmem %s4036_s0, %s3064_s18  ;;  %2707 = vmatpush3.bf16.msra.mxu1 %v2704_v16  ;;  %v2017_v59 = vld [vmem:[%s4037_s1 + $0x288] sm:$0xff]  ;;  %v2728_v60 = vpack.c.bf16 %v1953_v55, %v1952_v53  ;;  %v1955_v3 = vld [vmem:[%s4037_s1 + $0x98] sm:$0xff]  ;;  %v2018_v6 = vld [vmem:[%s4037_s1 + $0x290] sm:$0xff] }
  0x12   : > { %v3210_v26 = vld [vmem:[%s3201_s29] sm:$0xff]  ;;  %v3220_v29 = vld [vmem:[%s3201_s29 + $0x10] sm:$0xff]  ;;  %v3223_v30 = vld [vmem:[%s3201_s29 + $0x18] sm:$0x3]  ;;  %2835 = vmatpush3.bf16.msra.mxu0 %v2832_v17  ;;  %2709 = vmatprep.subr.bf16.mxu1 %v2708_v22  ;;  %v2856_v2 = vpack.c.bf16 %v2017_v59, %v2016_v58  ;;  %v2732_v11 = vpack.c.bf16 %v1955_v3, %v1954_v63 }
  0x13   : > { %2332 = vmatprep.mubr.f32.mxu1 %v3210_v26  ;;  %v368_v31 = vrot.slane %v3220_v29, 1  ;;  %v369_v33 = vrot.slane %v3223_v30, 1  ;;  %2837 = vmatprep.subr.bf16.mxu0 %v2836_v23  ;;  %v3274_v56 = vld [vmem:[%s3201_s29 + $0x20] sm:$0xff]  ;;  %v3277_v57 = vld [vmem:[%s3201_s29 + $0x28] sm:$0x3]  ;;  %v3291_v0 = vld [vmem:[%s3201_s29 + $0x30] sm:$0xff] }
  0x14   : > { %v371_v61 = vrot.slane %v3274_v56, 1  ;;  %v372_v62 = vrot.slane %v3277_v57, 1  ;;  %v3294_v1 = vld [vmem:[%s3201_s29 + $0x38] sm:$0x3]  ;;  %v3300_v4 = vld [vmem:[%s3201_s29 + $0x40] sm:$0xff]  ;;  %v374_v8 = vrot.slane %v3291_v0, 1 }
  0x15   : > { %v3240_v39 = vsel %vm364_vm0, %v368_v31, %v369_v33  ;;  %2711 = vmatpush3.bf16.msra.mxu1 %v2708_v22  ;;  %v3303_v5 = vld [vmem:[%s3201_s29 + $0x48] sm:$0x3]  ;;  %v2019_v7 = vld [vmem:[%s4037_s1 + $0x298] sm:$0xff]  ;;  %v375_v9 = vrot.slane %v3294_v1, 1  ;;  %v1956_v12 = vld [vmem:[%s4037_s1 + $0xa0] sm:$0xff]  ;;  %v377_v13 = vrot.slane %v3300_v4, 1 }
  0x16   : > { %2508 = vmatprep.mubr.f32.mxu0 %v3240_v39  ;;  %2839 = vmatpush3.bf16.msra.mxu0 %v2836_v23  ;;  %v3314_v10 = vsel %vm364_vm0, %v371_v61, %v372_v62  ;;  %v378_v14 = vrot.slane %v3303_v5, 1  ;;  %v3322_v15 = vld [vmem:[%s3201_s29 + $0x50] sm:$0xff]  ;;  %v3325_v16 = vld [vmem:[%s3201_s29 + $0x58] sm:$0x3]  ;;  %v2860_v17 = vpack.c.bf16 %v2019_v7, %v2018_v6  ;;  %v1957_v18 = vld [vmem:[%s4037_s1 + $0xa8] sm:$0xff]  ;;  %v547_v61 = vrot.slane %v3220_v29, 2 }
  0x17   : > { %2713 = vmatprep.subr.bf16.mxu1 %v2712_v32  ;;  %2841 = vmatprep.subr.bf16.mxu0 %v2840_v34  ;;  %v3331_v19 = vld [vmem:[%s3201_s29 + $0x60] sm:$0xff]  ;;  %v3334_v20 = vld [vmem:[%s3201_s29 + $0x68] sm:$0x3]  ;;  %v3345_v23 = vsel %vm364_vm0, %v374_v8, %v375_v9  ;;  %v380_v24 = vrot.slane %v3322_v15, 1  ;;  %v381_v25 = vrot.slane %v3325_v16, 1  ;;  %v2736_v27 = vpack.c.bf16 %v1957_v18, %v1956_v12  ;;  %v1958_v28 = vld [vmem:[%s4037_s1 + $0xb0] sm:$0xff] }
  0x18   : > { %v2020_v21 = vld [vmem:[%s4037_s1 + $0x2a0] sm:$0xff]  ;;  %v2021_v22 = vld [vmem:[%s4037_s1 + $0x2a8] sm:$0xff]  ;;  %v3353_v31 = vsel %vm364_vm0, %v377_v13, %v378_v14  ;;  %v384_v33 = vrot.slane %v3334_v20, 1  ;;  %v3361_v35 = vld [vmem:[%s3201_s29 + $0x78] sm:$0x3]  ;;  %v548_v62 = vrot.slane %v3223_v30, 2 }
  0x19   : > { %2715 = vmatpush3.bf16.msra.mxu1 %v2712_v32  ;;  %v383_v32 = vrot.slane %v3331_v19, 1  ;;  %v2864_v36 = vpack.c.bf16 %v2021_v22, %v2020_v21  ;;  %v1959_v37 = vld [vmem:[%s4037_s1 + $0xb8] sm:$0xff]  ;;  %v3368_v38 = vld [vmem:[%s3201_s29 + $0x80] sm:$0xff]  ;;  %v3383_v43 = vsel %vm364_vm0, %v380_v24, %v381_v25  ;;  %v387_v45 = vrot.slane %v3361_v35, 1  ;;  %v1961_v53 = vld [vmem:[%s4037_s1 + $0xc8] sm:$0xff] }
  0x1a   : > { %2843 = vmatpush3.bf16.msra.mxu0 %v2840_v34  ;;  %2717 = vmatprep.subr.bf16.mxu1 %v2716_v40  ;;  %v3358_v34 = vld [vmem:[%s3201_s29 + $0x70] sm:$0xff]  ;;  %v2023_v42 = vld [vmem:[%s4037_s1 + $0x2b8] sm:$0xff]  ;;  %v870_v49 = vrot.slane %v3368_v38, 1  ;;  %v2024_v55 = vld [vmem:[%s4037_s1 + $0x2c0] sm:$0xff] }
  0x1b   : > { %2845 = vmatprep.subr.bf16.mxu0 %v2844_v41  ;;  %v386_v44 = vrot.slane %v3358_v34, 1  ;;  %v3391_v48 = vsel %vm364_vm0, %v383_v32, %v384_v33  ;;  %v2025_v58 = vld [vmem:[%s4037_s1 + $0x2c8] sm:$0xff]  ;;  %v1962_v6 = vld [vmem:[%s4037_s1 + $0xd0] sm:$0xff]  ;;  %v1963_v7 = vld [vmem:[%s4037_s1 + $0xd8] sm:$0xff] }
  0x1c   : > { %v2872_v3 = vpack.c.bf16 %v2025_v58, %v2024_v55  ;;  %v2026_v30 = vld [vmem:[%s4037_s1 + $0x2d0] sm:$0xff]  ;;  %v2027_v8 = vld [vmem:[%s4037_s1 + $0x2d8] sm:$0xff]  ;;  %v2748_v12 = vpack.c.bf16 %v1963_v7, %v1962_v6  ;;  %v1965_v18 = vld [vmem:[%s4037_s1 + $0xe8] sm:$0xff]  ;;  %v551_v55 = vrot.slane %v3277_v57, 2  ;;  %v553_v6 = vrot.slane %v3291_v0, 2 }
  0x1d   : > { %2719 = vmatpush3.bf16.msra.mxu1 %v2716_v40  ;;  %v3371_v40 = vld [vmem:[%s3201_s29 + $0x88] sm:$0x3]  ;;  %v3442_v13 = vld [vmem:[%s3201_s29 + $0x90] sm:$0xff]  ;;  %v2876_v14 = vpack.c.bf16 %v2027_v8, %v2026_v30  ;;  %v2028_v24 = vld [vmem:[%s4037_s1 + $0x2e0] sm:$0xff]  ;;  %v554_v7 = vrot.slane %v3294_v1, 2 }
  0x1e   : > { %2847 = vmatpush3.bf16.msra.mxu0 %v2844_v41  ;;  %2721 = vmatprep.subr.bf16.mxu1 %v2720_v46  ;;  %v2022_v41 = vld [vmem:[%s4037_s1 + $0x2b0] sm:$0xff]  ;;  %v871_v50 = vrot.slane %v3371_v40, 1  ;;  %v1318_v21 = vrot.slane %v3442_v13, 1  ;;  %v1468_v22 = vrot.slane %v3442_v13, 2  ;;  %v2029_v25 = vld [vmem:[%s4037_s1 + $0x2e8] sm:$0xff]  ;;  %v2035_v57 = vld [vmem:[%s4037_s1 + $0x318] sm:$0xff] }
  0x1f   : > { %2849 = vmatprep.subr.bf16.mxu0 %v2848_v47  ;;  %v2868_v51 = vpack.c.bf16 %v2023_v42, %v2022_v41  ;;  %v1967_v41 = vld [vmem:[%s4037_s1 + $0xf8] sm:$0xff]  ;;  %v1973_v1 = vld [vmem:[%s4037_s1 + $0x128] sm:$0xff] }
  0x21   : > { %2723 = vmatpush3.bf16.msra.mxu1 %v2720_v46  ;;  %v3388_v46 = vld [vmem:[%s3201_s29 + $0x8] sm:$0x3] }
  0x22   : > { %2851 = vmatpush3.bf16.msra.mxu0 %v2848_v47  ;;  %2725 = vmatprep.subr.bf16.mxu1 %v2724_v52  ;;  %v2740_v47 = vpack.c.bf16 %v1959_v37, %v1958_v28  ;;  %v366_v59 = vrot.slane %v3388_v46, 1  ;;  %v1966_v37 = vld [vmem:[%s4037_s1 + $0xf0] sm:$0xff] }
  0x23   : > { %2853 = vmatprep.subr.bf16.mxu0 %v2852_v54 }
  0x25   : > { %2727 = vmatpush3.bf16.msra.mxu1 %v2724_v52  ;;  %v1960_v52 = vld [vmem:[%s4037_s1 + $0xc0] sm:$0xff] }
  0x26   : > { %2855 = vmatpush3.bf16.msra.mxu0 %v2852_v54  ;;  %2729 = vmatprep.subr.bf16.mxu1 %v2728_v60  ;;  %v365_v54 = vrot.slane %v3210_v26, 1  ;;  %v2744_v63 = vpack.c.bf16 %v1961_v53, %v1960_v52  ;;  %v1969_v52 = vld [vmem:[%s4037_s1 + $0x108] sm:$0xff]  ;;  %v2032_v53 = vld [vmem:[%s4037_s1 + $0x300] sm:$0xff] }
  0x27   : > { %2857 = vmatprep.subr.bf16.mxu0 %v2856_v2 }
  0x28   : > { %2333 = vmatmul.mubr.f32.vlgmr.msra.gmra.mrb[0].mxu1 %v3220_v29  ;;  %v367_v9 = vsel %vm364_vm0, %v365_v54, %v366_v59  ;;  %v2033_v54 = vld [vmem:[%s4037_s1 + $0x308] sm:$0xff]  ;;  %v550_v59 = vrot.slane %v3274_v56, 2 }
  0x29   : > { %2731 = vmatpush3.bf16.msra.mxu1 %v2728_v60  ;;  %2509 = vmatmul.mubr.f32.vlgmr.msra.gmra.mrb[0].mxu0 %v3314_v10  ;;  %v3414_v60 = vsel %vm364_vm0, %v386_v44, %v387_v45  ;;  %v2030_v45 = vld [vmem:[%s4037_s1 + $0x2f0] sm:$0xff] }
  0x2a   : > { %2859 = vmatpush3.bf16.msra.mxu0 %v2856_v2  ;;  %2733 = vmatprep.subr.bf16.mxu1 %v2732_v11  ;;  %v3419_v2 = vsel %vm364_vm0, %v870_v49, %v871_v50  ;;  %v2756_v49 = vpack.c.bf16 %v1967_v41, %v1966_v37  ;;  %v3507_v30 = vsel %vm543_vm1, %v550_v59, %v551_v55  ;;  %v565_v41 = vrot.slane %v3358_v34, 2  ;;  %v2040_v55 = vld [vmem:[%s4037_s1 + $0x340] sm:$0xff] }
  0x2b   : > { %2861 = vmatprep.subr.bf16.mxu0 %v2860_v17  ;;  %2335 = vmatprep.mubr.f32.mxu1 %v3274_v56 }
  0x2c   : > { %2511 = vmatprep.mubr.f32.mxu0 %v3345_v23  ;;  %2336 = vmatmul.mubr.f32.gmra.mrb[2].mxu1 %v3291_v0 }
  0x2d   : > { %2735 = vmatpush3.bf16.msra.mxu1 %v2732_v11  ;;  %2512 = vmatmul.mubr.f32.gmra.mrb[2].mxu0 %v3353_v31  ;;  %v3439_v11 = vsel %vm543_vm1, %v547_v61, %v548_v62  ;;  %v2888_v61 = vpack.c.bf16 %v2033_v54, %v2032_v53  ;;  %v1970_v62 = vld [vmem:[%s4037_s1 + $0x110] sm:$0xff]  ;;  %v1976_v53 = vld [vmem:[%s4037_s1 + $0x140] sm:$0xff]  ;;  %v544_v54 = vrot.slane %v3210_v26, 2 }
  0x2e   : > { %2863 = vmatpush3.bf16.msra.mxu0 %v2860_v17  ;;  %2737 = vmatprep.subr.bf16.mxu1 %v2736_v27  ;;  %v1964_v17 = vld [vmem:[%s4037_s1 + $0xe0] sm:$0xff] }
  0x2f   : > { %2865 = vmatprep.subr.bf16.mxu0 %v2864_v36  ;;  %2338 = vmatprep.mubr.f32.mxu1 %v3300_v4  ;;  %v2752_v33 = vpack.c.bf16 %v1965_v18, %v1964_v17  ;;  %v1972_v17 = vld [vmem:[%s4037_s1 + $0x120] sm:$0xff] }
  0x30   : > { %2514 = vmatprep.mubr.f32.mxu0 %v3383_v43  ;;  %2339 = vmatmul.mubr.f32.gmra.mrb[4].mxu1 %v3322_v15  ;;  %v2036_v18 = vld [vmem:[%s4037_s1 + $0x320] sm:$0xff] }
  0x31   : > { %2739 = vmatpush3.bf16.msra.mxu1 %v2736_v27  ;;  %2515 = vmatmul.mubr.f32.gmra.mrb[4].mxu0 %v3391_v48  ;;  %v218_v27 = vld [vmem:[%s3201_s29 + $0x98] sm:$0x3]  ;;  %s1950_s29 = sshll.u32 %s3144_s16, 3 }
  0x32   : > { %2867 = vmatpush3.bf16.msra.mxu0 %v2864_v36  ;;  %2741 = vmatprep.subr.bf16.mxu1 %v2740_v47  ;;  %v1319_v28 = vrot.slane %v218_v27, 1  ;;  %v1469_v32 = vrot.slane %v218_v27, 2  ;;  %v2880_v36 = vpack.c.bf16 %v2029_v25, %v2028_v24  ;;  %v560_v24 = vrot.slane %v3325_v16, 2  ;;  %v1975_v16 = vld [vmem:[%s4037_s1 + $0x138] sm:$0xff]  ;;  %p3948_p4 = scmp.lt.s32.totalorder %s1950_s29, 15 }
  0x33   : > { %2869 = vmatprep.subr.bf16.mxu0 %v2868_v51  ;;  %2341 = vmatprep.mubr.f32.mxu1 %v3331_v19  ;;  %v562_v27 = vrot.slane %v3331_v19, 2 }
  0x34   : > { %2517 = vmatprep.mubr.f32.mxu0 %v3414_v60  ;;  %2342 = vmatmul.mubr.f32.gmra.mrb[6].mxu1 %v3358_v34  ;;  %v3467_v42 = vsel %vm364_vm0, %v1318_v21, %v1319_v28  ;;  %v3470_v44 = vsel %vm543_vm1, %v1468_v22, %v1469_v32  ;;  %v3526_v21 = vsel %vm543_vm1, %v553_v6, %v554_v7  ;;  %v559_v22 = vrot.slane %v3322_v15, 2  ;;  %s4043_s29 = smov (!%p3948_p4, %s1950_s29), 15 }
  0x35   : > { %2743 = vmatpush3.bf16.msra.mxu1 %v2740_v47  ;;  %2518 = vmatmul.mubr.f32.gmra.mrb[6].mxu0 %v3419_v2  ;;  %v2031_v47 = vld [vmem:[%s4037_s1 + $0x2f8] sm:$0xff]  ;;  %v563_v28 = vrot.slane %v3334_v20, 2  ;;  %s1951_s16 = sshll.u32 %s4043_s29, 3 }
  0x36   : > { %2871 = vmatpush3.bf16.msra.mxu0 %v2868_v51  ;;  %2745 = vmatprep.subr.bf16.mxu1 %v2744_v63  ;;  %v2884_v50 = vpack.c.bf16 %v2031_v47, %v2030_v45  ;;  %v1968_v51 = vld [vmem:[%s4037_s1 + $0x100] sm:$0xff]  ;;  %v2039_v20 = vld [vmem:[%s4037_s1 + $0x338] sm:$0xff]  ;;  %v3552_v37 = vsel %vm543_vm1, %v559_v22, %v560_v24  ;;  %v566_v45 = vrot.slane %v3361_v35, 2  ;;  %v1977_v35 = vld [vmem:[%s4037_s1 + $0x148] sm:$0xff]  ;;  %s3993_s7 = scalar_lea.vmem %s4040_s4, %s1951_s16 }
  0x37   : > { %2873 = vmatprep.subr.bf16.mxu0 %v2872_v3  ;;  %2376 = vmatprep.mubr.f32.mxu1 %v367_v9  ;;  %v2760_v58 = vpack.c.bf16 %v1969_v52, %v1968_v51  ;;  %v556_v9 = vrot.slane %v3300_v4, 2  ;;  %v1021_v51 = vrot.slane %v3371_v40, 2  ;;  %v2041_v40 = vld [vmem:[%s4037_s1 + $0x348] sm:$0xff]  ;;  %v2776_v26 = vpack.c.bf16 %v1977_v35, %v1976_v53  ;;  %v1983_v22 = vld [vmem:[%s4037_s1 + $0x178] sm:$0xff]  ;;  %v2046_v24 = vld [vmem:[%s4037_s1 + $0x370] sm:$0xff] }
  0x38   : > { %2552 = vmatprep.mubr.f32.mxu0 %v3439_v11  ;;  %v3580_v59 = vsel %vm543_vm1, %v565_v41, %v566_v45  ;;  %v1986_v45 = vld [vmem:[%s4037_s1 + $0x190] sm:$0xff]  ;;  %v1988_v35 = vld [vmem:[%s4037_s1 + $0x1a0] sm:$0xff] }
  0x39   : > { %2747 = vmatpush3.bf16.msra.mxu1 %v2744_v63  ;;  %v1971_v63 = vld [vmem:[%s4037_s1 + $0x118] sm:$0xff] }
  0x3a   : > { %2875 = vmatpush3.bf16.msra.mxu0 %v2872_v3  ;;  %2749 = vmatprep.subr.bf16.mxu1 %v2748_v12  ;;  %v2034_v3 = vld [vmem:[%s4037_s1 + $0x310] sm:$0xff]  ;;  %v2764_v8 = vpack.c.bf16 %v1971_v63, %v1970_v62  ;;  %v2904_v62 = vpack.c.bf16 %v2041_v40, %v2040_v55  ;;  %v2052_v55 = vld [vmem:[%s4037_s1 + $0x3a0] sm:$0xff]  ;;  %v2053_v40 = vld [vmem:[%s4037_s1 + $0x3a8] sm:$0xff] }
  0x3b   : > { %2877 = vmatprep.subr.bf16.mxu0 %v2876_v14  ;;  %v1978_v63 = vld [vmem:[%s4037_s1 + $0x150] sm:$0xff] }
  0x3d   : > { %2751 = vmatpush3.bf16.msra.mxu1 %v2748_v12  ;;  %v557_v12 = vrot.slane %v3303_v5, 2  ;;  %v2037_v5 = vld [vmem:[%s4037_s1 + $0x328] sm:$0xff] }
  0x3e   : > { %2879 = vmatpush3.bf16.msra.mxu0 %v2876_v14  ;;  %2753 = vmatprep.subr.bf16.mxu1 %v2752_v33  ;;  %v2892_v14 = vpack.c.bf16 %v2035_v57, %v2034_v3  ;;  %v2896_v32 = vpack.c.bf16 %v2037_v5, %v2036_v18  ;;  %v2042_v3 = vld [vmem:[%s4037_s1 + $0x350] sm:$0xff]  ;;  %v2043_v57 = vld [vmem:[%s4037_s1 + $0x358] sm:$0xff] }
  0x3f   : > { %2881 = vmatprep.subr.bf16.mxu0 %v2880_v36  ;;  %v3531_v25 = vsel %vm543_vm1, %v556_v9, %v557_v12  ;;  %v1980_v9 = vld [vmem:[%s4037_s1 + $0x160] sm:$0xff]  ;;  %v1981_v12 = vld [vmem:[%s4037_s1 + $0x168] sm:$0xff]  ;;  %v1982_v5 = vld [vmem:[%s4037_s1 + $0x170] sm:$0xff] }
  0x41   : > { %2755 = vmatpush3.bf16.msra.mxu1 %v2752_v33  ;;  %v1974_v33 = vld [vmem:[%s4037_s1 + $0x130] sm:$0xff] }
  0x42   : > { %2883 = vmatpush3.bf16.msra.mxu0 %v2880_v36  ;;  %2757 = vmatprep.subr.bf16.mxu1 %v2756_v49  ;;  %v2038_v36 = vld [vmem:[%s4037_s1 + $0x330] sm:$0xff]  ;;  %v2772_v47 = vpack.c.bf16 %v1975_v16, %v1974_v33  ;;  %v1985_v33 = vld [vmem:[%s4037_s1 + $0x188] sm:$0xff]  ;;  %v2048_v16 = vld [vmem:[%s4037_s1 + $0x380] sm:$0xff] }
  0x43   : > { %2885 = vmatprep.subr.bf16.mxu0 %v2884_v50  ;;  %v2900_v52 = vpack.c.bf16 %v2039_v20, %v2038_v36  ;;  %v2049_v36 = vld [vmem:[%s4037_s1 + $0x388] sm:$0xff] }
  0x44   : > { %v2920_v41 = vpack.c.bf16 %v2049_v36, %v2048_v16  ;;  %v1999_v16 = vld [vmem:[%s4037_s1 + $0x1f8] sm:$0xff]  ;;  %v2062_v36 = vld [vmem:[%s4037_s1 + $0x3f0] sm:$0xff] }
  0x45   : > { %2759 = vmatpush3.bf16.msra.mxu1 %v2756_v49  ;;  %v3557_v49 = vsel %vm543_vm1, %v562_v27, %v563_v28  ;;  %v2788_v27 = vpack.c.bf16 %v1983_v22, %v1982_v5  ;;  %v2059_v5 = vld [vmem:[%s4037_s1 + $0x3d8] sm:$0xff] }
  0x46   : > { %2887 = vmatpush3.bf16.msra.mxu0 %v2884_v50  ;;  %2761 = vmatprep.subr.bf16.mxu1 %v2760_v58  ;;  %v1020_v50 = vrot.slane %v3368_v38, 2 }
  0x47   : > { %2889 = vmatprep.subr.bf16.mxu0 %v2888_v61 }
  0x48   : > { %2377 = vmatmul.mubr.f32.vlgmr.msra.gmra.mrb[0].mxu1 %v3240_v39  ;;  %v2768_v39 = vpack.c.bf16 %v1973_v1, %v1972_v17  ;;  %v2045_v17 = vld [vmem:[%s4037_s1 + $0x368] sm:$0xff]  ;;  %v2784_v1 = vpack.c.bf16 %v1981_v12, %v1980_v9 }
  0x49   : > { %2763 = vmatpush3.bf16.msra.mxu1 %v2760_v58  ;;  %2553 = vmatmul.mubr.f32.vlgmr.msra.gmra.mrb[0].mxu0 %v3507_v30  ;;  %v545_v58 = vrot.slane %v3388_v46, 2  ;;  %v1979_v46 = vld [vmem:[%s4037_s1 + $0x158] sm:$0xff]  ;;  %v2057_v9 = vld [vmem:[%s4037_s1 + $0x3c8] sm:$0xff] }
  0x4a   : > { %2891 = vmatpush3.bf16.msra.mxu0 %v2888_v61  ;;  %2765 = vmatprep.subr.bf16.mxu1 %v2764_v8  ;;  %v3583_v61 = vsel %vm543_vm1, %v1020_v50, %v1021_v51  ;;  %v2780_v7 = vpack.c.bf16 %v1979_v46, %v1978_v63  ;;  %v2050_v50 = vld [vmem:[%s4037_s1 + $0x390] sm:$0xff]  ;;  %v2051_v51 = vld [vmem:[%s4037_s1 + $0x398] sm:$0xff] }
  0x4b   : > { %2893 = vmatprep.subr.bf16.mxu0 %v2892_v14  ;;  %2379 = vmatprep.mubr.f32.mxu1 %v3314_v10  ;;  %v546_v6 = vsel %vm543_vm1, %v544_v54, %v545_v58  ;;  %v2924_v53 = vpack.c.bf16 %v2051_v51, %v2050_v50  ;;  %v1989_v54 = vld [vmem:[%s4037_s1 + $0x1a8] sm:$0xff]  ;;  %v2054_v63 = vld [vmem:[%s4037_s1 + $0x3b0] sm:$0xff]  ;;  %v2055_v46 = vld [vmem:[%s4037_s1 + $0x3b8] sm:$0xff] }
  0x4c   : > { %2555 = vmatprep.mubr.f32.mxu0 %v3526_v21  ;;  %2380 = vmatmul.mubr.f32.gmra.mrb[2].mxu1 %v3345_v23  ;;  %v2800_v58 = vpack.c.bf16 %v1989_v54, %v1988_v35  ;;  %v2066_v51 = vld [vmem:[%s4037_s1 + $0x410] sm:$0xff]  ;;  %v2068_v35 = vld [vmem:[%s4037_s1 + $0x420] sm:$0xff]  ;;  %v2069_v54 = vld [vmem:[%s4037_s1 + $0x428] sm:$0xff] }
  0x4d   : > { %2767 = vmatpush3.bf16.msra.mxu1 %v2764_v8  ;;  %2556 = vmatmul.mubr.f32.gmra.mrb[2].mxu0 %v3531_v25  ;;  %v2908_v8 = vpack.c.bf16 %v2043_v57, %v2042_v3  ;;  %v2932_v57 = vpack.c.bf16 %v2055_v46, %v2054_v63 }
  0x4e   : > { %2895 = vmatpush3.bf16.msra.mxu0 %v2892_v14  ;;  %2769 = vmatprep.subr.bf16.mxu1 %v2768_v39  ;;  %v2044_v14 = vld [vmem:[%s4037_s1 + $0x360] sm:$0xff] }
  0x4f   : > { %2897 = vmatprep.subr.bf16.mxu0 %v2896_v32  ;;  %2382 = vmatprep.mubr.f32.mxu1 %v3353_v31  ;;  %v2912_v18 = vpack.c.bf16 %v2045_v17, %v2044_v14  ;;  %v1994_v17 = vld [vmem:[%s4037_s1 + $0x1d0] sm:$0xff] }
  0x50   : > { %2558 = vmatprep.mubr.f32.mxu0 %v3552_v37  ;;  %2383 = vmatmul.mubr.f32.gmra.mrb[4].mxu1 %v3383_v43 }
  0x51   : > { %2771 = vmatpush3.bf16.msra.mxu1 %v2768_v39  ;;  %2559 = vmatmul.mubr.f32.gmra.mrb[4].mxu0 %v3557_v49  ;;  %v2047_v39 = vld [vmem:[%s4037_s1 + $0x378] sm:$0xff] }
  0x52   : > { %2899 = vmatpush3.bf16.msra.mxu0 %v2896_v32  ;;  %2773 = vmatprep.subr.bf16.mxu1 %v2772_v47  ;;  %v2916_v28 = vpack.c.bf16 %v2047_v39, %v2046_v24  ;;  %v1984_v32 = vld [vmem:[%s4037_s1 + $0x180] sm:$0xff] }
  0x53   : > { %2901 = vmatprep.subr.bf16.mxu0 %v2900_v52  ;;  %2385 = vmatprep.mubr.f32.mxu1 %v3391_v48  ;;  %v2792_v20 = vpack.c.bf16 %v1985_v33, %v1984_v32  ;;  %v1996_v39 = vld [vmem:[%s4037_s1 + $0x1e0] sm:$0xff] }
  0x54   : > { %2561 = vmatprep.mubr.f32.mxu0 %v3580_v59  ;;  %2386 = vmatmul.mubr.f32.gmra.mrb[6].mxu1 %v3414_v60 }
  0x55   : > { %2775 = vmatpush3.bf16.msra.mxu1 %v2772_v47  ;;  %2562 = vmatmul.mubr.f32.gmra.mrb[6].mxu0 %v3583_v61  ;;  %v1987_v47 = vld [vmem:[%s4037_s1 + $0x198] sm:$0xff] }
  0x56   : > { %2903 = vmatpush3.bf16.msra.mxu0 %v2900_v52  ;;  %2777 = vmatprep.subr.bf16.mxu1 %v2776_v26  ;;  %v2796_v52 = vpack.c.bf16 %v1987_v47, %v1986_v45  ;;  %v2064_v45 = vld [vmem:[%s4037_s1 + $0x400] sm:$0xff]  ;;  %v2065_v47 = vld [vmem:[%s4037_s1 + $0x408] sm:$0xff] }
  0x57   : > { %2905 = vmatprep.subr.bf16.mxu0 %v2904_v62  ;;  %2420 = vmatprep.mubr.f32.mxu1 %v546_v6  ;;  %v1992_v6 = vld [vmem:[%s4037_s1 + $0x1c0] sm:$0xff]  ;;  %v2952_v50 = vpack.c.bf16 %v2065_v47, %v2064_v45 }
  0x58   : > { %2596 = vmatprep.mubr.f32.mxu0 %v3274_v56 }
  0x59   : > { %2779 = vmatpush3.bf16.msra.mxu1 %v2776_v26  ;;  %v2928_v26 = vpack.c.bf16 %v2053_v40, %v2052_v55  ;;  %v2960_v55 = vpack.c.bf16 %v2069_v54, %v2068_v35  ;;  %v2071_v40 = vld [vmem:[%s4037_s1 + $0x438] sm:$0xff] }
  0x5a   : > { %2907 = vmatpush3.bf16.msra.mxu0 %v2904_v62  ;;  %2781 = vmatprep.subr.bf16.mxu1 %v2780_v7  ;;  %v1991_v62 = vld [vmem:[%s4037_s1 + $0x1b8] sm:$0xff] }
  0x5b   : > { %2909 = vmatprep.subr.bf16.mxu0 %v2908_v8 }
  0x5d   : > { %2783 = vmatpush3.bf16.msra.mxu1 %v2780_v7  ;;  %v1993_v7 = vld [vmem:[%s4037_s1 + $0x1c8] sm:$0xff] }
  0x5e   : > { %2911 = vmatpush3.bf16.msra.mxu0 %v2908_v8  ;;  %2785 = vmatprep.subr.bf16.mxu1 %v2784_v1  ;;  %v2056_v8 = vld [vmem:[%s4037_s1 + $0x3c0] sm:$0xff]  ;;  %v2808_v12 = vpack.c.bf16 %v1993_v7, %v1992_v6 }
  0x5f   : > { %2913 = vmatprep.subr.bf16.mxu0 %v2912_v18  ;;  %v2936_v14 = vpack.c.bf16 %v2057_v9, %v2056_v8 }
  0x61   : > { %2787 = vmatpush3.bf16.msra.mxu1 %v2784_v1  ;;  %v1995_v1 = vld [vmem:[%s4037_s1 + $0x1d8] sm:$0xff] }
  0x62   : > { %2915 = vmatpush3.bf16.msra.mxu0 %v2912_v18  ;;  %2789 = vmatprep.subr.bf16.mxu1 %v2788_v27  ;;  %v2058_v18 = vld [vmem:[%s4037_s1 + $0x3d0] sm:$0xff]  ;;  %v2812_v22 = vpack.c.bf16 %v1995_v1, %v1994_v17  ;;  %v3819_v17 = vld [vmem:[%s4039_s3] ss:$0 sm:$0xff] }
  0x63   : > { %2917 = vmatprep.subr.bf16.mxu0 %v2916_v28  ;;  %v2940_v24 = vpack.c.bf16 %v2059_v5, %v2058_v18 }
  0x65   : > { %2791 = vmatpush3.bf16.msra.mxu1 %v2788_v27  ;;  %v1997_v27 = vld [vmem:[%s4037_s1 + $0x1e8] sm:$0xff] }
  0x66   : > { %2919 = vmatpush3.bf16.msra.mxu0 %v2916_v28  ;;  %2793 = vmatprep.subr.bf16.mxu1 %v2792_v20  ;;  %v2060_v28 = vld [vmem:[%s4037_s1 + $0x3e0] sm:$0xff]  ;;  %v2816_v32 = vpack.c.bf16 %v1997_v27, %v1996_v39 }
  0x67   : > { %2921 = vmatprep.subr.bf16.mxu0 %v2920_v41 }
  0x68   : > { %2421 = vmatmul.mubr.f32.vlgmr.msra.gmra.mrb[0].mxu1 %v3439_v11  ;;  %v1990_v11 = vld [vmem:[%s4037_s1 + $0x1b0] sm:$0xff] }
  0x69   : > { %2795 = vmatpush3.bf16.msra.mxu1 %v2792_v20  ;;  %2597 = vmatmul.mubr.f32.vlgmr.msra.gmra.mrb[0].mxu0 %v3291_v0  ;;  %v2804_v3 = vpack.c.bf16 %v1991_v62, %v1990_v11 }
  0x6a   : > { %2923 = vmatpush3.bf16.msra.mxu0 %v2920_v41  ;;  %2797 = vmatprep.subr.bf16.mxu1 %v2796_v52 }
  0x6b   : > { %2925 = vmatprep.subr.bf16.mxu0 %v2924_v53  ;;  %2423 = vmatprep.mubr.f32.mxu1 %v3507_v30 }
  0x6c   : > { %2599 = vmatprep.mubr.f32.mxu0 %v3300_v4  ;;  %2424 = vmatmul.mubr.f32.gmra.mrb[2].mxu1 %v3526_v21 }
  0x6d   : > { %2799 = vmatpush3.bf16.msra.mxu1 %v2796_v52  ;;  %2600 = vmatmul.mubr.f32.gmra.mrb[2].mxu0 %v3322_v15  ;;  %v2067_v52 = vld [vmem:[%s4037_s1 + $0x418] sm:$0xff] }
  0x6e   : > { %2927 = vmatpush3.bf16.msra.mxu0 %v2924_v53  ;;  %2801 = vmatprep.subr.bf16.mxu1 %v2800_v58  ;;  %v2956_v53 = vpack.c.bf16 %v2067_v52, %v2066_v51 }
  0x6f   : > { %2929 = vmatprep.subr.bf16.mxu0 %v2928_v26  ;;  %2426 = vmatprep.mubr.f32.mxu1 %v3531_v25 }
  0x70   : > { %2602 = vmatprep.mubr.f32.mxu0 %v3331_v19  ;;  %2427 = vmatmul.mubr.f32.gmra.mrb[4].mxu1 %v3552_v37 }
  0x71   : > { %2803 = vmatpush3.bf16.msra.mxu1 %v2800_v58  ;;  %2603 = vmatmul.mubr.f32.gmra.mrb[4].mxu0 %v3358_v34 }
  0x72   : > { %2931 = vmatpush3.bf16.msra.mxu0 %v2928_v26  ;;  %2805 = vmatprep.subr.bf16.mxu1 %v2804_v3 }
  0x73   : > { %2933 = vmatprep.subr.bf16.mxu0 %v2932_v57  ;;  %2429 = vmatprep.mubr.f32.mxu1 %v3557_v49 }
  0x74   : > { %2605 = vmatprep.mubr.f32.mxu0 %v3368_v38  ;;  %2430 = vmatmul.mubr.f32.gmra.mrb[6].mxu1 %v3580_v59 }
  0x75   : > { %2807 = vmatpush3.bf16.msra.mxu1 %v2804_v3  ;;  %2606 = vmatmul.mubr.f32.gmra.mrb[6].mxu0 %v3442_v13  ;;  %v2061_v13 = vld [vmem:[%s4037_s1 + $0x3e8] sm:$0xff] }
  0x76   : > { %2935 = vmatpush3.bf16.msra.mxu0 %v2932_v57  ;;  %2809 = vmatprep.subr.bf16.mxu1 %v2808_v12  ;;  %v2944_v33 = vpack.c.bf16 %v2061_v13, %v2060_v28 }
  0x77   : > { %2937 = vmatprep.subr.bf16.mxu0 %v2936_v14  ;;  %2464 = vmatprep.mubr.f32.mxu1 %v3220_v29  ;;  %v1998_v29 = vld [vmem:[%s4037_s1 + $0x1f0] sm:$0xff] }
  0x78   : > { %2640 = vmatprep.mubr.f32.mxu0 %v3314_v10  ;;  %v2063_v10 = vld [vmem:[%s4037_s1 + $0x3f8] sm:$0xff]  ;;  %v2820_v20 = vpack.c.bf16 %v1999_v16, %v1998_v29 }
  0x79   : > { %2811 = vmatpush3.bf16.msra.mxu1 %v2808_v12  ;;  %v2948_v41 = vpack.c.bf16 %v2063_v10, %v2062_v36 }
  0x7a   : > { %2939 = vmatpush3.bf16.msra.mxu0 %v2936_v14  ;;  %2813 = vmatprep.subr.bf16.mxu1 %v2812_v22 }
  0x7b   : > { %2941 = vmatprep.subr.bf16.mxu0 %v2940_v24 }
  0x7d   : > { %2815 = vmatpush3.bf16.msra.mxu1 %v2812_v22 }
  0x7e   : > { %2943 = vmatpush3.bf16.msra.mxu0 %v2940_v24  ;;  %2817 = vmatprep.subr.bf16.mxu1 %v2816_v32 }
  0x7f   : > { %2945 = vmatprep.subr.bf16.mxu0 %v2944_v33 }
  0x81   : > { %2819 = vmatpush3.bf16.msra.mxu1 %v2816_v32 }
  0x82   : > { %2947 = vmatpush3.bf16.msra.mxu0 %v2944_v33  ;;  %2821 = vmatprep.subr.bf16.mxu1 %v2820_v20 }
  0x83   : > { %2949 = vmatprep.subr.bf16.mxu0 %v2948_v41 }
  0x85   : > { %2823 = vmatpush3.bf16.msra.mxu1 %v2820_v20 }
  0x86   : > { %2951 = vmatpush3.bf16.msra.mxu0 %v2948_v41  ;;  %2984 = vmatprep.subr.bf16.mxu1 %v2952_v50 }
  0x87   : > { %2953 = vmatprep.subr.bf16.mxu0 %v2952_v50 }
  0x88   : > { %2465 = vmatmul.mubr.f32.vlgmr.msra.gmra.mrb[0].mxu1 %v3274_v56  ;;  %v2070_v56 = vld [vmem:[%s4037_s1 + $0x430] sm:$0xff] }
  0x89   : > { %2641 = vmatmul.mubr.f32.vlgmr.msra.gmra.mrb[0].mxu0 %v3345_v23  ;;  %2992 = vmatpush3.bf16.msra.mxu1 %v2952_v50  ;;  %v2073_v23 = vld [vmem:[%s4037_s1 + $0x448] sm:$0xff] }
  0x8a   : > { %2955 = vmatpush3.bf16.msra.mxu0 %v2952_v50  ;;  %2467 = vmatprep.mubr.f32.mxu1 %v3291_v0  ;;  %v2964_v0 = vpack.c.bf16 %v2071_v40, %v2070_v56 }
  0x8b   : > { %2643 = vmatprep.mubr.f32.mxu0 %v3353_v31  ;;  %2957 = vmatprep.subr.bf16.mxu0 %v2956_v53  ;;  %v2074_v31 = vld [vmem:[%s4037_s1 + $0x450] sm:$0xff] }
  0x8c   : > { %2468 = vmatmul.mubr.f32.gmra.mrb[2].mxu1 %v3300_v4  ;;  %2985 = vmatprep.subr.bf16.mxu1 %v2956_v53  ;;  %v2072_v4 = vld [vmem:[%s4037_s1 + $0x440] sm:$0xff] }
  0x8d   : > { %2644 = vmatmul.mubr.f32.gmra.mrb[2].mxu0 %v3383_v43  ;;  %2993 = vmatpush3.bf16.msra.mxu1 %v2956_v53  ;;  %v2075_v43 = vld [vmem:[%s4037_s1 + $0x458] sm:$0xff] }
  0x8e   : > { %2959 = vmatpush3.bf16.msra.mxu0 %v2956_v53  ;;  %2470 = vmatprep.mubr.f32.mxu1 %v3322_v15  ;;  %v2968_v15 = vpack.c.bf16 %v2073_v23, %v2072_v4 }
  0x8f   : > { %2646 = vmatprep.mubr.f32.mxu0 %v3391_v48  ;;  %2961 = vmatprep.subr.bf16.mxu0 %v2960_v55  ;;  %v2077_v48 = vld [vmem:[%s4037_s1 + $0x468] sm:$0xff] }
  0x90   : > { %2471 = vmatmul.mubr.f32.gmra.mrb[4].mxu1 %v3331_v19  ;;  %2986 = vmatprep.subr.bf16.mxu1 %v2960_v55  ;;  %v2972_v19 = vpack.c.bf16 %v2075_v43, %v2074_v31 }
  0x91   : > { %2647 = vmatmul.mubr.f32.gmra.mrb[4].mxu0 %v3414_v60  ;;  %2994 = vmatpush3.bf16.msra.mxu1 %v2960_v55  ;;  %v2078_v60 = vld [vmem:[%s4037_s1 + $0x470] sm:$0xff] }
  0x92   : > { %2963 = vmatpush3.bf16.msra.mxu0 %v2960_v55  ;;  %2473 = vmatprep.mubr.f32.mxu1 %v3358_v34  ;;  %v2076_v34 = vld [vmem:[%s4037_s1 + $0x460] sm:$0xff] }
  0x93   : > { %2649 = vmatprep.mubr.f32.mxu0 %v3419_v2  ;;  %2965 = vmatprep.subr.bf16.mxu0 %v2964_v0  ;;  %v2079_v2 = vld [vmem:[%s4037_s1 + $0x478] sm:$0xff] }
  0x94   : > { %2474 = vmatmul.mubr.f32.gmra.mrb[6].mxu1 %v3368_v38  ;;  %2987 = vmatprep.subr.bf16.mxu1 %v2964_v0  ;;  %v2976_v38 = vpack.c.bf16 %v2077_v48, %v2076_v34 }
  0x95   : > { %2650 = vmatmul.mubr.f32.gmra.mrb[6].mxu0 %v3467_v42  ;;  %2995 = vmatpush3.bf16.msra.mxu1 %v2964_v0  ;;  %v2980_v42 = vpack.c.bf16 %v2079_v2, %v2078_v60 }
  0x96   : > { %2967 = vmatpush3.bf16.msra.mxu0 %v2964_v0  ;;  %2988 = vmatprep.subr.bf16.mxu1 %v2968_v15 }
  0x97   : > { %2969 = vmatprep.subr.bf16.mxu0 %v2968_v15  ;;  %2684 = vmatprep.mubr.f32.mxu0 %v3507_v30 }
  0x98   : > { %2690 = vmatprep.mubr.f32.mxu1 %v3557_v49 }
  0x99   : > { %2996 = vmatpush3.bf16.msra.mxu1 %v2968_v15 }
  0x9a   : > { %2971 = vmatpush3.bf16.msra.mxu0 %v2968_v15  ;;  %2989 = vmatprep.subr.bf16.mxu1 %v2972_v19 }
  0x9b   : > { %2973 = vmatprep.subr.bf16.mxu0 %v2972_v19 }
  0x9d   : > { %2997 = vmatpush3.bf16.msra.mxu1 %v2972_v19 }
  0x9e   : > { %2975 = vmatpush3.bf16.msra.mxu0 %v2972_v19  ;;  %2990 = vmatprep.subr.bf16.mxu1 %v2976_v38 }
  0x9f   : > { %2977 = vmatprep.subr.bf16.mxu0 %v2976_v38 }
  0xa1   : > { %2998 = vmatpush3.bf16.msra.mxu1 %v2976_v38 }
  0xa2   : > { %2979 = vmatpush3.bf16.msra.mxu0 %v2976_v38  ;;  %2991 = vmatprep.subr.bf16.mxu1 %v2980_v42 }
  0xa3   : > { %2981 = vmatprep.subr.bf16.mxu0 %v2980_v42 }
  0xa5   : > { %2999 = vmatpush3.bf16.msra.mxu1 %v2980_v42 }
  0xa6   : > { %2983 = vmatpush3.bf16.msra.mxu0 %v2980_v42 }
  0xa8   : > { %2691 = vmatmul.mubr.f32.vlgmr.msra.gmra.mrb[8].mxu1 %v3580_v59 }
  0xa9   : > { %2685 = vmatmul.mubr.f32.vlgmr.msra.gmra.mrb[0].mxu0 %v3526_v21  ;;  %2693 = vmatprep.mubr.f32.mxu1 %v3583_v61 }
  0xaa   : > { %2687 = vmatprep.mubr.f32.mxu0 %v3531_v25 }
  0xac   : > { %2694 = vmatmul.mubr.f32.gmra.mrb[10].mxu1 %v3470_v44  ;;  %v3814_v44 = vld [vmem:[%s4038_s2] ss:$0 sm:$0xff] }
  0xad   : > { %2688 = vmatmul.mubr.f32.gmra.mrb[2].mxu0 %v3552_v37 }
 0x15b   : > { %v2466_v30 = vpop.f32.mrb[0].mxu1 }
 0x15c   : > { %v805_v49 = vpop.f32.mrb[1].mxu1 }
 0x15f   : > { %v2469_v58 = vpop.f32.mrb[2].mxu1 }
 0x160   : > { %v3809_v26 = vpop.f32.mrb[3].mxu1 }
 0x163   : > { %v2472_v11 = vpop.f32.mrb[4].mxu1 }
 0x164   : > { %v2648_v62 = vpop.f32.mrb[4].mxu0  ;;  %v825_v63 = vpop.f32.mrb[5].mxu1 }
 0x165   : > { %v3004_v46 = vadd.f32 %v2648_v62, %v2472_v11  ;;  %v1425_v59 = vpop.f32.mrb[5].mxu0 }
 0x166   : > { %v3006_v3 = vadd.f32 %v1425_v59, %v825_v63 }
 0x167   : > { %v2475_v21 = vpop.f32.mrb[6].mxu1 }
 0x168   : > { %v2651_v57 = vpop.f32.mrb[6].mxu0  ;;  %v835_v61 = vpop.f32.mrb[7].mxu1 }
 0x169   : > { %v3008_v6 = vadd.f32 %v2651_v57, %v2475_v21  ;;  %v1435_v25 = vpop.f32.mrb[7].mxu0 }
 0x16a   : > { %v3010_v7 = vadd.f32 %v1435_v25, %v835_v61 }
 0x17b   : > { %v2692_v37 = vpop.f32.mrb[8].mxu1 }
 0x17c   : > { %v2686_v8 = vpop.f32.mrb[0].mxu0  ;;  %v3005_v9 = vadd.f32 %v3004_v46, %v2692_v37  ;;  %v1575_v12 = vpop.f32.mrb[9].mxu1 }
 0x17d   : > { %v3000_v14 = vadd.f32 %v2686_v8, %v2466_v30  ;;  %v1555_v1 = vpop.f32.mrb[1].mxu0  ;;  %v3007_v18 = vadd.f32 %v3006_v3, %v1575_v12 }
 0x17e   : > { %v1638_v5 = vmul.f32 %v3005_v9, %v3814_v44  ;;  %v3001_v22 = vadd.f32 %v1555_v1, %v805_v49 }
 0x17f   : > { %v1634_v24 = vmul.f32 %v3000_v14, %v3814_v44  ;;  %v1637_v39 = vmul.f32 %v3007_v18, %v3814_v44  ;;  %v2695_v27 = vpop.f32.mrb[10].mxu1 }
 0x180   : > { %v3825_v28 = vadd.f32 %v3819_v17, %v1638_v5  ;;  %v1633_v13 = vmul.f32 %v3001_v22, %v3814_v44  ;;  %v2689_v32 = vpop.f32.mrb[2].mxu0  ;;  %v3009_v33 = vadd.f32 %v3008_v6, %v2695_v27  ;;  %v1585_v29 = vpop.f32.mrb[11].mxu1 }
 0x181   : > { %v1649_v16 = vadd.f32 %v3819_v17, %v1634_v24  ;;  %v3830_v36 = vadd.f32 %v3819_v17, %v1637_v39  ;;  %v3002_v10 = vadd.f32 %v2689_v32, %v2469_v58  ;;  %v1565_v20 = vpop.f32.mrb[3].mxu0  ;;  %v3011_v41 = vadd.f32 %v3010_v7, %v1585_v29 }
 0x182   : > { %v3833_v45 = vmul.f32 0.70710677, %v3825_v28  ;;  %v3836_v47 = vadd.f32 %v3819_v17, %v1633_v13  ;;  %v1640_v48 = vmul.f32 %v3009_v33, %v3814_v44  ;;  %v3003_v58 = vadd.f32 %v1565_v20, %v3809_v26 }
 0x183   : > { %v3838_v50 = vmul.f32 0.70710677, %v1649_v16  ;;  %v3841_v51 = vmul.f32 0.70710677, %v3830_v36  ;;  %v1636_v31 = vmul.f32 %v3002_v10, %v3814_v44  ;;  %v1639_v21 = vmul.f32 %v3011_v41, %v3814_v44 }
 0x184   : > { %vm1677_vm2 = vcmp.ge.f32.partialorder %v3833_v45, 0.0  ;;  %v1685_v52 = vsub.f32 0.0, %v3833_v45  ;;  %v3846_v53 = vmul.f32 0.70710677, %v3836_v47  ;;  %v3872_v49 = vadd.f32 %v3819_v17, %v1640_v48 }
 0x185   : > { %vm1673_vm3 = vcmp.ge.f32.partialorder %v3838_v50, 0.0  ;;  %v1681_v35 = vsub.f32 0.0, %v3838_v50  ;;  %vm1676_vm4 = vcmp.ge.f32.partialorder %v3841_v51, 0.0  ;;  %v1684_v54 = vsub.f32 0.0, %v3841_v51 }
 0x186   : > { %v1693_v55 = vsel %vm1677_vm2, %v3833_v45, %v1685_v52  ;;  %vm1672_vm5 = vcmp.ge.f32.partialorder %v3846_v53, 0.0  ;;  %v1680_v56 = vsub.f32 0.0, %v3846_v53  ;;  %v3869_v42 = vadd.f32 %v3819_v17, %v1636_v31 }
 0x187   : > { %v1689_v40 = vsel %vm1673_vm3, %v3838_v50, %v1681_v35  ;;  %v1701_v0 = vmul.f32 0.3275911, %v1693_v55  ;;  %v1692_v4 = vsel %vm1676_vm4, %v3841_v51, %v1684_v54  ;;  %v1805_v2 = vmul.f32 %v1693_v55, %v1693_v55 }
 0x188   : > { %v1697_v23 = vmul.f32 0.3275911, %v1689_v40  ;;  %v1688_v15 = vsel %vm1672_vm5, %v3846_v53, %v1680_v56  ;;  %v1700_v34 = vmul.f32 0.3275911, %v1692_v4  ;;  %v3876_v11 = vmul.f32 0.70710677, %v3869_v42 }
 0x189   : > { %v1709_v43 = vadd.f32 1.0, %v1701_v0  ;;  %v1696_v19 = vmul.f32 0.3275911, %v1688_v15  ;;  %v1801_v62 = vmul.f32 %v1689_v40, %v1689_v40  ;;  %v3879_v63 = vmul.f32 0.70710677, %v3872_v49 }
 0x18a   : > { %v1705_v38 = vadd.f32 1.0, %v1697_v23  ;;  %v1708_v30 = vadd.f32 1.0, %v1700_v34  ;;  %v1635_v46 = vmul.f32 %v3003_v58, %v3814_v44  ;;  %v1813_v59 = vsub.f32 0.0, %v1805_v2 }
 0x18b   : > { %3073 = vrcp.f32 %v1709_v43  ;;  %v1704_v60 = vadd.f32 1.0, %v1696_v19  ;;  %vm1675_vm6 = vcmp.ge.f32.partialorder %v3876_v11, 0.0  ;;  %v1683_v3 = vsub.f32 0.0, %v3876_v11 }
 0x18c   : > { %3075 = vrcp.f32 %v1705_v38  ;;  %vm1679_vm7 = vcmp.ge.f32.partialorder %v3879_v63, 0.0  ;;  %v1687_v26 = vsub.f32 0.0, %v3879_v63  ;;  %v3888_v57 = vadd.f32 %v3819_v17, %v1635_v46 }
 0x18d   : > { %3077 = vrcp.f32 %v1704_v60  ;;  %v1800_v61 = vmul.f32 %v1688_v15, %v1688_v15  ;;  %v1691_v6 = vsel %vm1675_vm6, %v3876_v11, %v1683_v3  ;;  %v3894_v25 = vadd.f32 %v3819_v17, %v1639_v21 }
 0x18e   : > { %3079 = vrcp.f32 %v1708_v30  ;;  %v1804_v7 = vmul.f32 %v1692_v4, %v1692_v4  ;;  %v1699_v37 = vmul.f32 0.3275911, %v1691_v6  ;;  %v1695_v44 = vsel %vm1679_vm7, %v3879_v63, %v1687_v26 }
 0x18f   : > { %v1809_v8 = vsub.f32 0.0, %v1801_v62  ;;  %v3900_v9 = vmul.f32 0.5, %v3825_v28  ;;  %v1703_v12 = vmul.f32 0.3275911, %v1695_v44  ;;  %v3903_v14 = vmul.f32 0.70710677, %v3888_v57 }
 0x190   : > { %v3907_v18 = vmul.f32 0.5, %v1649_v16  ;;  %v1826_v17 = vmul.f32 1.442695, %v1813_v59  ;;  %v1707_v5 = vadd.f32 1.0, %v1699_v37  ;;  %v3910_v22 = vmul.f32 0.70710677, %v3894_v25 }
 0x191   : > { %v1808_v27 = vsub.f32 0.0, %v1800_v61  ;;  %v1711_v28 = vadd.f32 1.0, %v1703_v12  ;;  %vm1674_vm8 = vcmp.ge.f32.partialorder %v3903_v14, 0.0  ;;  %v1812_v32 = vsub.f32 0.0, %v1804_v7 }
 0x192   : > { %3081 = vrcp.f32 %v1707_v5  ;;  %v1682_v33 = vsub.f32 0.0, %v3903_v14  ;;  %v1818_v29 = vmul.f32 1.442695, %v1809_v8  ;;  %vm1678_vm9 = vcmp.ge.f32.partialorder %v3910_v22, 0.0 }
 0x193   : > { %3083 = vrcp.f32 %v1711_v28  ;;  %v1803_v41 = vmul.f32 %v1691_v6, %v1691_v6  ;;  %v1686_v35 = vsub.f32 0.0, %v3910_v22  ;;  %v1816_v56 = vmul.f32 1.442695, %v1808_v27 }
 0x194   : > { %v1690_v52 = vsel %vm1674_vm8, %v3903_v14, %v1682_v33  ;;  %v1824_v23 = vmul.f32 1.442695, %v1812_v32  ;;  %v1807_v15 = vmul.f32 %v1695_v44, %v1695_v44  ;;  %3085 = vpow2.f32 %v1826_v17 }
 0x195   : > { %v3905_v1 = vpop.eup %3073  ;;  %v1698_v40 = vmul.f32 0.3275911, %v1690_v52  ;;  %v1694_v31 = vsel %vm1678_vm9, %v3910_v22, %v1686_v35  ;;  %v1811_v38 = vsub.f32 0.0, %v1803_v41  ;;  %3087 = vpow2.f32 %v1818_v29 }
 0x196   : > { %v3912_v24 = vpop.eup %3075  ;;  %v1733_v39 = vmul.f32 1.0614054, %v3905_v1  ;;  %v1702_v2 = vmul.f32 0.3275911, %v1694_v31  ;;  %v1815_v59 = vsub.f32 0.0, %v1807_v15  ;;  %v1802_v44 = vmul.f32 %v1690_v52, %v1690_v52 }
 0x197   : > { %v1729_v13 = vmul.f32 1.0614054, %v3912_v24  ;;  %v3919_v10 = vpop.eup %3077  ;;  %v1706_v60 = vadd.f32 1.0, %v1698_v40  ;;  %v1822_v37 = vmul.f32 1.442695, %v1811_v38  ;;  %v3956_v41 = vmul.f32 0.5, %v3836_v47 }
 0x198   : > { %v1741_v16 = vadd.f32 -1.4531521, %v1733_v39  ;;  %v1728_v55 = vmul.f32 1.0614054, %v3919_v10  ;;  %v3927_v0 = vpop.eup %3079  ;;  %v1710_v3 = vadd.f32 1.0, %v1702_v2  ;;  %v1810_v35 = vsub.f32 0.0, %v1802_v44 }
 0x199   : > { %v1737_v20 = vadd.f32 -1.4531521, %v1729_v13  ;;  %v1732_v34 = vmul.f32 1.0614054, %v3927_v0  ;;  %3089 = vrcp.f32 %v1706_v60  ;;  %v1830_v13 = vmul.f32 1.442695, %v1815_v59 }
 0x19a   : > { %v1749_v54 = vmul.f32 %v3905_v1, %v1741_v16  ;;  %v1736_v19 = vadd.f32 -1.4531521, %v1728_v55  ;;  %3091 = vpow2.f32 %v1816_v56 }
 0x19b   : > { %v1745_v4 = vmul.f32 %v3912_v24, %v1737_v20  ;;  %v1740_v62 = vadd.f32 -1.4531521, %v1732_v34  ;;  %3093 = vpow2.f32 %v1824_v23 }
 0x19c   : > { %v1757_v43 = vadd.f32 1.4214138, %v1749_v54  ;;  %v1744_v58 = vmul.f32 %v3919_v10, %v1736_v19  ;;  %v3939_v6 = vpop.eup %3081  ;;  %3095 = vrcp.f32 %v1710_v3 }
 0x19d   : > { %v1753_v48 = vadd.f32 1.4214138, %v1745_v4  ;;  %v1748_v61 = vmul.f32 %v3927_v0, %v1740_v62  ;;  %v3941_v8 = vpop.eup %3083  ;;  %v1731_v39 = vmul.f32 1.0614054, %v3939_v6  ;;  %3097 = vpow2.f32 %v1822_v37 }
 0x19e   : > { %v1765_v30 = vmul.f32 %v3905_v1, %v1757_v43  ;;  %v1752_v26 = vadd.f32 1.4214138, %v1744_v58  ;;  %v1735_v28 = vmul.f32 1.0614054, %v3941_v8  ;;  %v3086_v54 = vpop.eup %3085  ;;  %v3963_v43 = vmul.f32 %v1694_v31, %v1694_v31 }
 0x19f   : > { %v1761_v46 = vmul.f32 %v3912_v24, %v1753_v48  ;;  %v1756_v5 = vadd.f32 1.4214138, %v1748_v61  ;;  %v1739_v16 = vadd.f32 -1.4531521, %v1731_v39  ;;  %v3088_v47 = vpop.eup %3087  ;;  %3099 = vpow2.f32 %v1830_v13 }
 0x1a0   : > { %v1773_v21 = vadd.f32 -0.28449672, %v1765_v30  ;;  %v1760_v17 = vmul.f32 %v3919_v10, %v1752_v26  ;;  %v1743_v52 = vadd.f32 -1.4531521, %v1735_v28  ;;  %v1814_v61 = vsub.f32 0.0, %v3963_v43 }
 0x1a1   : > { %v1769_v7 = vadd.f32 -0.28449672, %v1761_v46  ;;  %v1764_v29 = vmul.f32 %v3927_v0, %v1756_v5  ;;  %v1747_v4 = vmul.f32 %v3939_v6, %v1739_v16 }
 0x1a2   : > { %v1781_v12 = vmul.f32 %v3905_v1, %v1773_v21  ;;  %v1768_v33 = vadd.f32 -0.28449672, %v1760_v17  ;;  %v1751_v15 = vmul.f32 %v3941_v8, %v1743_v52 }
 0x1a3   : > { %v1777_v27 = vmul.f32 %v3912_v24, %v1769_v7  ;;  %v1772_v40 = vadd.f32 -0.28449672, %v1764_v29  ;;  %v1755_v38 = vadd.f32 1.4214138, %v1747_v4  ;;  %v3966_v60 = vpop.eup %3089 }
 0x1a4   : > { %v1789_v32 = vadd.f32 0.2548296, %v1781_v12  ;;  %v1776_v56 = vmul.f32 %v3919_v10, %v1768_v33  ;;  %v1759_v2 = vadd.f32 1.4214138, %v1751_v15  ;;  %v3092_v30 = vpop.eup %3091  ;;  %v1730_v26 = vmul.f32 1.0614054, %v3966_v60 }
 0x1a5   : > { %v1785_v20 = vadd.f32 0.2548296, %v1777_v27  ;;  %v1780_v48 = vmul.f32 %v3927_v0, %v1772_v40  ;;  %v1763_v46 = vmul.f32 %v3939_v6, %v1755_v38  ;;  %v3094_v59 = vpop.eup %3093  ;;  %v1660_v38 = vmul.f32 0.5, %v3830_v36 }
 0x1a6   : > { %v1797_v55 = vmul.f32 %v3905_v1, %v1789_v32  ;;  %v1784_v34 = vadd.f32 0.2548296, %v1776_v56  ;;  %v1767_v21 = vmul.f32 %v3941_v8, %v1759_v2  ;;  %v3980_v17 = vpop.eup %3095  ;;  %v1738_v39 = vadd.f32 -1.4531521, %v1730_v26 }
 0x1a7   : > { %v1793_v23 = vmul.f32 %v3912_v24, %v1785_v20  ;;  %v1820_v24 = vmul.f32 1.442695, %v1810_v35  ;;  %v1788_v62 = vadd.f32 0.2548296, %v1780_v48  ;;  %v1771_v12 = vadd.f32 -0.28449672, %v1763_v46 }
 0x1a8   : > { %v1837_v19 = vmul.f32 %v3086_v54, %v1797_v55  ;;  %v1792_v58 = vmul.f32 %v3919_v10, %v1784_v34  ;;  %v1775_v5 = vadd.f32 -0.28449672, %v1767_v21  ;;  %v1746_v16 = vmul.f32 %v3966_v60, %v1738_v39  ;;  %v3098_v54 = vpop.eup %3097 }
 0x1a9   : > { %v1833_v1 = vmul.f32 %v3088_v47, %v1793_v23  ;;  %v1796_v44 = vmul.f32 %v3927_v0, %v1788_v62  ;;  %3101 = vpow2.f32 %v1820_v24  ;;  %v1779_v32 = vmul.f32 %v3939_v6, %v1771_v12  ;;  %v3100_v47 = vpop.eup %3099 }
 0x1aa   : > { %v1845_v31 = vsub.f32 1.0, %v1837_v19  ;;  %v1832_v37 = vmul.f32 %v3092_v30, %v1792_v58  ;;  %v1783_v0 = vmul.f32 %v3941_v8, %v1775_v5  ;;  %v1754_v56 = vadd.f32 1.4214138, %v1746_v16 }
 0x1ab   : > { %v1841_v3 = vsub.f32 1.0, %v1833_v1  ;;  %v1836_v13 = vmul.f32 %v3094_v59, %v1796_v44  ;;  %v1787_v35 = vadd.f32 0.2548296, %v1779_v32  ;;  %v1734_v40 = vmul.f32 1.0614054, %v3980_v17 }
 0x1ac   : > { %v1853_v7 = vsub.f32 0.0, %v1845_v31  ;;  %v1840_v28 = vsub.f32 1.0, %v1832_v37  ;;  %v1791_v55 = vadd.f32 0.2548296, %v1783_v0  ;;  %v1828_v1 = vmul.f32 1.442695, %v1814_v61 }
 0x1ad   : > { %v1849_v10 = vsub.f32 0.0, %v1841_v3  ;;  %v1844_v52 = vsub.f32 1.0, %v1836_v13  ;;  %v1795_v43 = vmul.f32 %v3939_v6, %v1787_v35  ;;  %v1742_v48 = vadd.f32 -1.4531521, %v1734_v40 }
 0x1ae   : > { %v1861_v27 = vsel %vm1677_vm2, %v1845_v31, %v1853_v7  ;;  %v1848_v20 = vsub.f32 0.0, %v1840_v28  ;;  %v1799_v34 = vmul.f32 %v3941_v8, %v1791_v55  ;;  %3103 = vpow2.f32 %v1828_v1 }
 0x1af   : > { %v1857_v33 = vsel %vm1673_vm3, %v1841_v3, %v1849_v10  ;;  %v1869_v29 = vadd.f32 1.0, %v1861_v27  ;;  %v1852_v15 = vsub.f32 0.0, %v1844_v52  ;;  %v1835_v53 = vmul.f32 %v3098_v54, %v1795_v43 }
 0x1b0   : > { %v1865_v45 = vadd.f32 1.0, %v1857_v33  ;;  %v1856_v23 = vsel %vm1672_vm5, %v1840_v28, %v1848_v20  ;;  %v1839_v24 = vmul.f32 %v3100_v47, %v1799_v34  ;;  %v1750_v8 = vmul.f32 %v3980_v17, %v1742_v48 }
 0x1b1   : > { %v1877_v50 = vmul.f32 %v1869_v29, %v3900_v9  ;;  %v1864_v19 = vadd.f32 1.0, %v1856_v23  ;;  %v1762_v9 = vmul.f32 %v3966_v60, %v1754_v56  ;;  %v1843_v31 = vsub.f32 1.0, %v1835_v53 }
 0x1b2   : > { %v1873_v4 = vmul.f32 %v1865_v45, %v3907_v18  ;;  %v1860_v18 = vsel %vm1676_vm4, %v1844_v52, %v1852_v15  ;;  %v1847_v46 = vsub.f32 1.0, %v1839_v24  ;;  %v1758_v51 = vadd.f32 1.4214138, %v1750_v8 }
 0x1b3   : > { %1885 = vst [vmem:[%s3993_s7 + $0x28] sm:$0xff] %v1877_v50  ;;  %v1872_v6 = vmul.f32 %v1864_v19, %v3956_v41  ;;  %v1868_v2 = vadd.f32 1.0, %v1860_v18  ;;  %v1770_v30 = vadd.f32 -0.28449672, %v1762_v9  ;;  %v3102_v58 = vpop.eup %3101  ;;  %v1851_v59 = vsub.f32 0.0, %v1843_v31 }
 0x1b4   : > { %1881 = vst [vmem:[%s3993_s7 + $0x8] sm:$0xff] %v1873_v4  ;;  %v1855_v3 = vsub.f32 0.0, %v1847_v46  ;;  %v1766_v26 = vmul.f32 %v3980_v17, %v1758_v51  ;;  %v1659_v61 = vmul.f32 0.5, %v3869_v42  ;;  %v1663_v12 = vmul.f32 0.5, %v3872_v49 }
 0x1b5   : > { %1880 = vst [vmem:[%s3993_s7] sm:$0xff] %v1872_v6  ;;  %v1876_v62 = vmul.f32 %v1868_v2, %v1660_v38  ;;  %v1778_v36 = vmul.f32 %v3966_v60, %v1770_v30  ;;  %v1859_v41 = vsel %vm1675_vm6, %v1843_v31, %v1851_v59  ;;  %v1662_v35 = vmul.f32 0.5, %v3894_v25 }
 0x1b6   : > { %v1867_v7 = vadd.f32 1.0, %v1859_v41  ;;  %v1863_v37 = vsel %vm1679_vm7, %v1847_v46, %v1855_v3  ;;  %v1774_v5 = vadd.f32 -0.28449672, %v1766_v26 }
 0x1b7   : > { %1884 = vst [vmem:[%s3993_s7 + $0x20] sm:$0xff] %v1876_v62  ;;  %v1786_v21 = vadd.f32 0.2548296, %v1778_v36  ;;  %v1871_v10 = vadd.f32 1.0, %v1863_v37 }
 0x1b8   : > { %v1875_v39 = vmul.f32 %v1867_v7, %v1659_v61  ;;  %v1782_v28 = vmul.f32 %v3980_v17, %v1774_v5  ;;  %v3104_v33 = vpop.eup %3103 }
 0x1b9   : > { %v1794_v44 = vmul.f32 %v3966_v60, %v1786_v21  ;;  %v1879_v11 = vmul.f32 %v1871_v10, %v1663_v12  ;;  %v1658_v60 = vmul.f32 0.5, %v3888_v57 }
 0x1ba   : > { %1883 = vst [vmem:[%s3993_s7 + $0x18] sm:$0xff] %v1875_v39  ;;  %v1790_v42 = vadd.f32 0.2548296, %v1782_v28 }
 0x1bb   : > { %v1834_v27 = vmul.f32 %v3102_v58, %v1794_v44  ;;  %1887 = vst [vmem:[%s3993_s7 + $0x38] sm:$0xff] %v1879_v11 }
 0x1bc   : > { %v1798_v63 = vmul.f32 %v3980_v17, %v1790_v42 }
 0x1bd   : > { %v1842_v13 = vsub.f32 1.0, %v1834_v27 }
 0x1be   : > { %v1838_v0 = vmul.f32 %v3104_v33, %v1798_v63 }
 0x1bf   : > { %v1850_v32 = vsub.f32 0.0, %v1842_v13 }
 0x1c0   : > { %v1846_v45 = vsub.f32 1.0, %v1838_v0 }
 0x1c1   : > { %v1858_v49 = vsel %vm1674_vm8, %v1842_v13, %v1850_v32 }
 0x1c2   : > { %v1866_v29 = vadd.f32 1.0, %v1858_v49  ;;  %v1854_v20 = vsub.f32 0.0, %v1846_v45 }
 0x1c4   : > { %v1874_v16 = vmul.f32 %v1866_v29, %v1658_v60  ;;  %v1862_v52 = vsel %vm1678_vm9, %v1846_v45, %v1854_v20 }
 0x1c5   : > { %v1870_v54 = vadd.f32 1.0, %v1862_v52 }
 0x1c6   : > { %1882 = vst [vmem:[%s3993_s7 + $0x10] sm:$0xff] %v1874_v16 }
 0x1c7   : > { %v1878_v50 = vmul.f32 %v1870_v54, %v1662_v35 }
 0x1c9   : > { %1886 = vst [vmem:[%s3993_s7 + $0x30] sm:$0xff] %v1878_v50 }
 0x1ca PF: > { %s14_s15 = sadd.s32 1, %s3111_s15  }
 0x1cb   : > { %p11_p5 = scmp.ge.s32.totalorder %s14_s15, 4  }
 0x1cd   :  { %13 = sbr.rel (!%p11_p5) target bundleno = 1 (0x1), region = 74 }

// kernel: conv_group_forward.7
= control target key start
LH: loop header
LB: loop body
LE: loop exit
PB: predicated region body
PF: predicated region fallthrough
CT: control target
= control target key end

     0   :  { %10 = vsyncpa [#allocation4], 0  ;;  %s4331_s0 = inlined_call_operand.vmem [shape: f32[2,10,10,128], index: 0, kind: input, shape index: {}]   ;;  %s4332_s1 = inlined_call_operand.vmem [shape: f32[9,128,128], index: 1, kind: input, shape index: {}]   ;;  %s4333_s2 = inlined_call_operand.vmem [shape: f32[1,128], index: 2, kind: input, shape index: {}]   ;;  %s4334_s3 = inlined_call_operand.vmem [shape: f32[1,128], index: 3, kind: input, shape index: {}]   ;;  %s4335_s4 = inlined_call_operand.vmem [shape: f32[128,128], index: 4, kind: input, shape index: {}]   ;;  %s4336_s5 = inlined_call_operand.hbm [shape: f32[128,128], index: 5, kind: output, shape index: {}]  }
   0x1   :  { %12 = vsyncpa [#allocation4 + $0x1], 0  ;;  %s3334_s18 = smov 0   ;;  %s3336_s19 = smov 0  }
   0x2   :  { %s3338_s20 = smov 0   ;;  %s3340_s21 = smov 0  }
   0x3 LB: > { %s3355_s22 = sadd.s32 4294967295, %s3299_s21   ;;  %s2039_s23 = sadd.s32 4294967294, %s3299_s21   ;;  %s3299_s21 = sphi %s3340_s21, %s4343_s21   ;;  %s3295_s20 = sphi %s3338_s20, %s4342_s20   ;;  %s3291_s19 = sphi %s3336_s19, %s4341_s19   ;;  %s3287_s18 = sphi %s3334_s18, %s4340_s18  }
   0x4   : > { %s3359_s24 = sadd.s32 1, %s3299_s21   ;;  %s140_s25 = sadd.s32 1, %s3295_s20 }
   0x5   : > { %s137_s26 = ssub.s32 %s3299_s21, %s3359_s24  ;;  %p150_p0 = scmp.ne.s32.totalorder %s3295_s20, %s3291_s19 }
   0x6   : > { %p138_p1 = scmp.eq.s32.totalorder %s137_s26, 0  ;;  %p151_p2 = scmp.eq.s32.totalorder %s3355_s22, 1 }
   0x7   : > { %p156_p3 = scmp.ne.s32.totalorder %s3291_s19, %s3287_s18  ;;  %p157_p4 = scmp.eq.s32.totalorder %s2039_s23, 1 }
   0x8   : > { %s3370_s27 = scalar_select %p138_p1, %s3295_s20, %s140_s25  }
   0x9   : > { %p3372_p5 = por %p151_p2, %p150_p0  ;;  %p3376_p6 = por %p157_p4, %p156_p3 }
   0xa   : > { %p2042_p7 = scmp.ge.s32.totalorder %s3299_s21, 1  ;;  %p201_p8 = scmp.lt.s32.totalorder %s3299_s21, 3 }
   0xc   : > { %p202_p9 = pnand %p2042_p7, %p201_p8 }
   0xd   : > { %v266_v0 = vld [vmem:[%s4332_s1] sm:$0xff] (!%p202_p9)  ;;  %v267_v1 = vld [vmem:[%s4332_s1 + $0x8] sm:$0xff] (!%p202_p9)  ;;  %p234_p10 = scmp.lt.s32.totalorder (!%p202_p9), %s3355_s22, 1  ;;  %v268_v5 = vld [vmem:[%s4332_s1 + $0x10] sm:$0xff] (!%p202_p9)  ;;  %vm411_vm0 = vcmask (!%p202_p9), 1046528   ;;  %vm590_vm1 = vcmask (!%p202_p9), 1045504  }
   0xe   : > { %205 = sbr.rel (%p202_p9) target bundleno = 481 (0x1e1), region = 40  ;;  %v2095_v2 = vld [vmem:[%s4332_s1 + $0x200] sm:$0xff] (!%p202_p9)  ;;  %v2795_v3 = vpack.c.bf16 (!%p202_p9), %v267_v1, %v266_v0  ;;  %v2096_v4 = vld [vmem:[%s4332_s1 + $0x208] sm:$0xff] (!%p202_p9)  ;;  %v269_v6 = vld [vmem:[%s4332_s1 + $0x18] sm:$0xff] (!%p202_p9)  ;;  %s2045_s25 = sshll.u32 (!%p202_p9), %s3355_s22, 3 }
   0xf   : > { %v2923_v7 = vpack.c.bf16 (!%p202_p9), %v2096_v4, %v2095_v2  ;;  %v2799_v8 = vpack.c.bf16 (!%p202_p9), %v269_v6, %v268_v5  ;;  %v2097_v9 = vld [vmem:[%s4332_s1 + $0x210] sm:$0xff] (!%p202_p9)  ;;  %v2098_v10 = vld [vmem:[%s4332_s1 + $0x218] sm:$0xff] (!%p202_p9)  ;;  %v270_v11 = vld [vmem:[%s4332_s1 + $0x20] sm:$0xff] (!%p202_p9)  ;;  %p4169_p11 = scmp.lt.s32.totalorder (!%p202_p9), %s2045_s25, 15  ;;  %s231_s6 = sand.u32 (!%p202_p9), 1, %s3291_s19  }
  0x10   : > { %2796 = vmatprep.subr.bf16.mxu1 (!%p202_p9), %v2795_v3  ;;  %v2927_v12 = vpack.c.bf16 (!%p202_p9), %v2098_v10, %v2097_v9  ;;  %v271_v13 = vld [vmem:[%s4332_s1 + $0x28] sm:$0xff] (!%p202_p9)  ;;  %v2099_v14 = vld [vmem:[%s4332_s1 + $0x220] sm:$0xff] (!%p202_p9)  ;;  %v272_v18 = vld [vmem:[%s4332_s1 + $0x30] sm:$0xff] (!%p202_p9)  ;;  %s2043_s11 = sshll.u32 (!%p202_p9), %s231_s6, 6  ;;  %s2182_s12 = sshll.u32 (!%p202_p9), %s3355_s22, 10 }
  0x11   : > { %v2100_v15 = vld [vmem:[%s4332_s1 + $0x228] sm:$0xff] (!%p202_p9)  ;;  %2924 = vmatprep.subr.bf16.mxu0 (!%p202_p9), %v2923_v7  ;;  %2798 = vmatpush3.bf16.msra.mxu1 (!%p202_p9), %v2795_v3  ;;  %v2803_v16 = vpack.c.bf16 (!%p202_p9), %v271_v13, %v270_v11  ;;  %v273_v19 = vld [vmem:[%s4332_s1 + $0x38] sm:$0xff] (!%p202_p9)  ;;  %v2101_v20 = vld [vmem:[%s4332_s1 + $0x230] sm:$0xff] (!%p202_p9)  ;;  %s4283_s16 = scalar_lea.hbm (!%p202_p9), %s4336_s5, %s2182_s12  ;;  %s4290_s17 = scalar_lea.sflag (!%p202_p9), [#allocation4], %s231_s6 }
  0x12   : > { %2926 = vmatpush3.bf16.msra.mxu0 (!%p202_p9), %v2923_v7  ;;  %2800 = vmatprep.subr.bf16.mxu1 (!%p202_p9), %v2799_v8  ;;  %v2931_v17 = vpack.c.bf16 (!%p202_p9), %v2100_v15, %v2099_v14  ;;  %v2102_v21 = vld [vmem:[%s4332_s1 + $0x238] sm:$0xff] (!%p202_p9)  ;;  %v2807_v22 = vpack.c.bf16 (!%p202_p9), %v273_v19, %v272_v18  ;;  %v274_v24 = vld [vmem:[%s4332_s1 + $0x40] sm:$0xff] (!%p202_p9)  ;;  %v275_v25 = vld [vmem:[%s4332_s1 + $0x48] sm:$0xff] (!%p202_p9) }
  0x13   : > { %2928 = vmatprep.subr.bf16.mxu0 (!%p202_p9), %v2927_v12  ;;  %v2935_v23 = vpack.c.bf16 (!%p202_p9), %v2102_v21, %v2101_v20  ;;  %v2103_v27 = vld [vmem:[%s4332_s1 + $0x240] sm:$0xff] (!%p202_p9)  ;;  %v2104_v28 = vld [vmem:[%s4332_s1 + $0x248] sm:$0xff] (!%p202_p9)  ;;  %v2811_v32 = vpack.c.bf16 (!%p202_p9), %v275_v25, %v274_v24  ;;  %v276_v35 = vld [vmem:[%s4332_s1 + $0x50] sm:$0xff] (!%p202_p9) }
  0x14   : > { %v2939_v34 = vpack.c.bf16 (!%p202_p9), %v2104_v28, %v2103_v27  ;;  %v277_v36 = vld [vmem:[%s4332_s1 + $0x58] sm:$0xff] (!%p202_p9)  ;;  %v2105_v37 = vld [vmem:[%s4332_s1 + $0x250] sm:$0xff] (!%p202_p9)  ;;  %v278_v42 = vld [vmem:[%s4332_s1 + $0x60] sm:$0xff] (!%p202_p9) }
  0x15   : > { %s235_s7 = scalar_select %p234_p10, %s3355_s22, 1  ;;  %2802 = vmatpush3.bf16.msra.mxu1 %v2799_v8  ;;  %v2106_v38 = vld [vmem:[%s4332_s1 + $0x258] sm:$0xff]  ;;  %v2815_v40 = vpack.c.bf16 %v277_v36, %v276_v35  ;;  %v279_v43 = vld [vmem:[%s4332_s1 + $0x68] sm:$0xff]  ;;  %v2107_v44 = vld [vmem:[%s4332_s1 + $0x260] sm:$0xff] }
  0x16   : > { %2930 = vmatpush3.bf16.msra.mxu0 %v2927_v12  ;;  %2804 = vmatprep.subr.bf16.mxu1 %v2803_v16  ;;  %v2943_v41 = vpack.c.bf16 %v2106_v38, %v2105_v37  ;;  %v2108_v45 = vld [vmem:[%s4332_s1 + $0x268] sm:$0xff]  ;;  %v2819_v46 = vpack.c.bf16 %v279_v43, %v278_v42  ;;  %v280_v48 = vld [vmem:[%s4332_s1 + $0x70] sm:$0xff]  ;;  %v281_v49 = vld [vmem:[%s4332_s1 + $0x78] sm:$0xff]  ;;  %s4345_s25 = smov (!%p4169_p11, %s2045_s25), 15  ;;  %s3301_s22 = smov [#allocation3]  }
  0x17   : > { %s3163_s14 = smul.u32 160, %s235_s7  ;;  %2932 = vmatprep.subr.bf16.mxu0 %v2931_v17  ;;  %v2947_v47 = vpack.c.bf16 %v2108_v45, %v2107_v44  ;;  %v2109_v50 = vld [vmem:[%s4332_s1 + $0x270] sm:$0xff]  ;;  %v2110_v51 = vld [vmem:[%s4332_s1 + $0x278] sm:$0xff]  ;;  %v2823_v52 = vpack.c.bf16 %v281_v49, %v280_v48  ;;  %v2047_v53 = vld [vmem:[%s4332_s1 + $0x80] sm:$0xff]  ;;  %s2046_s30 = sshll.u32 %s4345_s25, 3 }
  0x18   : > { %v2951_v54 = vpack.c.bf16 %v2110_v51, %v2109_v50  ;;  %v2048_v55 = vld [vmem:[%s4332_s1 + $0x88] sm:$0xff]  ;;  %v2111_v58 = vld [vmem:[%s4332_s1 + $0x280] sm:$0xff]  ;;  %v2049_v63 = vld [vmem:[%s4332_s1 + $0x90] sm:$0xff]  ;;  %s4216_s10 = scalar_lea.vmem %s4335_s4, %s2046_s30  ;;  %s3241_s25 = sshll.u32 %s3301_s22, 4  ;;  %s3242_s25 = int_to_ptr.vmem [resolvable:$false] %s3241_s25 }
  0x19   : > { %s3435_s9 = scalar_lea.vmem %s4331_s0, %s3163_s14  ;;  %2806 = vmatpush3.bf16.msra.mxu1 %v2803_v16  ;;  %v2112_v59 = vld [vmem:[%s4332_s1 + $0x288] sm:$0xff]  ;;  %v2827_v60 = vpack.c.bf16 %v2048_v55, %v2047_v53  ;;  %v2050_v3 = vld [vmem:[%s4332_s1 + $0x98] sm:$0xff]  ;;  %v2113_v6 = vld [vmem:[%s4332_s1 + $0x290] sm:$0xff]  ;;  %s3243_s26 = scalar_lea.vmem %s3242_s25, 2048 }
  0x1a   : > { %v3444_v26 = vld [vmem:[%s3435_s9] sm:$0xff]  ;;  %v3454_v29 = vld [vmem:[%s3435_s9 + $0x10] sm:$0xff]  ;;  %v3457_v30 = vld [vmem:[%s3435_s9 + $0x18] sm:$0x3]  ;;  %2934 = vmatpush3.bf16.msra.mxu0 %v2931_v17  ;;  %2808 = vmatprep.subr.bf16.mxu1 %v2807_v22  ;;  %v2955_v2 = vpack.c.bf16 %v2112_v59, %v2111_v58  ;;  %v2831_v11 = vpack.c.bf16 %v2050_v3, %v2049_v63 }
  0x1b   : > { %2431 = vmatprep.mubr.f32.mxu1 %v3444_v26  ;;  %v415_v31 = vrot.slane %v3454_v29, 1  ;;  %v416_v33 = vrot.slane %v3457_v30, 1  ;;  %2936 = vmatprep.subr.bf16.mxu0 %v2935_v23  ;;  %v3508_v56 = vld [vmem:[%s3435_s9 + $0x20] sm:$0xff]  ;;  %v3511_v57 = vld [vmem:[%s3435_s9 + $0x28] sm:$0x3]  ;;  %v3525_v0 = vld [vmem:[%s3435_s9 + $0x30] sm:$0xff] }
  0x1c   : > { %v418_v61 = vrot.slane %v3508_v56, 1  ;;  %v419_v62 = vrot.slane %v3511_v57, 1  ;;  %v3528_v1 = vld [vmem:[%s3435_s9 + $0x38] sm:$0x3]  ;;  %v3534_v4 = vld [vmem:[%s3435_s9 + $0x40] sm:$0xff]  ;;  %v421_v8 = vrot.slane %v3525_v0, 1 }
  0x1d   : > { %v3474_v39 = vsel %vm411_vm0, %v415_v31, %v416_v33  ;;  %2810 = vmatpush3.bf16.msra.mxu1 %v2807_v22  ;;  %v3537_v5 = vld [vmem:[%s3435_s9 + $0x48] sm:$0x3]  ;;  %v2114_v7 = vld [vmem:[%s4332_s1 + $0x298] sm:$0xff]  ;;  %v422_v9 = vrot.slane %v3528_v1, 1  ;;  %v2051_v12 = vld [vmem:[%s4332_s1 + $0xa0] sm:$0xff]  ;;  %v424_v13 = vrot.slane %v3534_v4, 1 }
  0x1e   : > { %2607 = vmatprep.mubr.f32.mxu0 %v3474_v39  ;;  %2938 = vmatpush3.bf16.msra.mxu0 %v2935_v23  ;;  %v3548_v10 = vsel %vm411_vm0, %v418_v61, %v419_v62  ;;  %v425_v14 = vrot.slane %v3537_v5, 1  ;;  %v3556_v15 = vld [vmem:[%s3435_s9 + $0x50] sm:$0xff]  ;;  %v3559_v16 = vld [vmem:[%s3435_s9 + $0x58] sm:$0x3]  ;;  %v2959_v17 = vpack.c.bf16 %v2114_v7, %v2113_v6  ;;  %v2052_v18 = vld [vmem:[%s4332_s1 + $0xa8] sm:$0xff]  ;;  %v594_v61 = vrot.slane %v3454_v29, 2 }
  0x1f   : > { %2812 = vmatprep.subr.bf16.mxu1 %v2811_v32  ;;  %2940 = vmatprep.subr.bf16.mxu0 %v2939_v34  ;;  %v3565_v19 = vld [vmem:[%s3435_s9 + $0x60] sm:$0xff]  ;;  %v3568_v20 = vld [vmem:[%s3435_s9 + $0x68] sm:$0x3]  ;;  %v3579_v23 = vsel %vm411_vm0, %v421_v8, %v422_v9  ;;  %v427_v24 = vrot.slane %v3556_v15, 1  ;;  %v428_v25 = vrot.slane %v3559_v16, 1  ;;  %v2835_v27 = vpack.c.bf16 %v2052_v18, %v2051_v12  ;;  %v2053_v28 = vld [vmem:[%s4332_s1 + $0xb0] sm:$0xff] }
  0x20   : > { %v2115_v21 = vld [vmem:[%s4332_s1 + $0x2a0] sm:$0xff]  ;;  %v2116_v22 = vld [vmem:[%s4332_s1 + $0x2a8] sm:$0xff]  ;;  %v3587_v31 = vsel %vm411_vm0, %v424_v13, %v425_v14  ;;  %v431_v33 = vrot.slane %v3568_v20, 1  ;;  %v3595_v35 = vld [vmem:[%s3435_s9 + $0x78] sm:$0x3]  ;;  %v595_v62 = vrot.slane %v3457_v30, 2 }
  0x21   : > { %2814 = vmatpush3.bf16.msra.mxu1 %v2811_v32  ;;  %v430_v32 = vrot.slane %v3565_v19, 1  ;;  %v2963_v36 = vpack.c.bf16 %v2116_v22, %v2115_v21  ;;  %v2054_v37 = vld [vmem:[%s4332_s1 + $0xb8] sm:$0xff]  ;;  %v3602_v38 = vld [vmem:[%s3435_s9 + $0x80] sm:$0xff]  ;;  %v3617_v43 = vsel %vm411_vm0, %v427_v24, %v428_v25  ;;  %v434_v45 = vrot.slane %v3595_v35, 1  ;;  %v2056_v53 = vld [vmem:[%s4332_s1 + $0xc8] sm:$0xff] }
  0x22   : > { %2942 = vmatpush3.bf16.msra.mxu0 %v2939_v34  ;;  %2816 = vmatprep.subr.bf16.mxu1 %v2815_v40  ;;  %v3592_v34 = vld [vmem:[%s3435_s9 + $0x70] sm:$0xff]  ;;  %v2118_v42 = vld [vmem:[%s4332_s1 + $0x2b8] sm:$0xff]  ;;  %v917_v49 = vrot.slane %v3602_v38, 1  ;;  %v2119_v55 = vld [vmem:[%s4332_s1 + $0x2c0] sm:$0xff] }
  0x23   : > { %2944 = vmatprep.subr.bf16.mxu0 %v2943_v41  ;;  %v433_v44 = vrot.slane %v3592_v34, 1  ;;  %v3625_v48 = vsel %vm411_vm0, %v430_v32, %v431_v33  ;;  %v2120_v58 = vld [vmem:[%s4332_s1 + $0x2c8] sm:$0xff]  ;;  %v2057_v6 = vld [vmem:[%s4332_s1 + $0xd0] sm:$0xff]  ;;  %v2058_v7 = vld [vmem:[%s4332_s1 + $0xd8] sm:$0xff] }
  0x24   : > { %v2971_v3 = vpack.c.bf16 %v2120_v58, %v2119_v55  ;;  %v2121_v30 = vld [vmem:[%s4332_s1 + $0x2d0] sm:$0xff]  ;;  %v2122_v8 = vld [vmem:[%s4332_s1 + $0x2d8] sm:$0xff]  ;;  %v2847_v12 = vpack.c.bf16 %v2058_v7, %v2057_v6  ;;  %v2060_v18 = vld [vmem:[%s4332_s1 + $0xe8] sm:$0xff]  ;;  %v598_v55 = vrot.slane %v3511_v57, 2  ;;  %v600_v6 = vrot.slane %v3525_v0, 2 }
  0x25   : > { %2818 = vmatpush3.bf16.msra.mxu1 %v2815_v40  ;;  %v3605_v40 = vld [vmem:[%s3435_s9 + $0x88] sm:$0x3]  ;;  %v3676_v13 = vld [vmem:[%s3435_s9 + $0x90] sm:$0xff]  ;;  %v2975_v14 = vpack.c.bf16 %v2122_v8, %v2121_v30  ;;  %v2123_v24 = vld [vmem:[%s4332_s1 + $0x2e0] sm:$0xff]  ;;  %v601_v7 = vrot.slane %v3528_v1, 2 }
  0x26   : > { %2946 = vmatpush3.bf16.msra.mxu0 %v2943_v41  ;;  %2820 = vmatprep.subr.bf16.mxu1 %v2819_v46  ;;  %v2117_v41 = vld [vmem:[%s4332_s1 + $0x2b0] sm:$0xff]  ;;  %v918_v50 = vrot.slane %v3605_v40, 1  ;;  %v1365_v21 = vrot.slane %v3676_v13, 1  ;;  %v1515_v22 = vrot.slane %v3676_v13, 2  ;;  %v2124_v25 = vld [vmem:[%s4332_s1 + $0x2e8] sm:$0xff]  ;;  %v2130_v57 = vld [vmem:[%s4332_s1 + $0x318] sm:$0xff] }
  0x27   : > { %2948 = vmatprep.subr.bf16.mxu0 %v2947_v47  ;;  %v2967_v51 = vpack.c.bf16 %v2118_v42, %v2117_v41  ;;  %v2062_v41 = vld [vmem:[%s4332_s1 + $0xf8] sm:$0xff]  ;;  %v2068_v1 = vld [vmem:[%s4332_s1 + $0x128] sm:$0xff] }
  0x29   : > { %2822 = vmatpush3.bf16.msra.mxu1 %v2819_v46  ;;  %v3622_v46 = vld [vmem:[%s3435_s9 + $0x8] sm:$0x3] }
  0x2a   : > { %2950 = vmatpush3.bf16.msra.mxu0 %v2947_v47  ;;  %2824 = vmatprep.subr.bf16.mxu1 %v2823_v52  ;;  %v2839_v47 = vpack.c.bf16 %v2054_v37, %v2053_v28  ;;  %v413_v59 = vrot.slane %v3622_v46, 1  ;;  %v2061_v37 = vld [vmem:[%s4332_s1 + $0xf0] sm:$0xff] }
  0x2b   : > { %2952 = vmatprep.subr.bf16.mxu0 %v2951_v54 }
  0x2d   : > { %2826 = vmatpush3.bf16.msra.mxu1 %v2823_v52  ;;  %v2055_v52 = vld [vmem:[%s4332_s1 + $0xc0] sm:$0xff] }
  0x2e   : > { %2954 = vmatpush3.bf16.msra.mxu0 %v2951_v54  ;;  %2828 = vmatprep.subr.bf16.mxu1 %v2827_v60  ;;  %v412_v54 = vrot.slane %v3444_v26, 1  ;;  %v2843_v63 = vpack.c.bf16 %v2056_v53, %v2055_v52  ;;  %v2064_v52 = vld [vmem:[%s4332_s1 + $0x108] sm:$0xff]  ;;  %v2127_v53 = vld [vmem:[%s4332_s1 + $0x300] sm:$0xff] }
  0x2f   : > { %2956 = vmatprep.subr.bf16.mxu0 %v2955_v2 }
  0x30   : > { %2432 = vmatmul.mubr.f32.vlgmr.msra.gmra.mrb[0].mxu1 %v3454_v29  ;;  %v414_v9 = vsel %vm411_vm0, %v412_v54, %v413_v59  ;;  %v2128_v54 = vld [vmem:[%s4332_s1 + $0x308] sm:$0xff]  ;;  %v597_v59 = vrot.slane %v3508_v56, 2 }
  0x31   : > { %2830 = vmatpush3.bf16.msra.mxu1 %v2827_v60  ;;  %2608 = vmatmul.mubr.f32.vlgmr.msra.gmra.mrb[0].mxu0 %v3548_v10  ;;  %v3648_v60 = vsel %vm411_vm0, %v433_v44, %v434_v45  ;;  %v2125_v45 = vld [vmem:[%s4332_s1 + $0x2f0] sm:$0xff] }
  0x32   : > { %2958 = vmatpush3.bf16.msra.mxu0 %v2955_v2  ;;  %2832 = vmatprep.subr.bf16.mxu1 %v2831_v11  ;;  %v3653_v2 = vsel %vm411_vm0, %v917_v49, %v918_v50  ;;  %v2855_v49 = vpack.c.bf16 %v2062_v41, %v2061_v37  ;;  %v3741_v30 = vsel %vm590_vm1, %v597_v59, %v598_v55  ;;  %v612_v41 = vrot.slane %v3592_v34, 2  ;;  %v2135_v55 = vld [vmem:[%s4332_s1 + $0x340] sm:$0xff] }
  0x33   : > { %2960 = vmatprep.subr.bf16.mxu0 %v2959_v17  ;;  %2434 = vmatprep.mubr.f32.mxu1 %v3508_v56 }
  0x34   : > { %2610 = vmatprep.mubr.f32.mxu0 %v3579_v23  ;;  %2435 = vmatmul.mubr.f32.gmra.mrb[2].mxu1 %v3525_v0 }
  0x35   : > { %2834 = vmatpush3.bf16.msra.mxu1 %v2831_v11  ;;  %2611 = vmatmul.mubr.f32.gmra.mrb[2].mxu0 %v3587_v31  ;;  %v3673_v11 = vsel %vm590_vm1, %v594_v61, %v595_v62  ;;  %v2987_v61 = vpack.c.bf16 %v2128_v54, %v2127_v53  ;;  %v2065_v62 = vld [vmem:[%s4332_s1 + $0x110] sm:$0xff]  ;;  %v2071_v53 = vld [vmem:[%s4332_s1 + $0x140] sm:$0xff]  ;;  %v591_v54 = vrot.slane %v3444_v26, 2 }
  0x36   : > { %2962 = vmatpush3.bf16.msra.mxu0 %v2959_v17  ;;  %2836 = vmatprep.subr.bf16.mxu1 %v2835_v27  ;;  %v2059_v17 = vld [vmem:[%s4332_s1 + $0xe0] sm:$0xff] }
  0x37   : > { %2964 = vmatprep.subr.bf16.mxu0 %v2963_v36  ;;  %2437 = vmatprep.mubr.f32.mxu1 %v3534_v4  ;;  %v2851_v33 = vpack.c.bf16 %v2060_v18, %v2059_v17  ;;  %v2067_v17 = vld [vmem:[%s4332_s1 + $0x120] sm:$0xff] }
  0x38   : > { %2613 = vmatprep.mubr.f32.mxu0 %v3617_v43  ;;  %2438 = vmatmul.mubr.f32.gmra.mrb[4].mxu1 %v3556_v15  ;;  %v2131_v18 = vld [vmem:[%s4332_s1 + $0x320] sm:$0xff] }
  0x39   : > { %2838 = vmatpush3.bf16.msra.mxu1 %v2835_v27  ;;  %2614 = vmatmul.mubr.f32.gmra.mrb[4].mxu0 %v3625_v48  ;;  %v265_v27 = vld [vmem:[%s3435_s9 + $0x98] sm:$0x3]  ;;  %s4243_s9 = scalar_lea.vmem [#allocation3], %s2043_s11 }
  0x3a   : > { %2966 = vmatpush3.bf16.msra.mxu0 %v2963_v36  ;;  %2840 = vmatprep.subr.bf16.mxu1 %v2839_v47  ;;  %v1366_v28 = vrot.slane %v265_v27, 1  ;;  %v1516_v32 = vrot.slane %v265_v27, 2  ;;  %v2979_v36 = vpack.c.bf16 %v2124_v25, %v2123_v24  ;;  %v607_v24 = vrot.slane %v3559_v16, 2  ;;  %v2070_v16 = vld [vmem:[%s4332_s1 + $0x138] sm:$0xff]  ;;  %s1965_s13 = sshll.u32 %s4243_s9, 4  ;;  %s4285_s13 = int_to_ptr.vmem [resolvable:$true] %s1965_s13 }
  0x3b   : > { %2968 = vmatprep.subr.bf16.mxu0 %v2967_v51  ;;  %2440 = vmatprep.mubr.f32.mxu1 %v3565_v19  ;;  %v609_v27 = vrot.slane %v3565_v19, 2  ;;  %s3237_s23 = scalar_lea.vmem %s4285_s13, 1024  ;;  %p3244_p1 = scmp.lt.s32.totalorder %s4285_s13, %s3242_s25 }
  0x3c   : > { %2616 = vmatprep.mubr.f32.mxu0 %v3648_v60  ;;  %2441 = vmatmul.mubr.f32.gmra.mrb[6].mxu1 %v3592_v34  ;;  %v3701_v42 = vsel %vm411_vm0, %v1365_v21, %v1366_v28  ;;  %v3704_v44 = vsel %vm590_vm1, %v1515_v22, %v1516_v32  ;;  %v3760_v21 = vsel %vm590_vm1, %v600_v6, %v601_v7  ;;  %v606_v22 = vrot.slane %v3556_v15, 2  ;;  %p3238_p12 = scmp.ne.s32.totalorder %s4285_s13, %s3237_s23  ;;  %p3245_p2 = scmp.lt.s32.totalorder %s3243_s26, %s3237_s23 }
  0x3d   : > { %2842 = vmatpush3.bf16.msra.mxu1 %v2839_v47  ;;  %2617 = vmatmul.mubr.f32.gmra.mrb[6].mxu0 %v3653_v2  ;;  %v2126_v47 = vld [vmem:[%s4332_s1 + $0x2f8] sm:$0xff]  ;;  %v610_v28 = vrot.slane %v3568_v20, 2 }
  0x3e   : > { %2970 = vmatpush3.bf16.msra.mxu0 %v2967_v51  ;;  %2844 = vmatprep.subr.bf16.mxu1 %v2843_v63  ;;  %v2983_v50 = vpack.c.bf16 %v2126_v47, %v2125_v45  ;;  %v2063_v51 = vld [vmem:[%s4332_s1 + $0x100] sm:$0xff]  ;;  %v2134_v20 = vld [vmem:[%s4332_s1 + $0x338] sm:$0xff]  ;;  %v3786_v37 = vsel %vm590_vm1, %v606_v22, %v607_v24  ;;  %v613_v45 = vrot.slane %v3595_v35, 2  ;;  %v2072_v35 = vld [vmem:[%s4332_s1 + $0x148] sm:$0xff]  ;;  %p3239_p13 = pnand %p3238_p12, %p3372_p5  ;;  %p3246_p3 = por %p3245_p2, %p3244_p1 }
  0x3f   : > { %2972 = vmatprep.subr.bf16.mxu0 %v2971_v3  ;;  %2475 = vmatprep.mubr.f32.mxu1 %v414_v9  ;;  %v2859_v58 = vpack.c.bf16 %v2064_v52, %v2063_v51  ;;  %v603_v9 = vrot.slane %v3534_v4, 2  ;;  %v1068_v51 = vrot.slane %v3605_v40, 2  ;;  %v2136_v40 = vld [vmem:[%s4332_s1 + $0x348] sm:$0xff]  ;;  %v2875_v26 = vpack.c.bf16 %v2072_v35, %v2071_v53  ;;  %v2078_v22 = vld [vmem:[%s4332_s1 + $0x178] sm:$0xff]  ;;  %v2141_v24 = vld [vmem:[%s4332_s1 + $0x370] sm:$0xff] }
  0x40   : > { %2651 = vmatprep.mubr.f32.mxu0 %v3673_v11  ;;  %v3814_v59 = vsel %vm590_vm1, %v612_v41, %v613_v45  ;;  %v2081_v45 = vld [vmem:[%s4332_s1 + $0x190] sm:$0xff]  ;;  %v2083_v35 = vld [vmem:[%s4332_s1 + $0x1a0] sm:$0xff]  ;;  %p3240_p0 = pneg %p3239_p13 }
  0x41   : > { %2846 = vmatpush3.bf16.msra.mxu1 %v2843_v63  ;;  %v2066_v63 = vld [vmem:[%s4332_s1 + $0x118] sm:$0xff] }
  0x42   : > { %2974 = vmatpush3.bf16.msra.mxu0 %v2971_v3  ;;  %2848 = vmatprep.subr.bf16.mxu1 %v2847_v12  ;;  %v2129_v3 = vld [vmem:[%s4332_s1 + $0x310] sm:$0xff]  ;;  %v2863_v8 = vpack.c.bf16 %v2066_v63, %v2065_v62  ;;  %v3003_v62 = vpack.c.bf16 %v2136_v40, %v2135_v55  ;;  %v2147_v55 = vld [vmem:[%s4332_s1 + $0x3a0] sm:$0xff]  ;;  %v2148_v40 = vld [vmem:[%s4332_s1 + $0x3a8] sm:$0xff]  ;;  %p3247_p4 = pnand %p3246_p3, %p3240_p0 }
  0x43   : > { %2976 = vmatprep.subr.bf16.mxu0 %v2975_v14  ;;  %v2073_v63 = vld [vmem:[%s4332_s1 + $0x150] sm:$0xff] }
  0x45   : > { %2850 = vmatpush3.bf16.msra.mxu1 %v2847_v12  ;;  %v604_v12 = vrot.slane %v3537_v5, 2  ;;  %v2132_v5 = vld [vmem:[%s4332_s1 + $0x328] sm:$0xff] }
  0x46   : > { %2978 = vmatpush3.bf16.msra.mxu0 %v2975_v14  ;;  %2852 = vmatprep.subr.bf16.mxu1 %v2851_v33  ;;  %v2991_v14 = vpack.c.bf16 %v2130_v57, %v2129_v3  ;;  %v2995_v32 = vpack.c.bf16 %v2132_v5, %v2131_v18  ;;  %v2137_v3 = vld [vmem:[%s4332_s1 + $0x350] sm:$0xff]  ;;  %v2138_v57 = vld [vmem:[%s4332_s1 + $0x358] sm:$0xff] }
  0x47   : > { %2980 = vmatprep.subr.bf16.mxu0 %v2979_v36  ;;  %v3765_v25 = vsel %vm590_vm1, %v603_v9, %v604_v12  ;;  %v2075_v9 = vld [vmem:[%s4332_s1 + $0x160] sm:$0xff]  ;;  %v2076_v12 = vld [vmem:[%s4332_s1 + $0x168] sm:$0xff]  ;;  %v2077_v5 = vld [vmem:[%s4332_s1 + $0x170] sm:$0xff] }
  0x49   : > { %2854 = vmatpush3.bf16.msra.mxu1 %v2851_v33  ;;  %v2069_v33 = vld [vmem:[%s4332_s1 + $0x130] sm:$0xff] }
  0x4a   : > { %2982 = vmatpush3.bf16.msra.mxu0 %v2979_v36  ;;  %2856 = vmatprep.subr.bf16.mxu1 %v2855_v49  ;;  %v2133_v36 = vld [vmem:[%s4332_s1 + $0x330] sm:$0xff]  ;;  %v2871_v47 = vpack.c.bf16 %v2070_v16, %v2069_v33  ;;  %v2080_v33 = vld [vmem:[%s4332_s1 + $0x188] sm:$0xff]  ;;  %v2143_v16 = vld [vmem:[%s4332_s1 + $0x380] sm:$0xff] }
  0x4b   : > { %2984 = vmatprep.subr.bf16.mxu0 %v2983_v50  ;;  %v2999_v52 = vpack.c.bf16 %v2134_v20, %v2133_v36  ;;  %v2144_v36 = vld [vmem:[%s4332_s1 + $0x388] sm:$0xff] }
  0x4c   : > { %v3019_v41 = vpack.c.bf16 %v2144_v36, %v2143_v16  ;;  %v2094_v16 = vld [vmem:[%s4332_s1 + $0x1f8] sm:$0xff]  ;;  %v2157_v36 = vld [vmem:[%s4332_s1 + $0x3f0] sm:$0xff] }
  0x4d   : > { %2858 = vmatpush3.bf16.msra.mxu1 %v2855_v49  ;;  %v3791_v49 = vsel %vm590_vm1, %v609_v27, %v610_v28  ;;  %v2887_v27 = vpack.c.bf16 %v2078_v22, %v2077_v5  ;;  %v2154_v5 = vld [vmem:[%s4332_s1 + $0x3d8] sm:$0xff] }
  0x4e   : > { %2986 = vmatpush3.bf16.msra.mxu0 %v2983_v50  ;;  %2860 = vmatprep.subr.bf16.mxu1 %v2859_v58  ;;  %v1067_v50 = vrot.slane %v3602_v38, 2 }
  0x4f   : > { %2988 = vmatprep.subr.bf16.mxu0 %v2987_v61 }
  0x50   : > { %2476 = vmatmul.mubr.f32.vlgmr.msra.gmra.mrb[0].mxu1 %v3474_v39  ;;  %v2867_v39 = vpack.c.bf16 %v2068_v1, %v2067_v17  ;;  %v2140_v17 = vld [vmem:[%s4332_s1 + $0x368] sm:$0xff]  ;;  %v2883_v1 = vpack.c.bf16 %v2076_v12, %v2075_v9 }
  0x51   : > { %2862 = vmatpush3.bf16.msra.mxu1 %v2859_v58  ;;  %2652 = vmatmul.mubr.f32.vlgmr.msra.gmra.mrb[0].mxu0 %v3741_v30  ;;  %v592_v58 = vrot.slane %v3622_v46, 2  ;;  %v2074_v46 = vld [vmem:[%s4332_s1 + $0x158] sm:$0xff]  ;;  %v2152_v9 = vld [vmem:[%s4332_s1 + $0x3c8] sm:$0xff] }
  0x52   : > { %2990 = vmatpush3.bf16.msra.mxu0 %v2987_v61  ;;  %2864 = vmatprep.subr.bf16.mxu1 %v2863_v8  ;;  %v3817_v61 = vsel %vm590_vm1, %v1067_v50, %v1068_v51  ;;  %v2879_v7 = vpack.c.bf16 %v2074_v46, %v2073_v63  ;;  %v2145_v50 = vld [vmem:[%s4332_s1 + $0x390] sm:$0xff]  ;;  %v2146_v51 = vld [vmem:[%s4332_s1 + $0x398] sm:$0xff] }
  0x53   : > { %2992 = vmatprep.subr.bf16.mxu0 %v2991_v14  ;;  %2478 = vmatprep.mubr.f32.mxu1 %v3548_v10  ;;  %v593_v6 = vsel %vm590_vm1, %v591_v54, %v592_v58  ;;  %v3023_v53 = vpack.c.bf16 %v2146_v51, %v2145_v50  ;;  %v2084_v54 = vld [vmem:[%s4332_s1 + $0x1a8] sm:$0xff]  ;;  %v2149_v63 = vld [vmem:[%s4332_s1 + $0x3b0] sm:$0xff]  ;;  %v2150_v46 = vld [vmem:[%s4332_s1 + $0x3b8] sm:$0xff] }
  0x54   : > { %2654 = vmatprep.mubr.f32.mxu0 %v3760_v21  ;;  %2479 = vmatmul.mubr.f32.gmra.mrb[2].mxu1 %v3579_v23  ;;  %v2899_v58 = vpack.c.bf16 %v2084_v54, %v2083_v35  ;;  %v2161_v51 = vld [vmem:[%s4332_s1 + $0x410] sm:$0xff]  ;;  %v2163_v35 = vld [vmem:[%s4332_s1 + $0x420] sm:$0xff]  ;;  %v2164_v54 = vld [vmem:[%s4332_s1 + $0x428] sm:$0xff] }
  0x55   : > { %2866 = vmatpush3.bf16.msra.mxu1 %v2863_v8  ;;  %2655 = vmatmul.mubr.f32.gmra.mrb[2].mxu0 %v3765_v25  ;;  %v3007_v8 = vpack.c.bf16 %v2138_v57, %v2137_v3  ;;  %v3031_v57 = vpack.c.bf16 %v2150_v46, %v2149_v63 }
  0x56   : > { %2994 = vmatpush3.bf16.msra.mxu0 %v2991_v14  ;;  %2868 = vmatprep.subr.bf16.mxu1 %v2867_v39  ;;  %v2139_v14 = vld [vmem:[%s4332_s1 + $0x360] sm:$0xff] }
  0x57   : > { %2996 = vmatprep.subr.bf16.mxu0 %v2995_v32  ;;  %2481 = vmatprep.mubr.f32.mxu1 %v3587_v31  ;;  %v3011_v18 = vpack.c.bf16 %v2140_v17, %v2139_v14  ;;  %v2089_v17 = vld [vmem:[%s4332_s1 + $0x1d0] sm:$0xff] }
  0x58   : > { %2657 = vmatprep.mubr.f32.mxu0 %v3786_v37  ;;  %2482 = vmatmul.mubr.f32.gmra.mrb[4].mxu1 %v3617_v43 }
  0x59   : > { %2870 = vmatpush3.bf16.msra.mxu1 %v2867_v39  ;;  %2658 = vmatmul.mubr.f32.gmra.mrb[4].mxu0 %v3791_v49  ;;  %v2142_v39 = vld [vmem:[%s4332_s1 + $0x378] sm:$0xff] }
  0x5a   : > { %2998 = vmatpush3.bf16.msra.mxu0 %v2995_v32  ;;  %2872 = vmatprep.subr.bf16.mxu1 %v2871_v47  ;;  %v3015_v28 = vpack.c.bf16 %v2142_v39, %v2141_v24  ;;  %v2079_v32 = vld [vmem:[%s4332_s1 + $0x180] sm:$0xff] }
  0x5b   : > { %3000 = vmatprep.subr.bf16.mxu0 %v2999_v52  ;;  %2484 = vmatprep.mubr.f32.mxu1 %v3625_v48  ;;  %v2891_v20 = vpack.c.bf16 %v2080_v33, %v2079_v32  ;;  %v2091_v39 = vld [vmem:[%s4332_s1 + $0x1e0] sm:$0xff] }
  0x5c   : > { %2660 = vmatprep.mubr.f32.mxu0 %v3814_v59  ;;  %2485 = vmatmul.mubr.f32.gmra.mrb[6].mxu1 %v3648_v60 }
  0x5d   : > { %2874 = vmatpush3.bf16.msra.mxu1 %v2871_v47  ;;  %2661 = vmatmul.mubr.f32.gmra.mrb[6].mxu0 %v3817_v61  ;;  %v2082_v47 = vld [vmem:[%s4332_s1 + $0x198] sm:$0xff] }
  0x5e   : > { %3002 = vmatpush3.bf16.msra.mxu0 %v2999_v52  ;;  %2876 = vmatprep.subr.bf16.mxu1 %v2875_v26  ;;  %v2895_v52 = vpack.c.bf16 %v2082_v47, %v2081_v45  ;;  %v2159_v45 = vld [vmem:[%s4332_s1 + $0x400] sm:$0xff]  ;;  %v2160_v47 = vld [vmem:[%s4332_s1 + $0x408] sm:$0xff] }
  0x5f   : > { %3004 = vmatprep.subr.bf16.mxu0 %v3003_v62  ;;  %2519 = vmatprep.mubr.f32.mxu1 %v593_v6  ;;  %v2087_v6 = vld [vmem:[%s4332_s1 + $0x1c0] sm:$0xff]  ;;  %v3051_v50 = vpack.c.bf16 %v2160_v47, %v2159_v45 }
  0x60   : > { %2695 = vmatprep.mubr.f32.mxu0 %v3508_v56 }
  0x61   : > { %2878 = vmatpush3.bf16.msra.mxu1 %v2875_v26  ;;  %v3027_v26 = vpack.c.bf16 %v2148_v40, %v2147_v55  ;;  %v3059_v55 = vpack.c.bf16 %v2164_v54, %v2163_v35  ;;  %v2166_v40 = vld [vmem:[%s4332_s1 + $0x438] sm:$0xff] }
  0x62   : > { %3006 = vmatpush3.bf16.msra.mxu0 %v3003_v62  ;;  %2880 = vmatprep.subr.bf16.mxu1 %v2879_v7  ;;  %v2086_v62 = vld [vmem:[%s4332_s1 + $0x1b8] sm:$0xff] }
  0x63   : > { %3008 = vmatprep.subr.bf16.mxu0 %v3007_v8 }
  0x65   : > { %2882 = vmatpush3.bf16.msra.mxu1 %v2879_v7  ;;  %v2088_v7 = vld [vmem:[%s4332_s1 + $0x1c8] sm:$0xff] }
  0x66   : > { %3010 = vmatpush3.bf16.msra.mxu0 %v3007_v8  ;;  %2884 = vmatprep.subr.bf16.mxu1 %v2883_v1  ;;  %v2151_v8 = vld [vmem:[%s4332_s1 + $0x3c0] sm:$0xff]  ;;  %v2907_v12 = vpack.c.bf16 %v2088_v7, %v2087_v6 }
  0x67   : > { %3012 = vmatprep.subr.bf16.mxu0 %v3011_v18  ;;  %v3035_v14 = vpack.c.bf16 %v2152_v9, %v2151_v8 }
  0x69   : > { %2886 = vmatpush3.bf16.msra.mxu1 %v2883_v1  ;;  %v2090_v1 = vld [vmem:[%s4332_s1 + $0x1d8] sm:$0xff] }
  0x6a   : > { %3014 = vmatpush3.bf16.msra.mxu0 %v3011_v18  ;;  %2888 = vmatprep.subr.bf16.mxu1 %v2887_v27  ;;  %v2153_v18 = vld [vmem:[%s4332_s1 + $0x3d0] sm:$0xff]  ;;  %v2911_v22 = vpack.c.bf16 %v2090_v1, %v2089_v17  ;;  %v4053_v17 = vld [vmem:[%s4334_s3] ss:$0 sm:$0xff] }
  0x6b   : > { %3016 = vmatprep.subr.bf16.mxu0 %v3015_v28  ;;  %v3039_v24 = vpack.c.bf16 %v2154_v5, %v2153_v18 }
  0x6d   : > { %2890 = vmatpush3.bf16.msra.mxu1 %v2887_v27  ;;  %v2092_v27 = vld [vmem:[%s4332_s1 + $0x1e8] sm:$0xff] }
  0x6e   : > { %3018 = vmatpush3.bf16.msra.mxu0 %v3015_v28  ;;  %2892 = vmatprep.subr.bf16.mxu1 %v2891_v20  ;;  %v2155_v28 = vld [vmem:[%s4332_s1 + $0x3e0] sm:$0xff]  ;;  %v2915_v32 = vpack.c.bf16 %v2092_v27, %v2091_v39 }
  0x6f   : > { %3020 = vmatprep.subr.bf16.mxu0 %v3019_v41 }
  0x70   : > { %2520 = vmatmul.mubr.f32.vlgmr.msra.gmra.mrb[0].mxu1 %v3673_v11  ;;  %v2085_v11 = vld [vmem:[%s4332_s1 + $0x1b0] sm:$0xff] }
  0x71   : > { %2894 = vmatpush3.bf16.msra.mxu1 %v2891_v20  ;;  %2696 = vmatmul.mubr.f32.vlgmr.msra.gmra.mrb[0].mxu0 %v3525_v0  ;;  %v2903_v3 = vpack.c.bf16 %v2086_v62, %v2085_v11 }
  0x72   : > { %3022 = vmatpush3.bf16.msra.mxu0 %v3019_v41  ;;  %2896 = vmatprep.subr.bf16.mxu1 %v2895_v52 }
  0x73   : > { %3024 = vmatprep.subr.bf16.mxu0 %v3023_v53  ;;  %2522 = vmatprep.mubr.f32.mxu1 %v3741_v30 }
  0x74   : > { %2698 = vmatprep.mubr.f32.mxu0 %v3534_v4  ;;  %2523 = vmatmul.mubr.f32.gmra.mrb[2].mxu1 %v3760_v21 }
  0x75   : > { %2898 = vmatpush3.bf16.msra.mxu1 %v2895_v52  ;;  %2699 = vmatmul.mubr.f32.gmra.mrb[2].mxu0 %v3556_v15  ;;  %v2162_v52 = vld [vmem:[%s4332_s1 + $0x418] sm:$0xff] }
  0x76   : > { %3026 = vmatpush3.bf16.msra.mxu0 %v3023_v53  ;;  %2900 = vmatprep.subr.bf16.mxu1 %v2899_v58  ;;  %v3055_v53 = vpack.c.bf16 %v2162_v52, %v2161_v51 }
  0x77   : > { %3028 = vmatprep.subr.bf16.mxu0 %v3027_v26  ;;  %2525 = vmatprep.mubr.f32.mxu1 %v3765_v25 }
  0x78   : > { %2701 = vmatprep.mubr.f32.mxu0 %v3565_v19  ;;  %2526 = vmatmul.mubr.f32.gmra.mrb[4].mxu1 %v3786_v37 }
  0x79   : > { %2902 = vmatpush3.bf16.msra.mxu1 %v2899_v58  ;;  %2702 = vmatmul.mubr.f32.gmra.mrb[4].mxu0 %v3592_v34 }
  0x7a   : > { %3030 = vmatpush3.bf16.msra.mxu0 %v3027_v26  ;;  %2904 = vmatprep.subr.bf16.mxu1 %v2903_v3 }
  0x7b   : > { %3032 = vmatprep.subr.bf16.mxu0 %v3031_v57  ;;  %2528 = vmatprep.mubr.f32.mxu1 %v3791_v49 }
  0x7c   : > { %2704 = vmatprep.mubr.f32.mxu0 %v3602_v38  ;;  %2529 = vmatmul.mubr.f32.gmra.mrb[6].mxu1 %v3814_v59 }
  0x7d   : > { %2906 = vmatpush3.bf16.msra.mxu1 %v2903_v3  ;;  %2705 = vmatmul.mubr.f32.gmra.mrb[6].mxu0 %v3676_v13  ;;  %v2156_v13 = vld [vmem:[%s4332_s1 + $0x3e8] sm:$0xff] }
  0x7e   : > { %3034 = vmatpush3.bf16.msra.mxu0 %v3031_v57  ;;  %2908 = vmatprep.subr.bf16.mxu1 %v2907_v12  ;;  %v3043_v33 = vpack.c.bf16 %v2156_v13, %v2155_v28 }
  0x7f   : > { %3036 = vmatprep.subr.bf16.mxu0 %v3035_v14  ;;  %2563 = vmatprep.mubr.f32.mxu1 %v3454_v29  ;;  %v2093_v29 = vld [vmem:[%s4332_s1 + $0x1f0] sm:$0xff] }
  0x80   : > { %2739 = vmatprep.mubr.f32.mxu0 %v3548_v10  ;;  %v2158_v10 = vld [vmem:[%s4332_s1 + $0x3f8] sm:$0xff]  ;;  %v2919_v20 = vpack.c.bf16 %v2094_v16, %v2093_v29 }
  0x81   : > { %2910 = vmatpush3.bf16.msra.mxu1 %v2907_v12  ;;  %v3047_v41 = vpack.c.bf16 %v2158_v10, %v2157_v36 }
  0x82   : > { %3038 = vmatpush3.bf16.msra.mxu0 %v3035_v14  ;;  %2912 = vmatprep.subr.bf16.mxu1 %v2911_v22 }
  0x83   : > { %3040 = vmatprep.subr.bf16.mxu0 %v3039_v24 }
  0x85   : > { %2914 = vmatpush3.bf16.msra.mxu1 %v2911_v22 }
  0x86   : > { %3042 = vmatpush3.bf16.msra.mxu0 %v3039_v24  ;;  %2916 = vmatprep.subr.bf16.mxu1 %v2915_v32 }
  0x87   : > { %3044 = vmatprep.subr.bf16.mxu0 %v3043_v33 }
  0x89   : > { %2918 = vmatpush3.bf16.msra.mxu1 %v2915_v32 }
  0x8a   : > { %3046 = vmatpush3.bf16.msra.mxu0 %v3043_v33  ;;  %2920 = vmatprep.subr.bf16.mxu1 %v2919_v20 }
  0x8b   : > { %3048 = vmatprep.subr.bf16.mxu0 %v3047_v41 }
  0x8d   : > { %2922 = vmatpush3.bf16.msra.mxu1 %v2919_v20 }
  0x8e   : > { %3050 = vmatpush3.bf16.msra.mxu0 %v3047_v41  ;;  %3083 = vmatprep.subr.bf16.mxu1 %v3051_v50 }
  0x8f   : > { %3052 = vmatprep.subr.bf16.mxu0 %v3051_v50 }
  0x90   : > { %2564 = vmatmul.mubr.f32.vlgmr.msra.gmra.mrb[0].mxu1 %v3508_v56  ;;  %v2165_v56 = vld [vmem:[%s4332_s1 + $0x430] sm:$0xff] }
  0x91   : > { %2740 = vmatmul.mubr.f32.vlgmr.msra.gmra.mrb[0].mxu0 %v3579_v23  ;;  %3091 = vmatpush3.bf16.msra.mxu1 %v3051_v50  ;;  %v2168_v23 = vld [vmem:[%s4332_s1 + $0x448] sm:$0xff] }
  0x92   : > { %3054 = vmatpush3.bf16.msra.mxu0 %v3051_v50  ;;  %2566 = vmatprep.mubr.f32.mxu1 %v3525_v0  ;;  %v3063_v0 = vpack.c.bf16 %v2166_v40, %v2165_v56 }
  0x93   : > { %2742 = vmatprep.mubr.f32.mxu0 %v3587_v31  ;;  %3056 = vmatprep.subr.bf16.mxu0 %v3055_v53  ;;  %v2169_v31 = vld [vmem:[%s4332_s1 + $0x450] sm:$0xff] }
  0x94   : > { %2567 = vmatmul.mubr.f32.gmra.mrb[2].mxu1 %v3534_v4  ;;  %3084 = vmatprep.subr.bf16.mxu1 %v3055_v53  ;;  %v2167_v4 = vld [vmem:[%s4332_s1 + $0x440] sm:$0xff] }
  0x95   : > { %2743 = vmatmul.mubr.f32.gmra.mrb[2].mxu0 %v3617_v43  ;;  %3092 = vmatpush3.bf16.msra.mxu1 %v3055_v53  ;;  %v2170_v43 = vld [vmem:[%s4332_s1 + $0x458] sm:$0xff] }
  0x96   : > { %3058 = vmatpush3.bf16.msra.mxu0 %v3055_v53  ;;  %2569 = vmatprep.mubr.f32.mxu1 %v3556_v15  ;;  %v3067_v15 = vpack.c.bf16 %v2168_v23, %v2167_v4 }
  0x97   : > { %2745 = vmatprep.mubr.f32.mxu0 %v3625_v48  ;;  %3060 = vmatprep.subr.bf16.mxu0 %v3059_v55  ;;  %v2172_v48 = vld [vmem:[%s4332_s1 + $0x468] sm:$0xff] }
  0x98   : > { %2570 = vmatmul.mubr.f32.gmra.mrb[4].mxu1 %v3565_v19  ;;  %3085 = vmatprep.subr.bf16.mxu1 %v3059_v55  ;;  %v3071_v19 = vpack.c.bf16 %v2170_v43, %v2169_v31 }
  0x99   : > { %2746 = vmatmul.mubr.f32.gmra.mrb[4].mxu0 %v3648_v60  ;;  %3093 = vmatpush3.bf16.msra.mxu1 %v3059_v55  ;;  %v2173_v60 = vld [vmem:[%s4332_s1 + $0x470] sm:$0xff] }
  0x9a   : > { %3062 = vmatpush3.bf16.msra.mxu0 %v3059_v55  ;;  %2572 = vmatprep.mubr.f32.mxu1 %v3592_v34  ;;  %v2171_v34 = vld [vmem:[%s4332_s1 + $0x460] sm:$0xff] }
  0x9b   : > { %2748 = vmatprep.mubr.f32.mxu0 %v3653_v2  ;;  %3064 = vmatprep.subr.bf16.mxu0 %v3063_v0  ;;  %v2174_v2 = vld [vmem:[%s4332_s1 + $0x478] sm:$0xff] }
  0x9c   : > { %2573 = vmatmul.mubr.f32.gmra.mrb[6].mxu1 %v3602_v38  ;;  %3086 = vmatprep.subr.bf16.mxu1 %v3063_v0  ;;  %v3075_v38 = vpack.c.bf16 %v2172_v48, %v2171_v34 }
  0x9d   : > { %2749 = vmatmul.mubr.f32.gmra.mrb[6].mxu0 %v3701_v42  ;;  %3094 = vmatpush3.bf16.msra.mxu1 %v3063_v0  ;;  %v3079_v42 = vpack.c.bf16 %v2174_v2, %v2173_v60 }
  0x9e   : > { %3066 = vmatpush3.bf16.msra.mxu0 %v3063_v0  ;;  %3087 = vmatprep.subr.bf16.mxu1 %v3067_v15 }
  0x9f   : > { %3068 = vmatprep.subr.bf16.mxu0 %v3067_v15  ;;  %2783 = vmatprep.mubr.f32.mxu0 %v3741_v30 }
  0xa0   : > { %2789 = vmatprep.mubr.f32.mxu1 %v3791_v49 }
  0xa1   : > { %3095 = vmatpush3.bf16.msra.mxu1 %v3067_v15 }
  0xa2   : > { %3070 = vmatpush3.bf16.msra.mxu0 %v3067_v15  ;;  %3088 = vmatprep.subr.bf16.mxu1 %v3071_v19 }
  0xa3   : > { %3072 = vmatprep.subr.bf16.mxu0 %v3071_v19 }
  0xa5   : > { %3096 = vmatpush3.bf16.msra.mxu1 %v3071_v19 }
  0xa6   : > { %3074 = vmatpush3.bf16.msra.mxu0 %v3071_v19  ;;  %3089 = vmatprep.subr.bf16.mxu1 %v3075_v38 }
  0xa7   : > { %3076 = vmatprep.subr.bf16.mxu0 %v3075_v38 }
  0xa9   : > { %3097 = vmatpush3.bf16.msra.mxu1 %v3075_v38 }
  0xaa   : > { %3078 = vmatpush3.bf16.msra.mxu0 %v3075_v38  ;;  %3090 = vmatprep.subr.bf16.mxu1 %v3079_v42 }
  0xab   : > { %3080 = vmatprep.subr.bf16.mxu0 %v3079_v42 }
  0xad   : > { %3098 = vmatpush3.bf16.msra.mxu1 %v3079_v42 }
  0xae   : > { %3082 = vmatpush3.bf16.msra.mxu0 %v3079_v42 }
  0xb0   : > { %2790 = vmatmul.mubr.f32.vlgmr.msra.gmra.mrb[8].mxu1 %v3814_v59 }
  0xb1   : > { %2784 = vmatmul.mubr.f32.vlgmr.msra.gmra.mrb[0].mxu0 %v3760_v21  ;;  %2792 = vmatprep.mubr.f32.mxu1 %v3817_v61 }
  0xb2   : > { %2786 = vmatprep.mubr.f32.mxu0 %v3765_v25 }
  0xb4   : > { %2793 = vmatmul.mubr.f32.gmra.mrb[10].mxu1 %v3704_v44  ;;  %v4048_v44 = vld [vmem:[%s4333_s2] ss:$0 sm:$0xff] }
  0xb5   : > { %2787 = vmatmul.mubr.f32.gmra.mrb[2].mxu0 %v3786_v37 }
 0x163   : > { %v2565_v30 = vpop.f32.mrb[0].mxu1 }
 0x164   : > { %v852_v49 = vpop.f32.mrb[1].mxu1 }
 0x167   : > { %v2568_v58 = vpop.f32.mrb[2].mxu1 }
 0x168   : > { %v4043_v26 = vpop.f32.mrb[3].mxu1 }
 0x16b   : > { %v2571_v11 = vpop.f32.mrb[4].mxu1 }
 0x16c   : > { %v2747_v62 = vpop.f32.mrb[4].mxu0  ;;  %v872_v63 = vpop.f32.mrb[5].mxu1 }
 0x16d   : > { %v3103_v46 = vadd.f32 %v2747_v62, %v2571_v11  ;;  %v1472_v59 = vpop.f32.mrb[5].mxu0 }
 0x16e   : > { %v3105_v3 = vadd.f32 %v1472_v59, %v872_v63 }
 0x16f   : > { %v2574_v21 = vpop.f32.mrb[6].mxu1 }
 0x170   : > { %v2750_v57 = vpop.f32.mrb[6].mxu0  ;;  %v882_v61 = vpop.f32.mrb[7].mxu1 }
 0x171   : > { %v3107_v6 = vadd.f32 %v2750_v57, %v2574_v21  ;;  %v1482_v25 = vpop.f32.mrb[7].mxu0 }
 0x172   : > { %v3109_v7 = vadd.f32 %v1482_v25, %v882_v61 }
 0x183   : > { %v2791_v37 = vpop.f32.mrb[8].mxu1 }
 0x184   : > { %v2785_v8 = vpop.f32.mrb[0].mxu0  ;;  %v3104_v9 = vadd.f32 %v3103_v46, %v2791_v37  ;;  %v1622_v12 = vpop.f32.mrb[9].mxu1 }
 0x185   : > { %v3099_v14 = vadd.f32 %v2785_v8, %v2565_v30  ;;  %v1602_v1 = vpop.f32.mrb[1].mxu0  ;;  %v3106_v18 = vadd.f32 %v3105_v3, %v1622_v12 }
 0x186   : > { %v1685_v5 = vmul.f32 %v3104_v9, %v4048_v44  ;;  %v3100_v22 = vadd.f32 %v1602_v1, %v852_v49 }
 0x187   : > { %v1681_v24 = vmul.f32 %v3099_v14, %v4048_v44  ;;  %v1684_v39 = vmul.f32 %v3106_v18, %v4048_v44  ;;  %v2794_v27 = vpop.f32.mrb[10].mxu1 }
 0x188   : > { %v1700_v28 = vadd.f32 %v4053_v17, %v1685_v5  ;;  %v1680_v13 = vmul.f32 %v3100_v22, %v4048_v44  ;;  %v2788_v32 = vpop.f32.mrb[2].mxu0  ;;  %v3108_v33 = vadd.f32 %v3107_v6, %v2794_v27  ;;  %v1632_v29 = vpop.f32.mrb[11].mxu1 }
 0x189   : > { %v1696_v16 = vadd.f32 %v4053_v17, %v1681_v24  ;;  %v4062_v36 = vadd.f32 %v4053_v17, %v1684_v39  ;;  %v3101_v10 = vadd.f32 %v2788_v32, %v2568_v58  ;;  %v1612_v20 = vpop.f32.mrb[3].mxu0  ;;  %v3110_v41 = vadd.f32 %v3109_v7, %v1632_v29 }
 0x18a   : > { %v4064_v45 = vmul.f32 0.70710677, %v1700_v28  ;;  %v4067_v47 = vadd.f32 %v4053_v17, %v1680_v13  ;;  %v1687_v48 = vmul.f32 %v3108_v33, %v4048_v44  ;;  %v3102_v58 = vadd.f32 %v1612_v20, %v4043_v26 }
 0x18b   : > { %v4069_v50 = vmul.f32 0.70710677, %v1696_v16  ;;  %v4072_v51 = vmul.f32 0.70710677, %v4062_v36  ;;  %v1683_v31 = vmul.f32 %v3101_v10, %v4048_v44  ;;  %v1686_v61 = vmul.f32 %v3110_v41, %v4048_v44 }
 0x18c   : > { %vm1724_vm2 = vcmp.ge.f32.partialorder %v4064_v45, 0.0  ;;  %v1732_v52 = vsub.f32 0.0, %v4064_v45  ;;  %v4077_v53 = vmul.f32 0.70710677, %v4067_v47  ;;  %v4103_v49 = vadd.f32 %v4053_v17, %v1687_v48 }
 0x18d   : > { %vm1720_vm3 = vcmp.ge.f32.partialorder %v4069_v50, 0.0  ;;  %v1728_v35 = vsub.f32 0.0, %v4069_v50  ;;  %vm1723_vm4 = vcmp.ge.f32.partialorder %v4072_v51, 0.0  ;;  %v1731_v54 = vsub.f32 0.0, %v4072_v51 }
 0x18e   : > { %v1740_v55 = vsel %vm1724_vm2, %v4064_v45, %v1732_v52  ;;  %vm1719_vm5 = vcmp.ge.f32.partialorder %v4077_v53, 0.0  ;;  %v1727_v56 = vsub.f32 0.0, %v4077_v53  ;;  %v4100_v42 = vadd.f32 %v4053_v17, %v1683_v31 }
 0x18f   : > { %v1736_v40 = vsel %vm1720_vm3, %v4069_v50, %v1728_v35  ;;  %v1748_v0 = vmul.f32 0.3275911, %v1740_v55  ;;  %v1739_v4 = vsel %vm1723_vm4, %v4072_v51, %v1731_v54  ;;  %v1852_v60 = vmul.f32 %v1740_v55, %v1740_v55 }
 0x190   : > { %v1744_v23 = vmul.f32 0.3275911, %v1736_v40  ;;  %v1735_v15 = vsel %vm1719_vm5, %v4077_v53, %v1727_v56  ;;  %v1747_v34 = vmul.f32 0.3275911, %v1739_v4  ;;  %v1848_v11 = vmul.f32 %v1736_v40, %v1736_v40 }
 0x191   : > { %v1756_v43 = vadd.f32 1.0, %v1748_v0  ;;  %v1743_v19 = vmul.f32 0.3275911, %v1735_v15  ;;  %v1860_v62 = vsub.f32 0.0, %v1852_v60  ;;  %v4107_v63 = vmul.f32 0.70710677, %v4100_v42 }
 0x192   : > { %v1752_v38 = vadd.f32 1.0, %v1744_v23  ;;  %v1755_v30 = vadd.f32 1.0, %v1747_v34  ;;  %v1847_v46 = vmul.f32 %v1735_v15, %v1735_v15  ;;  %v4110_v59 = vmul.f32 0.70710677, %v4103_v49 }
 0x193   : > { %3205 = vrcp.f32 %v1756_v43  ;;  %v1751_v2 = vadd.f32 1.0, %v1743_v19  ;;  %v1682_v3 = vmul.f32 %v3102_v58, %v4048_v44  ;;  %v1851_v21 = vmul.f32 %v1739_v4, %v1739_v4 }
 0x194   : > { %3207 = vrcp.f32 %v1752_v38  ;;  %vm1722_vm6 = vcmp.ge.f32.partialorder %v4107_v63, 0.0  ;;  %v1730_v57 = vsub.f32 0.0, %v4107_v63  ;;  %vm1726_vm7 = vcmp.ge.f32.partialorder %v4110_v59, 0.0 }
 0x195   : > { %3209 = vrcp.f32 %v1751_v2  ;;  %v1734_v26 = vsub.f32 0.0, %v4110_v59  ;;  %v4119_v6 = vadd.f32 %v4053_v17, %v1682_v3  ;;  %v1873_v25 = vmul.f32 1.442695, %v1860_v62 }
 0x196   : > { %3211 = vrcp.f32 %v1755_v30  ;;  %v1738_v7 = vsel %vm1722_vm6, %v4107_v63, %v1730_v57  ;;  %v4125_v37 = vadd.f32 %v4053_v17, %v1686_v61  ;;  %v4127_v8 = vmul.f32 0.5, %v1700_v28 }
 0x197   : > { %v1746_v9 = vmul.f32 0.3275911, %v1738_v7  ;;  %v1742_v44 = vsel %vm1726_vm7, %v4110_v59, %v1734_v26  ;;  %v4132_v12 = vmul.f32 0.5, %v1696_v16  ;;  %v1856_v14 = vsub.f32 0.0, %v1848_v11 }
 0x198   : > { %v1750_v1 = vmul.f32 0.3275911, %v1742_v44  ;;  %v4135_v18 = vmul.f32 0.70710677, %v4119_v6  ;;  %v1855_v22 = vsub.f32 0.0, %v1847_v46  ;;  %v1859_v24 = vsub.f32 0.0, %v1851_v21 }
 0x199   : > { %v1754_v17 = vadd.f32 1.0, %v1746_v9  ;;  %v4140_v39 = vmul.f32 0.70710677, %v4125_v37  ;;  %3213 = vpow2.f32 %v1873_v25  ;;  %v1850_v33 = vmul.f32 %v1738_v7, %v1738_v7 }
 0x19a   : > { %v1758_v13 = vadd.f32 1.0, %v1750_v1  ;;  %vm1721_vm8 = vcmp.ge.f32.partialorder %v4135_v18, 0.0  ;;  %v1729_v29 = vsub.f32 0.0, %v4135_v18  ;;  %v1865_v16 = vmul.f32 1.442695, %v1856_v14 }
 0x19b   : > { %3215 = vrcp.f32 %v1754_v17  ;;  %vm1725_vm9 = vcmp.ge.f32.partialorder %v4140_v39, 0.0  ;;  %v1854_v52 = vmul.f32 %v1742_v44, %v1742_v44  ;;  %v1733_v54 = vsub.f32 0.0, %v4140_v39 }
 0x19c   : > { %3217 = vrcp.f32 %v1758_v13  ;;  %v1737_v35 = vsel %vm1721_vm8, %v4135_v18, %v1729_v29  ;;  %v1863_v40 = vmul.f32 1.442695, %v1855_v22  ;;  %v1871_v15 = vmul.f32 1.442695, %v1859_v24 }
 0x19d   : > { %v4137_v5 = vpop.eup %3205  ;;  %v1745_v0 = vmul.f32 0.3275911, %v1737_v35  ;;  %v1858_v31 = vsub.f32 0.0, %v1850_v33  ;;  %v1741_v43 = vsel %vm1725_vm9, %v4140_v39, %v1733_v54  ;;  %3219 = vpow2.f32 %v1865_v16 }
 0x19e   : > { %v4142_v27 = vpop.eup %3207  ;;  %v1780_v28 = vmul.f32 1.0614054, %v4137_v5  ;;  %v1862_v60 = vsub.f32 0.0, %v1854_v52  ;;  %v1749_v30 = vmul.f32 0.3275911, %v1741_v43  ;;  %3221 = vpow2.f32 %v1863_v40 }
 0x19f   : > { %v1776_v32 = vmul.f32 1.0614054, %v4142_v27  ;;  %v4149_v20 = vpop.eup %3209  ;;  %v1753_v2 = vadd.f32 1.0, %v1745_v0  ;;  %v4175_v3 = vmul.f32 0.5, %v4062_v36  ;;  %v1869_v44 = vmul.f32 1.442695, %v1858_v31 }
 0x1a0   : > { %v1788_v10 = vadd.f32 -1.4531521, %v1780_v28  ;;  %v1775_v56 = vmul.f32 1.0614054, %v4149_v20  ;;  %v4157_v4 = vpop.eup %3211  ;;  %v1757_v21 = vadd.f32 1.0, %v1749_v30  ;;  %v1849_v1 = vmul.f32 %v1737_v35, %v1737_v35 }
 0x1a1   : > { %v1784_v41 = vadd.f32 -1.4531521, %v1776_v32  ;;  %v1779_v48 = vmul.f32 1.0614054, %v4157_v4  ;;  %3223 = vrcp.f32 %v1753_v2  ;;  %v1877_v14 = vmul.f32 1.442695, %v1862_v60 }
 0x1a2   : > { %v1796_v55 = vmul.f32 %v4137_v5, %v1788_v10  ;;  %v1783_v34 = vadd.f32 -1.4531521, %v1775_v56  ;;  %3225 = vpow2.f32 %v1871_v15  ;;  %v1853_v33 = vmul.f32 %v1741_v43, %v1741_v43 }
 0x1a3   : > { %v1792_v23 = vmul.f32 %v4142_v27, %v1784_v41  ;;  %v1787_v62 = vadd.f32 -1.4531521, %v1779_v48  ;;  %v3214_v57 = vpop.eup %3213  ;;  %3227 = vrcp.f32 %v1757_v21  ;;  %v4195_v35 = vmul.f32 0.5, %v4067_v47 }
 0x1a4   : > { %v1804_v19 = vadd.f32 1.4214138, %v1796_v55  ;;  %v1791_v11 = vmul.f32 %v4149_v20, %v1783_v34  ;;  %v1857_v55 = vsub.f32 0.0, %v1849_v1  ;;  %3229 = vpow2.f32 %v1869_v44 }
 0x1a5   : > { %v1800_v38 = vadd.f32 1.4214138, %v1792_v23  ;;  %v1795_v25 = vmul.f32 %v4157_v4, %v1787_v62  ;;  %v4178_v7 = vpop.eup %3215  ;;  %3231 = vpow2.f32 %v1877_v14  ;;  %v1709_v18 = vmul.f32 0.5, %v4125_v37 }
 0x1a6   : > { %v1812_v58 = vmul.f32 %v4137_v5, %v1804_v19  ;;  %v1799_v26 = vadd.f32 1.4214138, %v1791_v11  ;;  %v4180_v22 = vpop.eup %3217  ;;  %v1778_v28 = vmul.f32 1.0614054, %v4178_v7  ;;  %v1861_v19 = vsub.f32 0.0, %v1853_v33 }
 0x1a7   : > { %v1808_v46 = vmul.f32 %v4142_v27, %v1800_v38  ;;  %v1803_v17 = vadd.f32 1.4214138, %v1795_v25  ;;  %v1782_v32 = vmul.f32 1.0614054, %v4180_v22  ;;  %v3220_v56 = vpop.eup %3219 }
 0x1a8   : > { %v1820_v61 = vadd.f32 -0.28449672, %v1812_v58  ;;  %v1807_v24 = vmul.f32 %v4149_v20, %v1799_v26  ;;  %v1786_v41 = vadd.f32 -1.4531521, %v1778_v28  ;;  %v3222_v34 = vpop.eup %3221  ;;  %v1867_v58 = vmul.f32 1.442695, %v1857_v55 }
 0x1a9   : > { %v1816_v9 = vadd.f32 -0.28449672, %v1808_v46  ;;  %v1811_v10 = vmul.f32 %v4157_v4, %v1803_v17  ;;  %v1790_v54 = vadd.f32 -1.4531521, %v1782_v32  ;;  %v4210_v25 = vmul.f32 1.442695, %v1861_v19 }
 0x1aa   : > { %v1828_v36 = vmul.f32 %v4137_v5, %v1820_v61  ;;  %v1815_v16 = vadd.f32 -0.28449672, %v1807_v24  ;;  %v1794_v15 = vmul.f32 %v4178_v7, %v1786_v41  ;;  %3233 = vpow2.f32 %v1867_v58 }
 0x1ab   : > { %v1824_v13 = vmul.f32 %v4142_v27, %v1816_v9  ;;  %v1819_v23 = vadd.f32 -0.28449672, %v1811_v10  ;;  %v1798_v43 = vmul.f32 %v4180_v22, %v1790_v54  ;;  %v4203_v2 = vpop.eup %3223  ;;  %v1932_v54 = vld [vmem:[%s4216_s10 + $0x28] sm:$0xff]  ;;  %3235 = vpow2.f32 %v4210_v25 }
 0x1ac   : > { %v1836_v29 = vadd.f32 0.2548296, %v1828_v36  ;;  %v1823_v0 = vmul.f32 %v4149_v20, %v1815_v16  ;;  %v1802_v60 = vadd.f32 1.4214138, %v1794_v15  ;;  %v3226_v11 = vpop.eup %3225  ;;  %v1777_v26 = vmul.f32 1.0614054, %v4203_v2 }
 0x1ad   : > { %v1832_v52 = vadd.f32 0.2548296, %v1824_v13  ;;  %v1827_v38 = vmul.f32 %v4157_v4, %v1819_v23  ;;  %v1806_v30 = vadd.f32 1.4214138, %v1798_v43  ;;  %v4219_v1 = vpop.eup %3227 }
 0x1ae   : > { %v1844_v40 = vmul.f32 %v4137_v5, %v1836_v29  ;;  %v1831_v48 = vadd.f32 0.2548296, %v1823_v0  ;;  %v1810_v21 = vmul.f32 %v4178_v7, %v1802_v60  ;;  %v1785_v17 = vadd.f32 -1.4531521, %v1777_v26  ;;  %v1928_v29 = vld [vmem:[%s4216_s10 + $0x8] sm:$0xff] }
 0x1af   : > { %v1840_v31 = vmul.f32 %v4142_v27, %v1832_v52  ;;  %v1835_v46 = vadd.f32 0.2548296, %v1827_v38  ;;  %v1814_v61 = vmul.f32 %v4180_v22, %v1806_v30  ;;  %v1781_v50 = vmul.f32 1.0614054, %v4219_v1  ;;  %v1927_v30 = vld [vmem:[%s4216_s10] sm:$0xff] }
 0x1b0   : > { %v1884_v47 = vmul.f32 %v3214_v57, %v1844_v40  ;;  %v1839_v62 = vmul.f32 %v4149_v20, %v1831_v48  ;;  %v1818_v14 = vadd.f32 -0.28449672, %v1810_v21  ;;  %v1793_v41 = vmul.f32 %v4203_v2, %v1785_v17  ;;  %v3230_v40 = vpop.eup %3229 }
 0x1b1   : > { %v1880_v5 = vmul.f32 %v3220_v56, %v1840_v31  ;;  %v1843_v44 = vmul.f32 %v4157_v4, %v1835_v46  ;;  %v1822_v24 = vadd.f32 -0.28449672, %v1814_v61 }
 0x1b2   : > { %v1892_v27 = vsub.f32 1.0, %v1884_v47  ;;  %v1879_v20 = vmul.f32 %v3222_v34, %v1839_v62  ;;  %v1826_v33 = vmul.f32 %v4178_v7, %v1818_v14  ;;  %v1801_v15 = vadd.f32 1.4214138, %v1793_v41  ;;  %v3232_v47 = vpop.eup %3231  ;;  %v1931_v62 = vld [vmem:[%s4216_s10 + $0x20] sm:$0xff] }
 0x1b3   : > { %v1888_v57 = vsub.f32 1.0, %v1880_v5  ;;  %v1883_v32 = vmul.f32 %v3226_v11, %v1843_v44  ;;  %v1830_v10 = vmul.f32 %v4180_v22, %v1822_v24  ;;  %v1789_v11 = vadd.f32 -1.4531521, %v1781_v50 }
 0x1b4   : > { %v1900_v9 = vsub.f32 0.0, %v1892_v27  ;;  %v1887_v13 = vsub.f32 1.0, %v1879_v20  ;;  %v1834_v56 = vadd.f32 0.2548296, %v1826_v33  ;;  %v3234_v21 = vpop.eup %3233  ;;  %v1930_v33 = vld [vmem:[%s4216_s10 + $0x18] sm:$0xff] }
 0x1b5   : > { %v1896_v36 = vsub.f32 0.0, %v1888_v57  ;;  %v1891_v45 = vsub.f32 1.0, %v1883_v32  ;;  %v1838_v23 = vadd.f32 0.2548296, %v1830_v10  ;;  %v1797_v51 = vmul.f32 %v4219_v1, %v1789_v11 }
 0x1b6   : > { %v1908_v28 = vsel %vm1724_vm2, %v1892_v27, %v1900_v9  ;;  %v1895_v55 = vsub.f32 0.0, %v1887_v13  ;;  %v1842_v34 = vmul.f32 %v4178_v7, %v1834_v56 }
 0x1b7   : > { %v1904_v4 = vsel %vm1720_vm3, %v1888_v57, %v1896_v36  ;;  %v1916_v16 = vadd.f32 1.0, %v1908_v28  ;;  %v1899_v19 = vsub.f32 0.0, %v1891_v45  ;;  %v1846_v60 = vmul.f32 %v4180_v22, %v1838_v23 }
 0x1b8   : > { %v1912_v52 = vadd.f32 1.0, %v1904_v4  ;;  %v1903_v43 = vsel %vm1719_vm5, %v1887_v13, %v1895_v55  ;;  %v1805_v44 = vadd.f32 1.4214138, %v1797_v51  ;;  %v1710_v4 = vmul.f32 0.5, %v4103_v49 }
 0x1b9   : > { %v1924_v0 = vmul.f32 %v1916_v16, %v4127_v8  ;;  %v1911_v38 = vadd.f32 1.0, %v1903_v43  ;;  %v1809_v8 = vmul.f32 %v4203_v2, %v1801_v15  ;;  %v1907_v58 = vsel %vm1723_vm4, %v1891_v45, %v1899_v19  ;;  %v1934_v16 = vld [vmem:[%s4216_s10 + $0x38] sm:$0xff]  ;;  %v3236_v45 = vpop.eup %3235  ;;  %v1929_v15 = vld [vmem:[%s4216_s10 + $0x10] sm:$0xff] }
 0x1ba   : > { %v1920_v31 = vmul.f32 %v1912_v52, %v4132_v12  ;;  %v1882_v12 = vmul.f32 %v3230_v40, %v1842_v34  ;;  %v1915_v7 = vadd.f32 1.0, %v1907_v58  ;;  %v1886_v27 = vmul.f32 %v3232_v47, %v1846_v60 }
 0x1bb   : > { %v1940_v48 = vadd.f32 %v1932_v54, %v1924_v0  ;;  %v1919_v53 = vmul.f32 %v1911_v38, %v4195_v35  ;;  %v1817_v22 = vadd.f32 -0.28449672, %v1809_v8  ;;  %v1813_v17 = vmul.f32 %v4219_v1, %v1805_v44 }
 0x1bc   : > { %v1936_v5 = vadd.f32 %v1928_v29, %v1920_v31  ;;  %v1890_v46 = vsub.f32 1.0, %v1882_v12  ;;  %v1923_v61 = vmul.f32 %v1915_v7, %v4175_v3  ;;  %v1894_v26 = vsub.f32 1.0, %v1886_v27 }
 0x1bd   : > { %1948 = vst [vmem:[%s4243_s9 + $0x28] sm:$0xff] %v1940_v48  ;;  %v1935_v57 = vadd.f32 %v1927_v30, %v1919_v53  ;;  %v1825_v9 = vmul.f32 %v4203_v2, %v1817_v22  ;;  %v1706_v3 = vmul.f32 0.5, %v4100_v42  ;;  %v1821_v29 = vadd.f32 -0.28449672, %v1813_v17 }
 0x1be   : > { %1944 = vst [vmem:[%s4243_s9 + $0x8] sm:$0xff] %v1936_v5  ;;  %v1898_v20 = vsub.f32 0.0, %v1890_v46  ;;  %v1939_v35 = vadd.f32 %v1931_v62, %v1923_v61  ;;  %v1902_v14 = vsub.f32 0.0, %v1894_v26  ;;  %v1705_v40 = vmul.f32 0.5, %v4119_v6  ;;  %v1933_v6 = vld [vmem:[%s4216_s10 + $0x30] sm:$0xff] }
 0x1bf   : > { %1943 = vst [vmem:[%s4243_s9] sm:$0xff] %v1935_v57  ;;  %v1833_v36 = vadd.f32 0.2548296, %v1825_v9  ;;  %v1829_v42 = vmul.f32 %v4219_v1, %v1821_v29 }
 0x1c0   : > { %v1906_v24 = vsel %vm1722_vm6, %v1890_v46, %v1898_v20  ;;  %1947 = vst [vmem:[%s4243_s9 + $0x20] sm:$0xff] %v1939_v35  ;;  %v1910_v13 = vsel %vm1726_vm7, %v1894_v26, %v1902_v14 }
 0x1c1   : > { %v1914_v28 = vadd.f32 1.0, %v1906_v24  ;;  %v1841_v32 = vmul.f32 %v4203_v2, %v1833_v36  ;;  %v1918_v25 = vadd.f32 1.0, %v1910_v13  ;;  %v1837_v55 = vadd.f32 0.2548296, %v1829_v42 }
 0x1c3   : > { %v1922_v63 = vmul.f32 %v1914_v28, %v1706_v3  ;;  %v1881_v10 = vmul.f32 %v3234_v21, %v1841_v32  ;;  %v1926_v41 = vmul.f32 %v1918_v25, %v1710_v4  ;;  %v1845_v49 = vmul.f32 %v4219_v1, %v1837_v55 }
 0x1c5   : > { %v1938_v52 = vadd.f32 %v1930_v33, %v1922_v63  ;;  %v1889_v54 = vsub.f32 1.0, %v1881_v10  ;;  %v1942_v59 = vadd.f32 %v1934_v16, %v1926_v41  ;;  %v1885_v23 = vmul.f32 %v3236_v45, %v1845_v49 }
 0x1c7   : > { %1946 = vst [vmem:[%s4243_s9 + $0x18] sm:$0xff] %v1938_v52  ;;  %v1897_v2 = vsub.f32 0.0, %v1889_v54  ;;  %1950 = vst [vmem:[%s4243_s9 + $0x38] sm:$0xff] %v1942_v59  ;;  %v1893_v31 = vsub.f32 1.0, %v1885_v23 }
 0x1c9   : > { %v1905_v56 = vsel %vm1721_vm8, %v1889_v54, %v1897_v2  ;;  %v1901_v19 = vsub.f32 0.0, %v1893_v31 }
 0x1ca   : > { %v1913_v0 = vadd.f32 1.0, %v1905_v56 }
 0x1cb   : > { %v1909_v1 = vsel %vm1725_vm9, %v1893_v31, %v1901_v19 }
 0x1cc   : > { %v1921_v50 = vmul.f32 %v1913_v0, %v1705_v40  ;;  %v1917_v34 = vadd.f32 1.0, %v1909_v1 }
 0x1ce   : > { %v1937_v43 = vadd.f32 %v1929_v15, %v1921_v50  ;;  %v1925_v47 = vmul.f32 %v1917_v34, %v1709_v18 }
 0x1d0   : > { %1945 = vst [vmem:[%s4243_s9 + $0x10] sm:$0xff] %v1937_v43  ;;  %v1941_v48 = vadd.f32 %v1933_v6, %v1925_v47 }
 0x1d2   : > { %1949 = vst [vmem:[%s4243_s9 + $0x30] sm:$0xff] %v1941_v48 }
 0x1d3   : > { %3250 = shalt.err (!%p3247_p4)
}
 0x1d4   : > { %s3251_s30 = scalar_lea.hbm %s4283_s16, 1024  ;;  %s3255_s8 = scalar_lea.hbm %s4336_s5, 2048 }
 0x1d5   : > { %p3252_p7 = scmp.ne.s32.totalorder %s4283_s16, %s3251_s30  ;;  %p3256_p10 = scmp.lt.u32.totalorder %s4283_s16, %s4336_s5 }
 0x1d6   : > { %p3257_p11 = scmp.lt.u32.totalorder %s3255_s8, %s3251_s30  ;;  %p3259_p13 = scmp.lt.u32.totalorder %s3251_s30, %s4283_s16 }
 0x1d7   : > { %p3253_p8 = pnand %p3252_p7, %p3372_p5 }
 0x1d8   : > { %p3258_p12 = por %p3257_p11, %p3256_p10 }
 0x1d9   : > { %p3254_p9 = pneg %p3253_p8 }
 0x1da   : > { %p3260_p0 = por %p3259_p13, %p3258_p12 }
 0x1dc   : > { %p3261_p1 = pnand %p3260_p0, %p3254_p9 }
 0x1de   : > { %3264 = shalt.err (!%p3261_p1)
}
 0x1df   : > { %s3302_s9 = smov 128   ;;  %s3303_s12 = smov 8  }
 0x1e0   : > { %3164 = dma.vmem_to_hbm [thread:$0]  (%p3372_p5), %s4285_s13, 1024, %s4283_s16, %s4290_s17, %s3302_s9, %s3302_s9, %s3303_s12  }
 0x1e1 PF: > { %p3170_p2 = scmp.ge.s32.totalorder %s3299_s21, 2  ;;  %s1980_s14 = sand.u32 1, %s3287_s18  }
 0x1e2   : > { %s1981_s15 = scalar_lea.sflag [#allocation4], %s1980_s14 }
 0x1e3   : > { %p3167_p3 = pnand %p3170_p2, %p3376_p6 }
 0x1e5   : > { %3282 = dma.done.wait (!%p3167_p3), %s1981_s15, 1024  }
 0x1e6   : > { %3284 = vsyncadd (!%p3167_p3), %s1981_s15, 4294966272  ;;  %p15_p4 = scmp.ge.s32.totalorder %s3359_s24, 4   ;;  %s4340_s18 = smov %s3291_s19 }
 0x1e7   : > { %s4341_s19 = smov %s3295_s20  ;;  %s4342_s20 = smov %s3370_s27 }
 0x1e8   : > { %s4343_s21 = smov %s3359_s24  ;;  %17 = sbr.rel (!%p15_p4) target bundleno = 3 (0x3), region = 86 }
 0x1ef   :  { %1986 = vsyncpa [#allocation4], 1 }
 0x1f0   :  { %1988 = vsyncpa [#allocation4 + $0x1], 1 }

</bundles_post_ra>
